<compile_context>
chip_gen: v6e
topology: v6e:2x2x1
jax: 0.10.0
libtpu: 0.0.40
codegen_flags: <defaults>
</compile_context>

<pallas_src>
import numpy as np
import jax
import jax.numpy as jnp
from jax.experimental import pallas as pl
from jax.experimental.pallas import tpu as pltpu

FEATS = 8                     # n_feats
N_WINDOW = 5
N_HIDDEN = 16
N = N_WINDOW * FEATS          # 40
CHUNK = 128                   # per-source lane stride (padded 64 -> 128, vreg aligned)
EW = FEATS * CHUNK            # 1024 lanes of GAT logits (e half)
XS_OFF = EW                   # offset of the data_r-broadcast half (XS half)
BIGW = 2 * EW                 # 2048 total first-matmul output lanes
FPROWS = CHUNK + 8            # 136 rows: 128 folded-weight rows + 1 bias row, padded


def gdn_kernel(x_ref, bm_ref, fp_ref, o_ref):
    f32 = jnp.float32
    x = x_ref[...]                                               # (TB, 40)

    # One lane-dense MXU matmul produces, per sample:
    #   e [lane = s*128 + d*8 + h]  = asrcW[h]*data_r[s] + adstW[h]*data_r[d]
    #   xs[lane = 1024 + s*128 + j] = data_r[s]   (broadcast done by the MXU)
    big = jnp.dot(x, bm_ref[...], preferred_element_type=f32)    # (TB, 2048)

    # GAT leaky_relu(0.2), per vreg-aligned 128-lane source chunk.
    chunks = []
    for s in range(FEATS):
        es = big[:, s * CHUNK:(s + 1) * CHUNK]                   # (TB, 128), aligned
        chunks.append(jnp.maximum(es, 0.2 * es))

    # Softmax over source node s + weighted sum with data_r[s] (from the XS half).
    mmax = chunks[0]
    for s in range(1, FEATS):
        mmax = jnp.maximum(mmax, chunks[s])
    den = jnp.zeros_like(mmax)
    num = jnp.zeros_like(mmax)
    for s in range(FEATS):
        p = jnp.exp(chunks[s] - mmax)
        den = den + p
        num = num + p * big[:, XS_OFF + s * CHUNK:XS_OFF + (s + 1) * CHUNK]
    ratio = num / den                                            # (TB, 128); lanes 64..127 inert

    # Per-head W * ratio + GAT bias + fused fcn (Linear->Linear->sigmoid), all folded
    # offline into one block-diagonal matmul + bias (zero rows kill the inert lanes).
    fp = fp_ref[...]                                             # (136, 40)
    y = jnp.dot(ratio, fp[0:CHUNK, :], preferred_element_type=f32) + fp[CHUNK:CHUNK + 1, :]
    o_ref[...] = jax.nn.sigmoid(y)                               # (TB, 40)


def precompute_kernel_params(params):
    """Fold GAT + fcn parameters into two lane-dense slabs (done once, offline)."""
    (_w1, _b1, _w2, _b2, _w3, _b3, gw, asrc, adst, gb,
     f1, fb1, f2, fb2) = [np.asarray(p, np.float32) for p in params]
    F = FEATS
    W = gw.ravel()
    asrcW = asrc.ravel() * W
    adstW = adst.ravel() * W
    bias = gb.ravel()

    # Per-feature row of the folded first-matmul weight.
    #   e half : Mrow[g, s*128 + d*8 + h] = asrcW[h]*(g==s) + adstW[h]*(g==d)
    #   XS half: Mrow[g, 1024 + s*128 + j] = (g==s)  for all j (MXU broadcast of data_r)
    Mrow = np.zeros((F, BIGW), np.float32)
    for s in range(F):
        for d in range(F):
            for h in range(F):
                lane = s * CHUNK + d * F + h
                Mrow[s, lane] += asrcW[h]
                Mrow[d, lane] += adstW[h]
    for s in range(F):
        Mrow[s, XS_OFF + s * CHUNK:XS_OFF + (s + 1) * CHUNK] = 1.0
    # Window-sum folded in: input column w*8+g behaves exactly like feature g.
    BigM = np.tile(Mrow, (N_WINDOW, 1))                          # (40, 2048)

    # fcn fusion (LeakyReLU(True) == identity between the two Linears).
    f12 = f1 @ f2                                                # (8, 5)
    fb12 = (fb1 @ f2 + fb2).ravel()                              # (5,)

    # Block-diagonal (128, 40): rows d*8+h active, rows 64..127 stay zero.
    Fbig = np.zeros((CHUNK, N), np.float32)
    for d in range(F):
        Fbig[d * F:(d + 1) * F, d * N_WINDOW:(d + 1) * N_WINDOW] = W[:, None] * f12
    fbias = np.tile(bias @ f12 + fb12, F)                        # (40,)

    fparams = np.zeros((FPROWS, N), np.float32)
    fparams[:CHUNK] = Fbig
    fparams[CHUNK] = fbias
    return jnp.asarray(BigM), jnp.asarray(fparams)


def gdn_forward(data, params, *, tile=512, min_grid_steps=2):
    """data: (NB, 40) -- NB independent B=1 samples, each a flattened (5, 8) window."""
    BigM, fparams = precompute_kernel_params(params)
    nb = data.shape[0]

    # Clamp the tile so the "parallel" grid keeps >= min_grid_steps steps (v7x has two
    # TensorCores); round to a sublane multiple of 8.
    t = min(tile, max(8, -(-nb // min_grid_steps)))
    t = -(-t // 8) * 8
    nb_pad = -(-nb // t) * t
    if nb_pad != nb:
        data = jnp.pad(data, ((0, nb_pad - nb), (0, 0)))
    grid = (nb_pad // t,)

    cost = pl.CostEstimate(
        flops=2 * nb_pad * (N * BIGW + CHUNK * N),
        transcendentals=nb_pad * (FEATS * CHUNK + N),
        bytes_accessed=4 * (2 * nb_pad * N + N * BIGW + FPROWS * N),
    )

    out = pl.pallas_call(
        gdn_kernel,
        out_shape=jax.ShapeDtypeStruct((nb_pad, N), jnp.float32),
        grid=grid,
        in_specs=[
            pl.BlockSpec((t, N), lambda i: (i, 0)),           # per-tile input rows
            pl.BlockSpec((N, BIGW), lambda i: (0, 0)),        # grid-invariant folded GAT slab
            pl.BlockSpec((FPROWS, N), lambda i: (0, 0)),      # grid-invariant folded fcn slab
        ],
        out_specs=pl.BlockSpec((t, N), lambda i: (i, 0)),
        compiler_params=pltpu.CompilerParams(
            dimension_semantics=("parallel",),
            vmem_limit_bytes=32 * 1024 * 1024),
        cost_estimate=cost,
    )(data, BigM, fparams)
    return out[:nb]


def init_params(key):
    ks = jax.random.split(key, 14)

    def rn(k, shape, scale=0.2):
        return (scale * jax.random.normal(k, shape)).astype(jnp.float32)

    w1 = rn(ks[0], (N_HIDDEN, N))          # attention Linear(n, 16).weight (out, in)
    b1 = rn(ks[1], (N_HIDDEN, 1))
    w2 = rn(ks[2], (N_HIDDEN, N_HIDDEN))   # Linear(16, 16)
    b2 = rn(ks[3], (N_HIDDEN, 1))
    w3 = rn(ks[4], (N_WINDOW, N_HIDDEN))   # Linear(16, 5)
    b3 = rn(ks[5], (N_WINDOW, 1))
    gw = rn(ks[6], (1, FEATS))             # GATConv lin weight (heads*out=feats, in=1)
    asrc = rn(ks[7], (1, FEATS))           # GATConv att_src
    adst = rn(ks[8], (1, FEATS))           # GATConv att_dst
    gb = rn(ks[9], (1, FEATS))             # GATConv bias (heads*out,)
    f1 = rn(ks[10], (FEATS, N_HIDDEN))     # fcn Linear(feats, 16) stored (in, out)
    fb1 = rn(ks[11], (1, N_HIDDEN))
    f2 = rn(ks[12], (N_HIDDEN, N_WINDOW))  # fcn Linear(16, 5) stored (in, out)
    fb2 = rn(ks[13], (1, N_WINDOW))
    return (w1, b1, w2, b2, w3, b3, gw, asrc, adst, gb, f1, fb1, f2, fb2)


def gdn_reference(data, params):
    """Pure numpy reference mirroring the full torch forward (incl. attention MLP)."""
    (w1, b1, w2, b2, w3, b3, gw, asrc, adst, gb,
     f1, fb1, f2, fb2) = [np.asarray(p, np.float32) for p in params]
    data = np.asarray(data, np.float32)
    outs = []
    for row in data:
        d = row.reshape(1, N)
        # attention: Flatten -> Linear -> id -> Linear -> id -> Linear -> Softmax(dim=0)
        h = d @ w1.T + b1.ravel()
        h = h @ w2.T + b2.ravel()
        logits = h @ w3.T + b3.ravel()                        # (1, 5)
        z = logits - logits.max(axis=0, keepdims=True)
        att = np.exp(z) / np.exp(z).sum(axis=0, keepdims=True)
        att_score = att.reshape(-1, N_WINDOW, 1)              # (1, 5, 1)
        dwin = d.reshape(-1, N_WINDOW, FEATS)                 # (1, 5, F)
        data_r = np.matmul(np.transpose(dwin, (0, 2, 1)), att_score)[0, :, 0]  # (F,)

        # GATConv(1, 1, heads=F) on the fully-connected graph (with self loops)
        W = gw.ravel(); a_s = asrc.ravel(); a_d = adst.ravel(); bias = gb.ravel()
        xp = np.outer(data_r, W)                              # (nodes, heads)
        alpha_src = xp * a_s
        alpha_dst = xp * a_d
        out = np.zeros((FEATS, FEATS), np.float32)
        for dst in range(FEATS):
            e = alpha_src + alpha_dst[dst]                    # (S, H)
            e = np.where(e >= 0, e, 0.2 * e)
            e = e - e.max(axis=0, keepdims=True)
            a = np.exp(e)
            a = a / a.sum(axis=0, keepdims=True)
            out[dst] = (a * xp).sum(axis=0)
        feat_r = out + bias                                   # (F, F)

        # fcn (LeakyReLU(True) == identity)
        y = feat_r @ f1 + fb1.ravel()
        y = y @ f2 + fb2.ravel()
        outs.append((1.0 / (1.0 + np.exp(-y))).reshape(-1))
    return np.stack(outs, axis=0)


if __name__ == "__main__":
    key = jax.random.PRNGKey(0)
    kp, kd = jax.random.split(key)
    params = init_params(kp)

    # NB independent B=1 samples (the torch module itself only supports B=1 per call).
    NB = 256
    data = jax.random.normal(kd, (NB, N), dtype=jnp.float32)

    out = jax.block_until_ready(gdn_forward(data, params, tile=512))

    ref = gdn_reference(np.asarray(data), params)
    np.testing.assert_allclose(np.asarray(out), ref, rtol=1e-4, atol=2e-5)
    print("KERNEL_OK")
</pallas_src>

<mosaic_0001>
module attributes {stable_mosaic.version = 11 : i64} {
  func.func @gdn_kernel(%arg0: i32, %arg1: memref<128x40xf32, #tpu.memory_space<vmem>>, %arg2: memref<40x2048xf32, #tpu.memory_space<vmem>>, %arg3: memref<136x40xf32, #tpu.memory_space<vmem>>, %arg4: memref<128x40xf32, #tpu.memory_space<vmem>>) attributes {dimension_semantics = [#tpu.dimension_semantics<parallel>], iteration_bounds = array<i64: 2>, scalar_prefetch = 0 : i64, scratch_operands = 0 : i64, tpu.core_type = #tpu.core_type<tc>, window_params = [{transform_indices = @transform_0, window_bounds = array<i64: 128, 40>}, {pipeline_mode = #tpu.pipeline_mode<synchronous>, transform_indices = @transform_1, window_bounds = array<i64: 40, 2048>}, {pipeline_mode = #tpu.pipeline_mode<synchronous>, transform_indices = @transform_2, window_bounds = array<i64: 136, 40>}, {transform_indices = @transform_3, window_bounds = array<i64: 128, 40>}]} {
    %c0 = arith.constant 0 : index
    %c0_0 = arith.constant 0 : index
    %0 = vector.load %arg1[%c0, %c0_0] : memref<128x40xf32, #tpu.memory_space<vmem>>, vector<128x40xf32>
    %c0_1 = arith.constant 0 : index
    %c0_2 = arith.constant 0 : index
    %1 = vector.load %arg2[%c0_1, %c0_2] : memref<40x2048xf32, #tpu.memory_space<vmem>>, vector<40x2048xf32>
    %cst = arith.constant dense<0.000000e+00> : vector<128x2048xf32>
    %2 = tpu.matmul %0, %1, %cst {dimension_numbers = #tpu.dot_dimension_numbers<[1], [0], [0], [1], [0, 0, 1, 1], [], []>} : vector<128x40xf32>, vector<40x2048xf32>, vector<128x2048xf32> -> vector<128x2048xf32>
    %3 = vector.extract_strided_slice %2 {offsets = [0, 0], sizes = [128, 128], strides = [1, 1]} : vector<128x2048xf32> to vector<128x128xf32>
    %cst_3 = arith.constant 2.000000e-01 : f32
    %4 = vector.broadcast %cst_3 : f32 to vector<128x128xf32>
    %5 = arith.mulf %4, %3 : vector<128x128xf32>
    %6 = arith.maximumf %3, %5 : vector<128x128xf32>
    %7 = vector.extract_strided_slice %2 {offsets = [0, 128], sizes = [128, 128], strides = [1, 1]} : vector<128x2048xf32> to vector<128x128xf32>
    %cst_4 = arith.constant 2.000000e-01 : f32
    %8 = vector.broadcast %cst_4 : f32 to vector<128x128xf32>
    %9 = arith.mulf %8, %7 : vector<128x128xf32>
    %10 = arith.maximumf %7, %9 : vector<128x128xf32>
    %11 = vector.extract_strided_slice %2 {offsets = [0, 256], sizes = [128, 128], strides = [1, 1]} : vector<128x2048xf32> to vector<128x128xf32>
    %cst_5 = arith.constant 2.000000e-01 : f32
    %12 = vector.broadcast %cst_5 : f32 to vector<128x128xf32>
    %13 = arith.mulf %12, %11 : vector<128x128xf32>
    %14 = arith.maximumf %11, %13 : vector<128x128xf32>
    %15 = vector.extract_strided_slice %2 {offsets = [0, 384], sizes = [128, 128], strides = [1, 1]} : vector<128x2048xf32> to vector<128x128xf32>
    %cst_6 = arith.constant 2.000000e-01 : f32
    %16 = vector.broadcast %cst_6 : f32 to vector<128x128xf32>
    %17 = arith.mulf %16, %15 : vector<128x128xf32>
    %18 = arith.maximumf %15, %17 : vector<128x128xf32>
    %19 = vector.extract_strided_slice %2 {offsets = [0, 512], sizes = [128, 128], strides = [1, 1]} : vector<128x2048xf32> to vector<128x128xf32>
    %cst_7 = arith.constant 2.000000e-01 : f32
    %20 = vector.broadcast %cst_7 : f32 to vector<128x128xf32>
    %21 = arith.mulf %20, %19 : vector<128x128xf32>
    %22 = arith.maximumf %19, %21 : vector<128x128xf32>
    %23 = vector.extract_strided_slice %2 {offsets = [0, 640], sizes = [128, 128], strides = [1, 1]} : vector<128x2048xf32> to vector<128x128xf32>
    %cst_8 = arith.constant 2.000000e-01 : f32
    %24 = vector.broadcast %cst_8 : f32 to vector<128x128xf32>
    %25 = arith.mulf %24, %23 : vector<128x128xf32>
    %26 = arith.maximumf %23, %25 : vector<128x128xf32>
    %27 = vector.extract_strided_slice %2 {offsets = [0, 768], sizes = [128, 128], strides = [1, 1]} : vector<128x2048xf32> to vector<128x128xf32>
    %cst_9 = arith.constant 2.000000e-01 : f32
    %28 = vector.broadcast %cst_9 : f32 to vector<128x128xf32>
    %29 = arith.mulf %28, %27 : vector<128x128xf32>
    %30 = arith.maximumf %27, %29 : vector<128x128xf32>
    %31 = vector.extract_strided_slice %2 {offsets = [0, 896], sizes = [128, 128], strides = [1, 1]} : vector<128x2048xf32> to vector<128x128xf32>
    %cst_10 = arith.constant 2.000000e-01 : f32
    %32 = vector.broadcast %cst_10 : f32 to vector<128x128xf32>
    %33 = arith.mulf %32, %31 : vector<128x128xf32>
    %34 = arith.maximumf %31, %33 : vector<128x128xf32>
    %35 = arith.maximumf %6, %10 : vector<128x128xf32>
    %36 = arith.maximumf %35, %14 : vector<128x128xf32>
    %37 = arith.maximumf %36, %18 : vector<128x128xf32>
    %38 = arith.maximumf %37, %22 : vector<128x128xf32>
    %39 = arith.maximumf %38, %26 : vector<128x128xf32>
    %40 = arith.maximumf %39, %30 : vector<128x128xf32>
    %41 = arith.maximumf %40, %34 : vector<128x128xf32>
    %cst_11 = arith.constant 0.000000e+00 : f32
    %42 = vector.broadcast %cst_11 : f32 to vector<128x128xf32>
    %cst_12 = arith.constant 0.000000e+00 : f32
    %43 = vector.broadcast %cst_12 : f32 to vector<128x128xf32>
    %44 = arith.subf %6, %41 : vector<128x128xf32>
    %45 = math.exp %44 : vector<128x128xf32>
    %46 = arith.addf %42, %45 : vector<128x128xf32>
    %47 = vector.extract_strided_slice %2 {offsets = [0, 1024], sizes = [128, 128], strides = [1, 1]} : vector<128x2048xf32> to vector<128x128xf32>
    %48 = arith.mulf %45, %47 : vector<128x128xf32>
    %49 = arith.addf %43, %48 : vector<128x128xf32>
    %50 = arith.subf %10, %41 : vector<128x128xf32>
    %51 = math.exp %50 : vector<128x128xf32>
    %52 = arith.addf %46, %51 : vector<128x128xf32>
    %53 = vector.extract_strided_slice %2 {offsets = [0, 1152], sizes = [128, 128], strides = [1, 1]} : vector<128x2048xf32> to vector<128x128xf32>
    %54 = arith.mulf %51, %53 : vector<128x128xf32>
    %55 = arith.addf %49, %54 : vector<128x128xf32>
    %56 = arith.subf %14, %41 : vector<128x128xf32>
    %57 = math.exp %56 : vector<128x128xf32>
    %58 = arith.addf %52, %57 : vector<128x128xf32>
    %59 = vector.extract_strided_slice %2 {offsets = [0, 1280], sizes = [128, 128], strides = [1, 1]} : vector<128x2048xf32> to vector<128x128xf32>
    %60 = arith.mulf %57, %59 : vector<128x128xf32>
    %61 = arith.addf %55, %60 : vector<128x128xf32>
    %62 = arith.subf %18, %41 : vector<128x128xf32>
    %63 = math.exp %62 : vector<128x128xf32>
    %64 = arith.addf %58, %63 : vector<128x128xf32>
    %65 = vector.extract_strided_slice %2 {offsets = [0, 1408], sizes = [128, 128], strides = [1, 1]} : vector<128x2048xf32> to vector<128x128xf32>
    %66 = arith.mulf %63, %65 : vector<128x128xf32>
    %67 = arith.addf %61, %66 : vector<128x128xf32>
    %68 = arith.subf %22, %41 : vector<128x128xf32>
    %69 = math.exp %68 : vector<128x128xf32>
    %70 = arith.addf %64, %69 : vector<128x128xf32>
    %71 = vector.extract_strided_slice %2 {offsets = [0, 1536], sizes = [128, 128], strides = [1, 1]} : vector<128x2048xf32> to vector<128x128xf32>
    %72 = arith.mulf %69, %71 : vector<128x128xf32>
    %73 = arith.addf %67, %72 : vector<128x128xf32>
    %74 = arith.subf %26, %41 : vector<128x128xf32>
    %75 = math.exp %74 : vector<128x128xf32>
    %76 = arith.addf %70, %75 : vector<128x128xf32>
    %77 = vector.extract_strided_slice %2 {offsets = [0, 1664], sizes = [128, 128], strides = [1, 1]} : vector<128x2048xf32> to vector<128x128xf32>
    %78 = arith.mulf %75, %77 : vector<128x128xf32>
    %79 = arith.addf %73, %78 : vector<128x128xf32>
    %80 = arith.subf %30, %41 : vector<128x128xf32>
    %81 = math.exp %80 : vector<128x128xf32>
    %82 = arith.addf %76, %81 : vector<128x128xf32>
    %83 = vector.extract_strided_slice %2 {offsets = [0, 1792], sizes = [128, 128], strides = [1, 1]} : vector<128x2048xf32> to vector<128x128xf32>
    %84 = arith.mulf %81, %83 : vector<128x128xf32>
    %85 = arith.addf %79, %84 : vector<128x128xf32>
    %86 = arith.subf %34, %41 : vector<128x128xf32>
    %87 = math.exp %86 : vector<128x128xf32>
    %88 = arith.addf %82, %87 : vector<128x128xf32>
    %89 = vector.extract_strided_slice %2 {offsets = [0, 1920], sizes = [128, 128], strides = [1, 1]} : vector<128x2048xf32> to vector<128x128xf32>
    %90 = arith.mulf %87, %89 : vector<128x128xf32>
    %91 = arith.addf %85, %90 : vector<128x128xf32>
    %92 = arith.divf %91, %88 : vector<128x128xf32>
    %c0_13 = arith.constant 0 : index
    %c0_14 = arith.constant 0 : index
    %93 = vector.load %arg3[%c0_13, %c0_14] : memref<136x40xf32, #tpu.memory_space<vmem>>, vector<136x40xf32>
    %94 = vector.extract_strided_slice %93 {offsets = [0, 0], sizes = [128, 40], strides = [1, 1]} : vector<136x40xf32> to vector<128x40xf32>
    %cst_15 = arith.constant dense<0.000000e+00> : vector<128x40xf32>
    %95 = tpu.matmul %92, %94, %cst_15 {dimension_numbers = #tpu.dot_dimension_numbers<[1], [0], [0], [1], [0, 0, 1, 1], [], []>} : vector<128x128xf32>, vector<128x40xf32>, vector<128x40xf32> -> vector<128x40xf32>
    %96 = vector.extract_strided_slice %93 {offsets = [128, 0], sizes = [1, 40], strides = [1, 1]} : vector<136x40xf32> to vector<1x40xf32>
    %97 = vector.broadcast %96 : vector<1x40xf32> to vector<128x40xf32>
    %98 = arith.addf %95, %97 : vector<128x40xf32>
    %99 = arith.negf %98 : vector<128x40xf32>
    %100 = math.exp %99 : vector<128x40xf32>
    %cst_16 = arith.constant 1.000000e+00 : f32
    %101 = vector.broadcast %cst_16 : f32 to vector<128x40xf32>
    %102 = arith.addf %101, %100 : vector<128x40xf32>
    %103 = arith.divf %101, %102 : vector<128x40xf32>
    %c0_17 = arith.constant 0 : index
    %c0_18 = arith.constant 0 : index
    %104 = vector.load %arg4[%c0_17, %c0_18] : memref<128x40xf32, #tpu.memory_space<vmem>>, vector<128x40xf32>
    tpu.vector_store %arg4[%c0_17, %c0_18], %103 {strides = array<i32>} : memref<128x40xf32, #tpu.memory_space<vmem>>, vector<128x40xf32>,
    return
  }
  func.func @transform_0(%arg0: i32) -> (i32, i32) {
    %c0_i32 = arith.constant 0 : i32
    %c0_i32_0 = arith.constant 0 : i32
    return %arg0, %c0_i32 : i32, i32
  }
  func.func @transform_1(%arg0: i32) -> (i32, i32) {
    %c0_i32 = arith.constant 0 : i32
    %c0_i32_0 = arith.constant 0 : i32
    %c0_i32_1 = arith.constant 0 : i32
    return %c0_i32, %c0_i32_0 : i32, i32
  }
  func.func @transform_2(%arg0: i32) -> (i32, i32) {
    %c0_i32 = arith.constant 0 : i32
    %c0_i32_0 = arith.constant 0 : i32
    %c0_i32_1 = arith.constant 0 : i32
    return %c0_i32, %c0_i32_0 : i32, i32
  }
  func.func @transform_3(%arg0: i32) -> (i32, i32) {
    %c0_i32 = arith.constant 0 : i32
    %c0_i32_0 = arith.constant 0 : i32
    return %arg0, %c0_i32 : i32, i32
  }
}

</mosaic_0001>

<bundles_post_ra>
// kernel: tpu_custom_call.1
= control target key start
LH: loop header
LB: loop body
LE: loop exit
PB: predicated region body
PF: predicated region fallthrough
CT: control target
= control target key end

     0   :  { %8 = vsyncpa [#allocation3], 0  ;;  %s3831_s12 = smov 0   ;;  %s6126_s0 = inlined_call_operand.vmem [shape: f32[256,40], index: 0, kind: input, shape index: {}]   ;;  %s6127_s1 = inlined_call_operand.hbm [shape: f32[40,2048], index: 1, kind: input, shape index: {}]   ;;  %s6128_s2 = inlined_call_operand.vmem [shape: f32[136,40], index: 2, kind: input, shape index: {}]   ;;  %s6129_s3 = inlined_call_operand.vmem [shape: f32[256,40], index: 3, kind: output, shape index: {}]  }
   0x1 LB: > { %s3136_s13 = sadd.s32 4294967295, %s3805_s12   ;;  %p3138_p0 = scmp.ge.s32.totalorder %s3805_s12, 1  ;;  %s3805_s12 = sphi %s3831_s12, %s14_s12  }
   0x2   : > { %p113_p1 = scmp.lt.s32.totalorder %s3805_s12, 3  ;;  %s3807_s14 = smov [#allocation2]  }
   0x3   : > { %s125_s15 = sshll.u32 %s3807_s14, 4  ;;  %p3843_p3 = scmp.eq.s32.totalorder %s3136_s13, 0  ;;  %s126_s15 = int_to_ptr.vmem [resolvable:$true] %s125_s15 }
   0x4   : > { %p3839_p2 = pnand %p3138_p0, %p113_p1  ;;  %s3780_s18 = scalar_lea.vmem %s126_s15, 10240 }
   0x5   : > { %p3781_p7 = scmp.ne.s32.totalorder %s126_s15, %s3780_s18  ;;  %p3788_p10 = scmp.lt.s32.totalorder %s126_s15, %s126_s15 }
   0x6   : > { %p3395_p4 = pneg %p3839_p2  ;;  %p3789_p11 = scmp.lt.s32.totalorder %s3780_s18, %s3780_s18 }
   0x8   : > { %p3396_p5 = pnand %p3843_p3, %p3395_p4  ;;  %p3790_p12 = por %p3789_p11, %p3788_p10 }
   0xa   : > { %p3771_p6 = pneg %p3396_p5 }
   0xc   : > { %p3783_p8 = pnand %p3781_p7, %p3771_p6 }
   0xe   : > { %p3784_p9 = pneg %p3783_p8 }
  0x10   : > { %p3791_p13 = pnand %p3790_p12, %p3784_p9 }
  0x12   : > { %3794 = shalt.err (!%p3791_p13)
}
  0x13   : > { %s3808_s19 = smov 2048   ;;  %s3809_s20 = smov 128  }
  0x14   : > { %3398 = dma.hbm_to_vmem [thread:$0]  (!%p3396_p5), %s6127_s1, 10240, %s126_s15, [#allocation3], %s3808_s19, %s3808_s19, %s3809_s20  }
  0x15   : > { %153 = sbr.rel (%p3839_p2) target bundleno = 802 (0x322), region = 32 }
  0x1a   : > { %3800 = dma.done.wait (%p3843_p3), [#allocation3], 10240  }
  0x1b   : > { %3802 = vsyncadd (%p3843_p3), [#allocation3], 4294957056  ;;  %s3143_s23 = sshll.u32 %s3136_s13, 4  ;;  %v6148_v0 = vmov 0.0   ;;  %v270_v1 = vld [vmem:[#allocation2 + $0x208] sm:$0xff]  ;;  %v269_v2 = vld [vmem:[#allocation2 + $0x200] sm:$0xff] }
  0x1c   : > { %398 = vmatprep.mubr.f32.mxu0 %v6148_v0  ;;  %470 = vmatprep.mubr.f32.mxu1 %v6148_v0  ;;  %p178_p0 = scmp.lt.s32.totalorder %s3143_s23, 31  ;;  %v254_v3 = vld [vmem:[#allocation2 + $0x188] sm:$0xff]  ;;  %v253_v4 = vld [vmem:[#allocation2 + $0x180] sm:$0xff]  ;;  %vm285_vm0 = vcmask 326656   ;;  %v272_v13 = vld [vmem:[#allocation2 + $0x218] sm:$0xff] }
  0x1d   : > { %356 = vmatprep.subr.mxu0 %v270_v1  ;;  %3381 = vmatprep.subr.mxu1 %v270_v1  ;;  %v238_v5 = vld [vmem:[#allocation2 + $0x108] sm:$0xff]  ;;  %v237_v6 = vld [vmem:[#allocation2 + $0x100] sm:$0xff]  ;;  %v271_v14 = vld [vmem:[#allocation2 + $0x210] sm:$0xff] }
  0x1e   : > { %s6752_s23 = smov (!%p178_p0, %s3143_s23), 31  ;;  %357 = vmatpush1.msra.mxu0 %v269_v2  ;;  %3386 = vmatpush1.msra.mxu1 %v269_v2  ;;  %v222_v7 = vld [vmem:[#allocation2 + $0x88] sm:$0xff]  ;;  %v221_v8 = vld [vmem:[#allocation2 + $0x80] sm:$0xff]  ;;  %v256_v15 = vld [vmem:[#allocation2 + $0x198] sm:$0xff] }
  0x1f   : > { %s3144_s24 = sshll.u32 %s6752_s23, 3  ;;  %358 = vmatprep.subr.mxu0 %v254_v3  ;;  %3382 = vmatprep.subr.mxu1 %v254_v3  ;;  %v206_v9 = vld [vmem:[#allocation2 + $0x8] sm:$0xff]  ;;  %v205_v10 = vld [vmem:[#allocation2] sm:$0xff]  ;;  %v255_v19 = vld [vmem:[#allocation2 + $0x190] sm:$0xff] }
  0x20   : > { %359 = vmatpush1.msra.mxu0 %v253_v4  ;;  %3387 = vmatpush1.msra.mxu1 %v253_v4  ;;  %s3870_s27 = scalar_lea.vmem %s6126_s0, %s3144_s24  ;;  %v274_v16 = vld [vmem:[#allocation2 + $0x228] sm:$0xff]  ;;  %v240_v20 = vld [vmem:[#allocation2 + $0x118] sm:$0xff]  ;;  %v239_v21 = vld [vmem:[#allocation2 + $0x110] sm:$0xff]  ;;  %s6079_s14 = scalar_lea.vmem %s6129_s3, %s3144_s24 }
  0x21   : > { %360 = vmatprep.subr.mxu0 %v238_v5  ;;  %3383 = vmatprep.subr.mxu1 %v238_v5  ;;  %v3873_v11 = vld [vmem:[%s3870_s27] sm:$0xff]  ;;  %v3884_v17 = vld [vmem:[%s3870_s27 + $0x8] sm:$0xff]  ;;  %v3896_v23 = vld [vmem:[%s3870_s27 + $0x10] sm:$0xff] }
  0x22   : > { %361 = vmatpush1.msra.mxu0 %v237_v6  ;;  %3388 = vmatpush1.msra.mxu1 %v237_v6  ;;  %v3876_v12 = vld [vmem:[%s3870_s27 + $0x60] sm:$0xff]  ;;  %v3887_v18 = vld [vmem:[%s3870_s27 + $0x68] sm:$0xff]  ;;  %v3899_v24 = vld [vmem:[%s3870_s27 + $0x70] sm:$0xff] }
  0x23   : > { %362 = vmatprep.subr.mxu0 %v222_v7  ;;  %3384 = vmatprep.subr.mxu1 %v222_v7  ;;  %v273_v22 = vld [vmem:[#allocation2 + $0x220] sm:$0xff]  ;;  %v224_v25 = vld [vmem:[#allocation2 + $0x98] sm:$0xff]  ;;  %v223_v26 = vld [vmem:[#allocation2 + $0x90] sm:$0xff] }
  0x24   : > { %363 = vmatpush1.msra.mxu0 %v221_v8  ;;  %3389 = vmatpush1.msra.mxu1 %v221_v8  ;;  %v208_v27 = vld [vmem:[#allocation2 + $0x18] sm:$0xff]  ;;  %v258_v28 = vld [vmem:[#allocation2 + $0x1a8] sm:$0xff]  ;;  %v207_v31 = vld [vmem:[#allocation2 + $0x10] sm:$0xff] }
  0x25   : > { %364 = vmatprep.subr.mxu0 %v206_v9  ;;  %3385 = vmatprep.subr.mxu1 %v206_v9  ;;  %v3908_v29 = vld [vmem:[%s3870_s27 + $0x18] sm:$0xff]  ;;  %v257_v33 = vld [vmem:[#allocation2 + $0x1a0] sm:$0xff]  ;;  %v275_v35 = vld [vmem:[#allocation2 + $0x230] sm:$0xff] }
  0x26   : > { %365 = vmatpush1.msra.mxu0 %v205_v10  ;;  %3390 = vmatpush1.msra.mxu1 %v205_v10  ;;  %v3911_v30 = vld [vmem:[%s3870_s27 + $0x78] sm:$0xff]  ;;  %v3920_v34 = vld [vmem:[%s3870_s27 + $0x20] sm:$0xff]  ;;  %v259_v37 = vld [vmem:[#allocation2 + $0x1b0] sm:$0xff] }
  0x27   : > { %3147 = vmatmul.mubr.msk.f32.vlgmr.msra.gmra.mxu0 %vm285_vm0, %v3873_v11  ;;  %3159 = vmatmul.mubr.msk.f32.vlgmr.msra.gmra.mxu1 %vm285_vm0, %v3876_v12  ;;  %v276_v32 = vld [vmem:[#allocation2 + $0x238] sm:$0xff]  ;;  %v242_v38 = vld [vmem:[#allocation2 + $0x128] sm:$0xff]  ;;  %v241_v41 = vld [vmem:[#allocation2 + $0x120] sm:$0xff] }
  0x28   : > { %517 = vmatprep.subr.mxu1 %v272_v13  ;;  %404 = vmatprep.mubr.f32.mxu0 %v6148_v0  ;;  %v260_v36 = vld [vmem:[#allocation2 + $0x1b8] sm:$0xff]  ;;  %v3929_v39 = vld [vmem:[%s3870_s27 + $0x28] sm:$0xff]  ;;  %v243_v42 = vld [vmem:[#allocation2 + $0x130] sm:$0xff] }
  0x29   : > { %518 = vmatpush1.msra.mxu1 %v271_v14  ;;  %476 = vmatprep.mubr.f32.mxu1 %v6148_v0  ;;  %v244_v40 = vld [vmem:[#allocation2 + $0x138] sm:$0xff]  ;;  %v226_v43 = vld [vmem:[#allocation2 + $0xa8] sm:$0xff]  ;;  %v3939_v44 = vld [vmem:[%s3870_s27 + $0x30] sm:$0xff] }
  0x2a   : > { %519 = vmatprep.subr.mxu1 %v256_v15  ;;  %678 = vmatprep.subr.mxu0 %v274_v16  ;;  %v225_v45 = vld [vmem:[#allocation2 + $0xa0] sm:$0xff]  ;;  %v228_v46 = vld [vmem:[#allocation2 + $0xb8] sm:$0xff]  ;;  %v210_v47 = vld [vmem:[#allocation2 + $0x28] sm:$0xff] }
  0x2b   : > { %3148 = vmatmul.mubr.msk.f32.gmra.mxu0 %vm285_vm0, %v3884_v17  ;;  %3160 = vmatmul.mubr.msk.f32.gmra.mxu1 %vm285_vm0, %v3887_v18  ;;  %v227_v48 = vld [vmem:[#allocation2 + $0xb0] sm:$0xff]  ;;  %v3948_v49 = vld [vmem:[%s3870_s27 + $0x38] sm:$0xff]  ;;  %v209_v50 = vld [vmem:[#allocation2 + $0x20] sm:$0xff] }
  0x2c   : > { %520 = vmatpush1.msra.mxu1 %v255_v19  ;;  %410 = vmatprep.mubr.f32.mxu0 %v6148_v0  ;;  %v212_v51 = vld [vmem:[#allocation2 + $0x38] sm:$0xff]  ;;  %v211_v52 = vld [vmem:[#allocation2 + $0x30] sm:$0xff]  ;;  %v278_v53 = vld [vmem:[#allocation2 + $0x248] sm:$0xff] }
  0x2d   : > { %482 = vmatprep.mubr.f32.mxu1 %v6148_v0  ;;  %521 = vmatprep.subr.mxu1 %v240_v20  ;;  %v3957_v54 = vld [vmem:[%s3870_s27 + $0x40] sm:$0xff]  ;;  %v280_v55 = vld [vmem:[#allocation2 + $0x258] sm:$0xff]  ;;  %v3966_v56 = vld [vmem:[%s3870_s27 + $0x48] sm:$0xff] }
  0x2e   : > { %522 = vmatpush1.msra.mxu1 %v239_v21  ;;  %679 = vmatpush1.msra.mxu0 %v273_v22  ;;  %v3975_v57 = vld [vmem:[%s3870_s27 + $0x50] sm:$0xff]  ;;  %v3984_v58 = vld [vmem:[%s3870_s27 + $0x58] sm:$0xff]  ;;  %v277_v59 = vld [vmem:[#allocation2 + $0x240] sm:$0xff] }
  0x2f   : > { %3149 = vmatmul.mubr.msk.f32.gmra.mxu0 %vm285_vm0, %v3896_v23  ;;  %3161 = vmatmul.mubr.msk.f32.gmra.mxu1 %vm285_vm0, %v3899_v24  ;;  %v262_v60 = vld [vmem:[#allocation2 + $0x1c8] sm:$0xff]  ;;  %v261_v61 = vld [vmem:[#allocation2 + $0x1c0] sm:$0xff]  ;;  %v279_v6 = vld [vmem:[#allocation2 + $0x250] sm:$0xff] }
  0x30   : > { %523 = vmatprep.subr.mxu1 %v224_v25  ;;  %416 = vmatprep.mubr.f32.mxu0 %v6148_v0  ;;  %v246_v62 = vld [vmem:[#allocation2 + $0x148] sm:$0xff]  ;;  %v245_v63 = vld [vmem:[#allocation2 + $0x140] sm:$0xff]  ;;  %v264_v7 = vld [vmem:[#allocation2 + $0x1d8] sm:$0xff] }
  0x31   : > { %488 = vmatprep.mubr.f32.mxu1 %v6148_v0  ;;  %524 = vmatpush1.msra.mxu1 %v223_v26  ;;  %v230_v1 = vld [vmem:[#allocation2 + $0xc8] sm:$0xff]  ;;  %v229_v2 = vld [vmem:[#allocation2 + $0xc0] sm:$0xff]  ;;  %v263_v8 = vld [vmem:[#allocation2 + $0x1d0] sm:$0xff] }
  0x32   : > { %525 = vmatprep.subr.mxu1 %v208_v27  ;;  %680 = vmatprep.subr.mxu0 %v258_v28  ;;  %v214_v3 = vld [vmem:[#allocation2 + $0x48] sm:$0xff]  ;;  %v213_v4 = vld [vmem:[#allocation2 + $0x40] sm:$0xff]  ;;  %v248_v9 = vld [vmem:[#allocation2 + $0x158] sm:$0xff] }
  0x33   : > { %3150 = vmatmul.mubr.msk.f32.gmra.mxu0 %vm285_vm0, %v3908_v29  ;;  %3162 = vmatmul.mubr.msk.f32.gmra.mxu1 %vm285_vm0, %v3911_v30  ;;  %v282_v5 = vld [vmem:[#allocation2 + $0x268] sm:$0xff]  ;;  %v247_v10 = vld [vmem:[#allocation2 + $0x150] sm:$0xff]  ;;  %v232_v13 = vld [vmem:[#allocation2 + $0xd8] sm:$0xff] }
  0x34   : > { %526 = vmatpush1.msra.mxu1 %v207_v31  ;;  %422 = vmatprep.mubr.f32.mxu0 %v6148_v0  ;;  %v231_v14 = vld [vmem:[#allocation2 + $0xd0] sm:$0xff]  ;;  %v216_v15 = vld [vmem:[#allocation2 + $0x58] sm:$0xff]  ;;  %v281_v20 = vld [vmem:[#allocation2 + $0x260] sm:$0xff] }
  0x35   : > { %559 = vmatprep.mubr.f32.mxu1 %v6148_v0  ;;  %839 = vmatprep.subr.mxu1 %v276_v32  ;;  %v215_v16 = vld [vmem:[#allocation2 + $0x50] sm:$0xff]  ;;  %v284_v19 = vld [vmem:[#allocation2 + $0x278] sm:$0xff]  ;;  %v266_v21 = vld [vmem:[#allocation2 + $0x1e8] sm:$0xff] }
  0x36   : > { %681 = vmatpush1.msra.mxu0 %v257_v33  ;;  %v265_v22 = vld [vmem:[#allocation2 + $0x1e0] sm:$0xff]  ;;  %v250_v25 = vld [vmem:[#allocation2 + $0x168] sm:$0xff]  ;;  %v283_v33 = vld [vmem:[#allocation2 + $0x270] sm:$0xff] }
  0x37   : > { %3151 = vmatmul.mubr.msk.f32.gmra.mxu0 %vm285_vm0, %v3920_v34  ;;  %3163 = vmatmul.mubr.msk.f32.vlgmr.msra.gmra.mxu1 %vm285_vm0, %v3873_v11  ;;  %v249_v26 = vld [vmem:[#allocation2 + $0x160] sm:$0xff]  ;;  %v234_v27 = vld [vmem:[#allocation2 + $0xe8] sm:$0xff] }
  0x38   : > { %840 = vmatpush1.msra.mxu1 %v275_v35  ;;  %428 = vmatprep.mubr.f32.mxu0 %v6148_v0  ;;  %v233_v28 = vld [vmem:[#allocation2 + $0xe0] sm:$0xff]  ;;  %v218_v31 = vld [vmem:[#allocation2 + $0x68] sm:$0xff]  ;;  %v268_v35 = vld [vmem:[#allocation2 + $0x1f8] sm:$0xff] }
  0x39   : > { %565 = vmatprep.mubr.f32.mxu1 %v6148_v0  ;;  %841 = vmatprep.subr.mxu1 %v260_v36  ;;  %v217_v32 = vld [vmem:[#allocation2 + $0x60] sm:$0xff]  ;;  %v267_v36 = vld [vmem:[#allocation2 + $0x1f0] sm:$0xff] }
  0x3a   : > { %842 = vmatpush1.msra.mxu1 %v259_v37  ;;  %682 = vmatprep.subr.mxu0 %v242_v38  ;;  %v252_v37 = vld [vmem:[#allocation2 + $0x178] sm:$0xff]  ;;  %v251_v38 = vld [vmem:[#allocation2 + $0x170] sm:$0xff] }
  0x3b   : > { %3152 = vmatmul.mubr.msk.f32.gmra.mxu0 %vm285_vm0, %v3929_v39  ;;  %3164 = vmatmul.mubr.msk.f32.gmra.mxu1 %vm285_vm0, %v3884_v17 }
  0x3c   : > { %434 = vmatprep.mubr.f32.mxu0 %v6148_v0  ;;  %571 = vmatprep.mubr.f32.mxu1 %v6148_v0 }
  0x3d   : > { %843 = vmatprep.subr.mxu1 %v244_v40  ;;  %683 = vmatpush1.msra.mxu0 %v241_v41  ;;  %v236_v40 = vld [vmem:[#allocation2 + $0xf8] sm:$0xff]  ;;  %v235_v41 = vld [vmem:[#allocation2 + $0xf0] sm:$0xff] }
  0x3e   : > { %844 = vmatpush1.msra.mxu1 %v243_v42  ;;  %684 = vmatprep.subr.mxu0 %v226_v43  ;;  %v220_v42 = vld [vmem:[#allocation2 + $0x78] sm:$0xff]  ;;  %v219_v43 = vld [vmem:[#allocation2 + $0x70] sm:$0xff] }
  0x3f   : > { %3153 = vmatmul.mubr.msk.f32.gmra.mxu0 %vm285_vm0, %v3939_v44  ;;  %3165 = vmatmul.mubr.msk.f32.gmra.mxu1 %vm285_vm0, %v3896_v23 }
  0x40   : > { %440 = vmatprep.mubr.f32.mxu0 %v6148_v0  ;;  %577 = vmatprep.mubr.f32.mxu1 %v6148_v0 }
  0x41   : > { %685 = vmatpush1.msra.mxu0 %v225_v45  ;;  %845 = vmatprep.subr.mxu1 %v228_v46 }
  0x42   : > { %686 = vmatprep.subr.mxu0 %v210_v47  ;;  %846 = vmatpush1.msra.mxu1 %v227_v48 }
  0x43   : > { %3154 = vmatmul.mubr.msk.f32.gmra.mxu0 %vm285_vm0, %v3948_v49  ;;  %3166 = vmatmul.mubr.msk.f32.gmra.mxu1 %vm285_vm0, %v3908_v29 }
  0x44   : > { %446 = vmatprep.mubr.f32.mxu0 %v6148_v0  ;;  %583 = vmatprep.mubr.f32.mxu1 %v6148_v0 }
  0x45   : > { %687 = vmatpush1.msra.mxu0 %v209_v50  ;;  %847 = vmatprep.subr.mxu1 %v212_v51 }
  0x46   : > { %848 = vmatpush1.msra.mxu1 %v211_v52  ;;  %1000 = vmatprep.subr.mxu0 %v278_v53 }
  0x47   : > { %3155 = vmatmul.mubr.msk.f32.gmra.mxu0 %vm285_vm0, %v3957_v54  ;;  %3167 = vmatmul.mubr.msk.f32.gmra.mxu1 %vm285_vm0, %v3920_v34 }
  0x48   : > { %452 = vmatprep.mubr.f32.mxu0 %v6148_v0  ;;  %589 = vmatprep.mubr.f32.mxu1 %v6148_v0 }
  0x49   : > { %1161 = vmatprep.subr.mxu1 %v280_v55 }
  0x4b   : > { %3156 = vmatmul.mubr.msk.f32.gmra.mxu0 %vm285_vm0, %v3966_v56  ;;  %3168 = vmatmul.mubr.msk.f32.gmra.mxu1 %vm285_vm0, %v3929_v39 }
  0x4c   : > { %458 = vmatprep.mubr.f32.mxu0 %v6148_v0  ;;  %595 = vmatprep.mubr.f32.mxu1 %v6148_v0 }
  0x4f   : > { %3157 = vmatmul.mubr.msk.f32.gmra.mxu0 %vm285_vm0, %v3975_v57  ;;  %3169 = vmatmul.mubr.msk.f32.gmra.mxu1 %vm285_vm0, %v3939_v44 }
  0x50   : > { %464 = vmatprep.mubr.f32.mxu0 %v6148_v0  ;;  %601 = vmatprep.mubr.f32.mxu1 %v6148_v0 }
  0x53   : > { %3158 = vmatmul.mubr.msk.f32.gmra.mxu0 %vm285_vm0, %v3984_v58  ;;  %3170 = vmatmul.mubr.msk.f32.gmra.mxu1 %vm285_vm0, %v3948_v49 }
  0x54   : > { %607 = vmatprep.mubr.f32.mxu1 %v6148_v0  ;;  %720 = vmatprep.mubr.f32.mxu0 %v6148_v0 }
  0x57   : > { %3171 = vmatmul.mubr.msk.f32.gmra.mxu1 %vm285_vm0, %v3957_v54  ;;  %3179 = vmatmul.mubr.msk.f32.vlgmr.msra.gmra.mxu0 %vm285_vm0, %v3873_v11 }
  0x58   : > { %613 = vmatprep.mubr.f32.mxu1 %v6148_v0  ;;  %726 = vmatprep.mubr.f32.mxu0 %v6148_v0 }
  0x59   : > { %1001 = vmatpush1.msra.mxu0 %v277_v59 }
  0x5a   : > { %1002 = vmatprep.subr.mxu0 %v262_v60 }
  0x5b   : > { %3172 = vmatmul.mubr.msk.f32.gmra.mxu1 %vm285_vm0, %v3966_v56  ;;  %3180 = vmatmul.mubr.msk.f32.gmra.mxu0 %vm285_vm0, %v3884_v17 }
  0x5c   : > { %619 = vmatprep.mubr.f32.mxu1 %v6148_v0  ;;  %732 = vmatprep.mubr.f32.mxu0 %v6148_v0 }
  0x5d   : > { %1003 = vmatpush1.msra.mxu0 %v261_v61 }
  0x5e   : > { %1004 = vmatprep.subr.mxu0 %v246_v62 }
  0x5f   : > { %3173 = vmatmul.mubr.msk.f32.gmra.mxu1 %vm285_vm0, %v3975_v57  ;;  %3181 = vmatmul.mubr.msk.f32.gmra.mxu0 %vm285_vm0, %v3896_v23 }
  0x60   : > { %625 = vmatprep.mubr.f32.mxu1 %v6148_v0  ;;  %738 = vmatprep.mubr.f32.mxu0 %v6148_v0 }
  0x61   : > { %1005 = vmatpush1.msra.mxu0 %v245_v63 }
  0x62   : > { %1006 = vmatprep.subr.mxu0 %v230_v1 }
  0x63   : > { %3174 = vmatmul.mubr.msk.f32.gmra.mxu1 %vm285_vm0, %v3984_v58  ;;  %3182 = vmatmul.mubr.msk.f32.gmra.mxu0 %vm285_vm0, %v3908_v29 }
  0x64   : > { %631 = vmatprep.mubr.f32.mxu1 %v6148_v0  ;;  %744 = vmatprep.mubr.f32.mxu0 %v6148_v0 }
  0x65   : > { %1007 = vmatpush1.msra.mxu0 %v229_v2 }
  0x66   : > { %1008 = vmatprep.subr.mxu0 %v214_v3 }
  0x67   : > { %3175 = vmatmul.mubr.msk.f32.gmra.mxu1 %vm285_vm0, %v3876_v12  ;;  %3183 = vmatmul.mubr.msk.f32.gmra.mxu0 %vm285_vm0, %v3920_v34 }
  0x68   : > { %637 = vmatprep.mubr.f32.mxu1 %v6148_v0  ;;  %750 = vmatprep.mubr.f32.mxu0 %v6148_v0 }
  0x69   : > { %1009 = vmatpush1.msra.mxu0 %v213_v4 }
  0x6a   : > { %1322 = vmatprep.subr.mxu0 %v282_v5 }
  0x6b   : > { %3176 = vmatmul.mubr.msk.f32.gmra.mxu1 %vm285_vm0, %v3887_v18  ;;  %3184 = vmatmul.mubr.msk.f32.gmra.mxu0 %vm285_vm0, %v3929_v39 }
  0x6c   : > { %643 = vmatprep.mubr.f32.mxu1 %v6148_v0  ;;  %756 = vmatprep.mubr.f32.mxu0 %v6148_v0 }
  0x6f   : > { %3177 = vmatmul.mubr.msk.f32.gmra.mxu1 %vm285_vm0, %v3899_v24  ;;  %3185 = vmatmul.mubr.msk.f32.gmra.mxu0 %vm285_vm0, %v3939_v44 }
  0x70   : > { %649 = vmatprep.mubr.f32.mxu1 %v6148_v0  ;;  %762 = vmatprep.mubr.f32.mxu0 %v6148_v0 }
  0x73   : > { %3178 = vmatmul.mubr.msk.f32.gmra.mxu1 %vm285_vm0, %v3911_v30  ;;  %3186 = vmatmul.mubr.msk.f32.gmra.mxu0 %vm285_vm0, %v3948_v49 }
  0x74   : > { %768 = vmatprep.mubr.f32.mxu0 %v6148_v0  ;;  %881 = vmatprep.mubr.f32.mxu1 %v6148_v0 }
  0x77   : > { %3187 = vmatmul.mubr.msk.f32.gmra.mxu0 %vm285_vm0, %v3957_v54  ;;  %3195 = vmatmul.mubr.msk.f32.vlgmr.msra.gmra.mxu1 %vm285_vm0, %v3873_v11 }
  0x78   : > { %1162 = vmatpush1.msra.mxu1 %v279_v6  ;;  %774 = vmatprep.mubr.f32.mxu0 %v6148_v0 }
  0x79   : > { %887 = vmatprep.mubr.f32.mxu1 %v6148_v0  ;;  %1163 = vmatprep.subr.mxu1 %v264_v7 }
  0x7a   : > { %1164 = vmatpush1.msra.mxu1 %v263_v8 }
  0x7b   : > { %3188 = vmatmul.mubr.msk.f32.gmra.mxu0 %vm285_vm0, %v3966_v56  ;;  %3196 = vmatmul.mubr.msk.f32.gmra.mxu1 %vm285_vm0, %v3884_v17 }
  0x7c   : > { %780 = vmatprep.mubr.f32.mxu0 %v6148_v0  ;;  %893 = vmatprep.mubr.f32.mxu1 %v6148_v0 }
  0x7d   : > { %1165 = vmatprep.subr.mxu1 %v248_v9 }
  0x7e   : > { %1166 = vmatpush1.msra.mxu1 %v247_v10 }
  0x7f   : > { %3189 = vmatmul.mubr.msk.f32.gmra.mxu0 %vm285_vm0, %v3975_v57  ;;  %3197 = vmatmul.mubr.msk.f32.gmra.mxu1 %vm285_vm0, %v3896_v23 }
  0x80   : > { %786 = vmatprep.mubr.f32.mxu0 %v6148_v0  ;;  %899 = vmatprep.mubr.f32.mxu1 %v6148_v0 }
  0x81   : > { %1167 = vmatprep.subr.mxu1 %v232_v13 }
  0x82   : > { %1168 = vmatpush1.msra.mxu1 %v231_v14 }
  0x83   : > { %3190 = vmatmul.mubr.msk.f32.gmra.mxu0 %vm285_vm0, %v3984_v58  ;;  %3198 = vmatmul.mubr.msk.f32.gmra.mxu1 %vm285_vm0, %v3908_v29 }
  0x84   : > { %792 = vmatprep.mubr.f32.mxu0 %v6148_v0  ;;  %905 = vmatprep.mubr.f32.mxu1 %v6148_v0 }
  0x85   : > { %1169 = vmatprep.subr.mxu1 %v216_v15 }
  0x86   : > { %1170 = vmatpush1.msra.mxu1 %v215_v16 }
  0x87   : > { %3191 = vmatmul.mubr.msk.f32.gmra.mxu0 %vm285_vm0, %v3876_v12  ;;  %3199 = vmatmul.mubr.msk.f32.gmra.mxu1 %vm285_vm0, %v3920_v34 }
  0x88   : > { %798 = vmatprep.mubr.f32.mxu0 %v6148_v0  ;;  %911 = vmatprep.mubr.f32.mxu1 %v6148_v0 }
  0x89   : > { %1483 = vmatprep.subr.mxu1 %v284_v19 }
  0x8b   : > { %3192 = vmatmul.mubr.msk.f32.gmra.mxu0 %vm285_vm0, %v3887_v18  ;;  %3200 = vmatmul.mubr.msk.f32.gmra.mxu1 %vm285_vm0, %v3929_v39 }
  0x8c   : > { %804 = vmatprep.mubr.f32.mxu0 %v6148_v0  ;;  %917 = vmatprep.mubr.f32.mxu1 %v6148_v0 }
  0x8f   : > { %3193 = vmatmul.mubr.msk.f32.gmra.mxu0 %vm285_vm0, %v3899_v24  ;;  %3201 = vmatmul.mubr.msk.f32.gmra.mxu1 %vm285_vm0, %v3939_v44 }
  0x90   : > { %810 = vmatprep.mubr.f32.mxu0 %v6148_v0  ;;  %923 = vmatprep.mubr.f32.mxu1 %v6148_v0 }
  0x93   : > { %3194 = vmatmul.mubr.msk.f32.gmra.mxu0 %vm285_vm0, %v3911_v30  ;;  %3202 = vmatmul.mubr.msk.f32.gmra.mxu1 %vm285_vm0, %v3948_v49 }
  0x94   : > { %929 = vmatprep.mubr.f32.mxu1 %v6148_v0  ;;  %1042 = vmatprep.mubr.f32.mxu0 %v6148_v0 }
  0x97   : > { %3203 = vmatmul.mubr.msk.f32.gmra.mxu1 %vm285_vm0, %v3957_v54  ;;  %3211 = vmatmul.mubr.msk.f32.vlgmr.msra.gmra.mxu0 %vm285_vm0, %v3873_v11 }
  0x98   : > { %935 = vmatprep.mubr.f32.mxu1 %v6148_v0  ;;  %1048 = vmatprep.mubr.f32.mxu0 %v6148_v0 }
  0x99   : > { %1323 = vmatpush1.msra.mxu0 %v281_v20 }
  0x9a   : > { %1324 = vmatprep.subr.mxu0 %v266_v21 }
  0x9b   : > { %3204 = vmatmul.mubr.msk.f32.gmra.mxu1 %vm285_vm0, %v3966_v56  ;;  %3212 = vmatmul.mubr.msk.f32.gmra.mxu0 %vm285_vm0, %v3884_v17 }
  0x9c   : > { %941 = vmatprep.mubr.f32.mxu1 %v6148_v0  ;;  %1054 = vmatprep.mubr.f32.mxu0 %v6148_v0 }
  0x9d   : > { %1325 = vmatpush1.msra.mxu0 %v265_v22 }
  0x9e   : > { %1326 = vmatprep.subr.mxu0 %v250_v25 }
  0x9f   : > { %3205 = vmatmul.mubr.msk.f32.gmra.mxu1 %vm285_vm0, %v3975_v57  ;;  %3213 = vmatmul.mubr.msk.f32.gmra.mxu0 %vm285_vm0, %v3896_v23 }
  0xa0   : > { %947 = vmatprep.mubr.f32.mxu1 %v6148_v0  ;;  %1060 = vmatprep.mubr.f32.mxu0 %v6148_v0 }
  0xa1   : > { %1327 = vmatpush1.msra.mxu0 %v249_v26 }
  0xa2   : > { %1328 = vmatprep.subr.mxu0 %v234_v27 }
  0xa3   : > { %3206 = vmatmul.mubr.msk.f32.gmra.mxu1 %vm285_vm0, %v3984_v58  ;;  %3214 = vmatmul.mubr.msk.f32.gmra.mxu0 %vm285_vm0, %v3908_v29 }
  0xa4   : > { %953 = vmatprep.mubr.f32.mxu1 %v6148_v0  ;;  %1066 = vmatprep.mubr.f32.mxu0 %v6148_v0 }
  0xa5   : > { %1329 = vmatpush1.msra.mxu0 %v233_v28 }
  0xa6   : > { %1330 = vmatprep.subr.mxu0 %v218_v31 }
  0xa7   : > { %3207 = vmatmul.mubr.msk.f32.gmra.mxu1 %vm285_vm0, %v3876_v12  ;;  %3215 = vmatmul.mubr.msk.f32.gmra.mxu0 %vm285_vm0, %v3920_v34 }
  0xa8   : > { %959 = vmatprep.mubr.f32.mxu1 %v6148_v0  ;;  %1072 = vmatprep.mubr.f32.mxu0 %v6148_v0 }
  0xa9   : > { %1331 = vmatpush1.msra.mxu0 %v217_v32 }
  0xab   : > { %3208 = vmatmul.mubr.msk.f32.gmra.mxu1 %vm285_vm0, %v3887_v18  ;;  %3216 = vmatmul.mubr.msk.f32.gmra.mxu0 %vm285_vm0, %v3929_v39 }
  0xac   : > { %965 = vmatprep.mubr.f32.mxu1 %v6148_v0  ;;  %1078 = vmatprep.mubr.f32.mxu0 %v6148_v0 }
  0xaf   : > { %3209 = vmatmul.mubr.msk.f32.gmra.mxu1 %vm285_vm0, %v3899_v24  ;;  %3217 = vmatmul.mubr.msk.f32.gmra.mxu0 %vm285_vm0, %v3939_v44 }
  0xb0   : > { %971 = vmatprep.mubr.f32.mxu1 %v6148_v0  ;;  %1084 = vmatprep.mubr.f32.mxu0 %v6148_v0 }
  0xb3   : > { %3210 = vmatmul.mubr.msk.f32.gmra.mxu1 %vm285_vm0, %v3911_v30  ;;  %3218 = vmatmul.mubr.msk.f32.gmra.mxu0 %vm285_vm0, %v3948_v49 }
  0xb4   : > { %1090 = vmatprep.mubr.f32.mxu0 %v6148_v0  ;;  %1203 = vmatprep.mubr.f32.mxu1 %v6148_v0 }
  0xb7   : > { %3219 = vmatmul.mubr.msk.f32.gmra.mxu0 %vm285_vm0, %v3957_v54  ;;  %3227 = vmatmul.mubr.msk.f32.vlgmr.msra.gmra.mxu1 %vm285_vm0, %v3873_v11 }
  0xb8   : > { %1484 = vmatpush1.msra.mxu1 %v283_v33  ;;  %1096 = vmatprep.mubr.f32.mxu0 %v6148_v0 }
  0xb9   : > { %1209 = vmatprep.mubr.f32.mxu1 %v6148_v0  ;;  %1485 = vmatprep.subr.mxu1 %v268_v35 }
  0xba   : > { %1486 = vmatpush1.msra.mxu1 %v267_v36 }
  0xbb   : > { %3220 = vmatmul.mubr.msk.f32.gmra.mxu0 %vm285_vm0, %v3966_v56  ;;  %3228 = vmatmul.mubr.msk.f32.gmra.mxu1 %vm285_vm0, %v3884_v17 }
  0xbc   : > { %1102 = vmatprep.mubr.f32.mxu0 %v6148_v0  ;;  %1215 = vmatprep.mubr.f32.mxu1 %v6148_v0 }
  0xbd   : > { %1487 = vmatprep.subr.mxu1 %v252_v37 }
  0xbe   : > { %1488 = vmatpush1.msra.mxu1 %v251_v38 }
  0xbf   : > { %3221 = vmatmul.mubr.msk.f32.gmra.mxu0 %vm285_vm0, %v3975_v57  ;;  %3229 = vmatmul.mubr.msk.f32.gmra.mxu1 %vm285_vm0, %v3896_v23 }
  0xc0   : > { %1108 = vmatprep.mubr.f32.mxu0 %v6148_v0  ;;  %1221 = vmatprep.mubr.f32.mxu1 %v6148_v0 }
  0xc1   : > { %1489 = vmatprep.subr.mxu1 %v236_v40 }
  0xc2   : > { %1490 = vmatpush1.msra.mxu1 %v235_v41 }
  0xc3   : > { %3222 = vmatmul.mubr.msk.f32.gmra.mxu0 %vm285_vm0, %v3984_v58  ;;  %3230 = vmatmul.mubr.msk.f32.gmra.mxu1 %vm285_vm0, %v3908_v29 }
  0xc4   : > { %1114 = vmatprep.mubr.f32.mxu0 %v6148_v0  ;;  %1227 = vmatprep.mubr.f32.mxu1 %v6148_v0 }
  0xc5   : > { %1491 = vmatprep.subr.mxu1 %v220_v42 }
  0xc6   : > { %1492 = vmatpush1.msra.mxu1 %v219_v43 }
  0xc7   : > { %3223 = vmatmul.mubr.msk.f32.gmra.mxu0 %vm285_vm0, %v3876_v12  ;;  %3231 = vmatmul.mubr.msk.f32.gmra.mxu1 %vm285_vm0, %v3920_v34 }
  0xc8   : > { %1120 = vmatprep.mubr.f32.mxu0 %v6148_v0  ;;  %1233 = vmatprep.mubr.f32.mxu1 %v6148_v0 }
  0xcb   : > { %3224 = vmatmul.mubr.msk.f32.gmra.mxu0 %vm285_vm0, %v3887_v18  ;;  %3232 = vmatmul.mubr.msk.f32.gmra.mxu1 %vm285_vm0, %v3929_v39 }
  0xcc   : > { %1126 = vmatprep.mubr.f32.mxu0 %v6148_v0  ;;  %1239 = vmatprep.mubr.f32.mxu1 %v6148_v0 }
  0xcf   : > { %3225 = vmatmul.mubr.msk.f32.gmra.mxu0 %vm285_vm0, %v3899_v24  ;;  %3233 = vmatmul.mubr.msk.f32.gmra.mxu1 %vm285_vm0, %v3939_v44 }
  0xd0   : > { %1132 = vmatprep.mubr.f32.mxu0 %v6148_v0  ;;  %1245 = vmatprep.mubr.f32.mxu1 %v6148_v0 }
  0xd3   : > { %3226 = vmatmul.mubr.msk.f32.gmra.mxu0 %vm285_vm0, %v3911_v30  ;;  %3234 = vmatmul.mubr.msk.f32.gmra.mxu1 %vm285_vm0, %v3948_v49 }
  0xd4   : > { %1251 = vmatprep.mubr.f32.mxu1 %v6148_v0  ;;  %1364 = vmatprep.mubr.f32.mxu0 %v6148_v0 }
  0xd7   : > { %3235 = vmatmul.mubr.msk.f32.gmra.mxu1 %vm285_vm0, %v3957_v54  ;;  %3243 = vmatmul.mubr.msk.f32.vlgmr.msra.gmra.mxu0 %vm285_vm0, %v3873_v11 }
  0xd8   : > { %1257 = vmatprep.mubr.f32.mxu1 %v6148_v0  ;;  %1370 = vmatprep.mubr.f32.mxu0 %v6148_v0 }
  0xdb   : > { %3236 = vmatmul.mubr.msk.f32.gmra.mxu1 %vm285_vm0, %v3966_v56  ;;  %3244 = vmatmul.mubr.msk.f32.gmra.mxu0 %vm285_vm0, %v3884_v17 }
  0xdc   : > { %1263 = vmatprep.mubr.f32.mxu1 %v6148_v0  ;;  %1376 = vmatprep.mubr.f32.mxu0 %v6148_v0 }
  0xdf   : > { %3237 = vmatmul.mubr.msk.f32.gmra.mxu1 %vm285_vm0, %v3975_v57  ;;  %3245 = vmatmul.mubr.msk.f32.gmra.mxu0 %vm285_vm0, %v3896_v23 }
  0xe0   : > { %1269 = vmatprep.mubr.f32.mxu1 %v6148_v0  ;;  %1382 = vmatprep.mubr.f32.mxu0 %v6148_v0 }
  0xe3   : > { %3238 = vmatmul.mubr.msk.f32.gmra.mxu1 %vm285_vm0, %v3984_v58  ;;  %3246 = vmatmul.mubr.msk.f32.gmra.mxu0 %vm285_vm0, %v3908_v29 }
  0xe4   : > { %1275 = vmatprep.mubr.f32.mxu1 %v6148_v0  ;;  %1388 = vmatprep.mubr.f32.mxu0 %v6148_v0 }
  0xe7   : > { %v400_v45 = vpop.f32.mrf.mxu0  ;;  %v472_v46 = vpop.f32.mrf.mxu1  ;;  %3239 = vmatmul.mubr.msk.f32.gmra.mxu1 %vm285_vm0, %v3876_v12  ;;  %3247 = vmatmul.mubr.msk.f32.gmra.mxu0 %vm285_vm0, %v3920_v34 }
  0xe8   : > { %v1622_v47 = vmul.f32 0.2, %v400_v45  ;;  %v1634_v48 = vmul.f32 0.2, %v472_v46  ;;  %1281 = vmatprep.mubr.f32.mxu1 %v6148_v0  ;;  %1394 = vmatprep.mubr.f32.mxu0 %v6148_v0 }
  0xe9   : > { %v402_v50 = vpop.f32.mrf.mxu0  ;;  %v474_v51 = vpop.f32.mrf.mxu1 }
  0xea   : > { %v4214_v52 = vmax.f32 %v400_v45, %v1622_v47  ;;  %v1654_v53 = vmul.f32 0.2, %v402_v50  ;;  %v1666_v55 = vmul.f32 0.2, %v474_v51  ;;  %v4220_v61 = vmax.f32 %v472_v46, %v1634_v48 }
  0xeb   : > { %v406_v59 = vpop.f32.mrf.mxu0  ;;  %v478_v60 = vpop.f32.mrf.mxu1  ;;  %3240 = vmatmul.mubr.msk.f32.gmra.mxu1 %vm285_vm0, %v3887_v18  ;;  %3248 = vmatmul.mubr.msk.f32.gmra.mxu0 %vm285_vm0, %v3929_v39 }
  0xec   : > { %6313 = vst [vmem:[#allocation5_spill] sm:$0xff] %v4220_v61  ;;  %v4222_v62 = vmax.f32 %v402_v50, %v1654_v53  ;;  %v4224_v63 = vmax.f32 %v474_v51, %v1666_v55  ;;  %v1623_v1 = vmul.f32 0.2, %v406_v59  ;;  %1287 = vmatprep.mubr.f32.mxu1 %v6148_v0  ;;  %1400 = vmatprep.mubr.f32.mxu0 %v6148_v0  ;;  %v1635_v2 = vmul.f32 0.2, %v478_v60 }
  0xed   : > { %v408_v3 = vpop.f32.mrf.mxu0  ;;  %v480_v4 = vpop.f32.mrf.mxu1 }
  0xee   : > { %6314 = vst [vmem:[#allocation6_spill] sm:$0xff] %v4224_v63  ;;  %v1878_v5 = vmax.f32 %v4214_v52, %v4222_v62  ;;  %v4232_v7 = vmax.f32 %v406_v59, %v1623_v1  ;;  %v1655_v8 = vmul.f32 0.2, %v408_v3  ;;  %v1667_v9 = vmul.f32 0.2, %v480_v4 }
  0xef   : > { %v412_v10 = vpop.f32.mrf.mxu0  ;;  %v484_v13 = vpop.f32.mrf.mxu1  ;;  %3241 = vmatmul.mubr.msk.f32.gmra.mxu1 %vm285_vm0, %v3899_v24  ;;  %3249 = vmatmul.mubr.msk.f32.gmra.mxu0 %vm285_vm0, %v3939_v44  ;;  %v4240_v16 = vmax.f32 %v478_v60, %v1635_v2 }
  0xf0   : > { %v1624_v14 = vmul.f32 0.2, %v412_v10  ;;  %v1636_v15 = vmul.f32 0.2, %v484_v13  ;;  %1293 = vmatprep.mubr.f32.mxu1 %v6148_v0  ;;  %1406 = vmatprep.mubr.f32.mxu0 %v6148_v0  ;;  %v4242_v19 = vmax.f32 %v408_v3, %v1655_v8  ;;  %v4244_v20 = vmax.f32 %v480_v4, %v1667_v9 }
  0xf1   : > { %6315 = vst [vmem:[#allocation7_spill] sm:$0xff] %v4240_v16  ;;  %v414_v21 = vpop.f32.mrf.mxu0  ;;  %v486_v22 = vpop.f32.mrf.mxu1 }
  0xf2   : > { %6316 = vst [vmem:[#allocation8_spill] sm:$0xff] %v4244_v20  ;;  %v4246_v25 = vmax.f32 %v412_v10, %v1624_v14  ;;  %v1656_v26 = vmul.f32 0.2, %v414_v21  ;;  %v1668_v27 = vmul.f32 0.2, %v486_v22  ;;  %v1879_v28 = vmax.f32 %v4232_v7, %v4242_v19 }
  0xf3   : > { %v418_v32 = vpop.f32.mrf.mxu0  ;;  %v490_v33 = vpop.f32.mrf.mxu1  ;;  %3242 = vmatmul.mubr.msk.f32.gmra.mxu1 %vm285_vm0, %v3911_v30  ;;  %3250 = vmatmul.mubr.msk.f32.gmra.mxu0 %vm285_vm0, %v3948_v49  ;;  %v4256_v35 = vmax.f32 %v484_v13, %v1636_v15 }
  0xf4   : > { %v4258_v36 = vmax.f32 %v414_v21, %v1656_v26  ;;  %v4260_v37 = vmax.f32 %v486_v22, %v1668_v27  ;;  %v1625_v38 = vmul.f32 0.2, %v418_v32  ;;  %1412 = vmatprep.mubr.f32.mxu0 %v6148_v0  ;;  %1525 = vmatprep.mubr.f32.mxu1 %v6148_v0  ;;  %v1637_v40 = vmul.f32 0.2, %v490_v33 }
  0xf5   : > { %6317 = vst [vmem:[#allocation9_spill] sm:$0xff] %v4256_v35  ;;  %v420_v41 = vpop.f32.mrf.mxu0  ;;  %v492_v42 = vpop.f32.mrf.mxu1 }
  0xf6   : > { %6318 = vst [vmem:[#allocation10_spill] sm:$0xff] %v4260_v37  ;;  %v1880_v43 = vmax.f32 %v4246_v25, %v4258_v36  ;;  %v4268_v46 = vmax.f32 %v418_v32, %v1625_v38  ;;  %v1657_v47 = vmul.f32 0.2, %v420_v41  ;;  %v1669_v48 = vmul.f32 0.2, %v492_v42 }
  0xf7   : > { %v424_v50 = vpop.f32.mrf.mxu0  ;;  %v561_v51 = vpop.f32.mrf.mxu1  ;;  %3251 = vmatmul.mubr.msk.f32.gmra.mxu0 %vm285_vm0, %v3957_v54  ;;  %3259 = vmatmul.mubr.msk.f32.vlgmr.msra.gmra.mxu1 %vm285_vm0, %v3873_v11  ;;  %v4276_v55 = vmax.f32 %v490_v33, %v1637_v40 }
  0xf8   : > { %v1686_v53 = vmul.f32 0.2, %v561_v51  ;;  %1418 = vmatprep.mubr.f32.mxu0 %v6148_v0  ;;  %1531 = vmatprep.mubr.f32.mxu1 %v6148_v0  ;;  %v4278_v59 = vmax.f32 %v420_v41, %v1657_v47  ;;  %v4280_v60 = vmax.f32 %v492_v42, %v1669_v48  ;;  %v1626_v27 = vmul.f32 0.2, %v424_v50 }
  0xf9   : > { %6319 = vst [vmem:[#allocation11_spill] sm:$0xff] %v4276_v55  ;;  %v426_v1 = vpop.f32.mrf.mxu0  ;;  %v563_v2 = vpop.f32.mrf.mxu1 }
  0xfa   : > { %6320 = vst [vmem:[#allocation12_spill] sm:$0xff] %v4280_v60  ;;  %v4282_v3 = vmax.f32 %v561_v51, %v1686_v53  ;;  %v1718_v4 = vmul.f32 0.2, %v563_v2  ;;  %v1881_v8 = vmax.f32 %v4268_v46, %v4278_v59  ;;  %v1658_v32 = vmul.f32 0.2, %v426_v1 }
  0xfb   : > { %v430_v9 = vpop.f32.mrf.mxu0  ;;  %v567_v10 = vpop.f32.mrf.mxu1  ;;  %3252 = vmatmul.mubr.msk.f32.gmra.mxu0 %vm285_vm0, %v3966_v56  ;;  %3260 = vmatmul.mubr.msk.f32.gmra.mxu1 %vm285_vm0, %v3884_v17  ;;  %v4316_v53 = vmax.f32 %v424_v50, %v1626_v27 }
  0xfc   : > { %6321 = vst [vmem:[#allocation13_spill] sm:$0xff] %v4282_v3  ;;  %v4293_v13 = vmax.f32 %v1878_v5, %v4282_v3  ;;  %v4295_v14 = vmax.f32 %v563_v2, %v1718_v4  ;;  %1424 = vmatprep.mubr.f32.mxu0 %v6148_v0  ;;  %1537 = vmatprep.mubr.f32.mxu1 %v6148_v0  ;;  %v1687_v15 = vmul.f32 0.2, %v567_v10 }
  0xfd   : > { %v432_v21 = vpop.f32.mrf.mxu0  ;;  %v569_v22 = vpop.f32.mrf.mxu1  ;;  %v4318_v2 = vmax.f32 %v426_v1, %v1658_v32 }
  0xfe   : > { %v4301_v33 = vmax.f32 %v567_v10, %v1687_v15  ;;  %v1719_v17 = vmul.f32 0.2, %v569_v22 }
  0xff   : > { %v436_v38 = vpop.f32.mrf.mxu0  ;;  %v573_v5 = vpop.f32.mrf.mxu1  ;;  %3253 = vmatmul.mubr.msk.f32.gmra.mxu0 %vm285_vm0, %v3975_v57  ;;  %3261 = vmatmul.mubr.msk.f32.gmra.mxu1 %vm285_vm0, %v3896_v23 }
 0x100   : > { %6322 = vst [vmem:[#allocation14_spill] sm:$0xff] %v4301_v33  ;;  %v1688_v40 = vmul.f32 0.2, %v573_v5  ;;  %1430 = vmatprep.mubr.f32.mxu0 %v6148_v0  ;;  %1543 = vmatprep.mubr.f32.mxu1 %v6148_v0  ;;  %v4310_v41 = vmax.f32 %v1879_v28, %v4301_v33  ;;  %v4312_v42 = vmax.f32 %v569_v22, %v1719_v17  ;;  %v1627_v28 = vmul.f32 0.2, %v430_v9 }
 0x101   : > { %v438_v47 = vpop.f32.mrf.mxu0  ;;  %v575_v48 = vpop.f32.mrf.mxu1  ;;  %v1659_v22 = vmul.f32 0.2, %v432_v21 }
 0x102   : > { %6323 = vst [vmem:[#allocation15_spill] sm:$0xff] %v4312_v42  ;;  %v4314_v51 = vmax.f32 %v573_v5, %v1688_v40  ;;  %v1720_v4 = vmul.f32 0.2, %v575_v48  ;;  %v1628_v5 = vmul.f32 0.2, %v436_v38 }
 0x103   : > { %v442_v10 = vpop.f32.mrf.mxu0  ;;  %v579_v15 = vpop.f32.mrf.mxu1  ;;  %3254 = vmatmul.mubr.msk.f32.gmra.mxu0 %vm285_vm0, %v3984_v58  ;;  %3262 = vmatmul.mubr.msk.f32.gmra.mxu1 %vm285_vm0, %v3908_v29  ;;  %v1660_v40 = vmul.f32 0.2, %v438_v47  ;;  %v1882_v29 = vmax.f32 %v4316_v53, %v4318_v2 }
 0x104   : > { %6324 = vst [vmem:[#allocation16_spill] sm:$0xff] %v4314_v51  ;;  %v4327_v17 = vmax.f32 %v1880_v43, %v4314_v51  ;;  %v1689_v50 = vmul.f32 0.2, %v579_v15  ;;  %1436 = vmatprep.mubr.f32.mxu0 %v6148_v0  ;;  %1549 = vmatprep.mubr.f32.mxu1 %v6148_v0  ;;  %v4331_v1 = vmax.f32 %v575_v48, %v1720_v4 }
 0x105   : > { %v444_v27 = vpop.f32.mrf.mxu0  ;;  %v581_v32 = vpop.f32.mrf.mxu1  ;;  %v4343_v48 = vmax.f32 %v430_v9, %v1627_v28  ;;  %v4345_v4 = vmax.f32 %v432_v21, %v1659_v22  ;;  %v4356_v51 = vmax.f32 %v438_v47, %v1660_v40  ;;  %v1629_v9 = vmul.f32 0.2, %v442_v10 }
 0x106   : > { %6325 = vst [vmem:[#allocation17_spill] sm:$0xff] %v4331_v1  ;;  %v4333_v11 = vmax.f32 %v579_v15, %v1689_v50  ;;  %v1721_v45 = vmul.f32 0.2, %v581_v32  ;;  %v1661_v21 = vmul.f32 0.2, %v444_v27 }
 0x107   : > { %v448_v31 = vpop.f32.mrf.mxu0  ;;  %v585_v6 = vpop.f32.mrf.mxu1  ;;  %3255 = vmatmul.mubr.msk.f32.gmra.mxu0 %vm285_vm0, %v3876_v12  ;;  %3263 = vmatmul.mubr.msk.f32.gmra.mxu1 %vm285_vm0, %v3920_v34  ;;  %6327 = vst [vmem:[#allocation19_spill] sm:$0xff] %v4343_v48  ;;  %6328 = vst [vmem:[#allocation20_spill] sm:$0xff] %v4345_v4  ;;  %v4354_v12 = vmax.f32 %v436_v38, %v1628_v5 }
 0x108   : > { %6326 = vst [vmem:[#allocation18_spill] sm:$0xff] %v4333_v11  ;;  %v4348_v15 = vmax.f32 %v1881_v8, %v4333_v11  ;;  %v1690_v50 = vmul.f32 0.2, %v585_v6  ;;  %1442 = vmatprep.mubr.f32.mxu0 %v6148_v0  ;;  %1555 = vmatprep.mubr.f32.mxu1 %v6148_v0  ;;  %v4352_v43 = vmax.f32 %v581_v32, %v1721_v45  ;;  %6331 = vst [vmem:[#allocation23_spill] sm:$0xff] %v4356_v51 }
 0x109   : > { %v450_v23 = vpop.f32.mrf.mxu0  ;;  %v587_v26 = vpop.f32.mrf.mxu1  ;;  %6330 = vst [vmem:[#allocation22_spill] sm:$0xff] %v4354_v12  ;;  %v1883_v45 = vmax.f32 %v4343_v48, %v4345_v4 }
 0x10a   : > { %6329 = vst [vmem:[#allocation21_spill] sm:$0xff] %v4352_v43  ;;  %v4358_v34 = vmax.f32 %v585_v6, %v1690_v50  ;;  %v1722_v28 = vmul.f32 0.2, %v587_v26  ;;  %v4381_v50 = vmax.f32 %v444_v27, %v1661_v21 }
 0x10b   : > { %v454_v22 = vpop.f32.mrf.mxu0  ;;  %v591_v11 = vpop.f32.mrf.mxu1  ;;  %3256 = vmatmul.mubr.msk.f32.gmra.mxu0 %vm285_vm0, %v3887_v18  ;;  %3264 = vmatmul.mubr.msk.f32.gmra.mxu1 %vm285_vm0, %v3929_v39  ;;  %v1884_v18 = vmax.f32 %v4354_v12, %v4356_v51  ;;  %v4379_v39 = vmax.f32 %v442_v10, %v1629_v9 }
 0x10c   : > { %6332 = vst [vmem:[#allocation24_spill] sm:$0xff] %v4358_v34  ;;  %v4369_v6 = vmax.f32 %v1882_v29, %v4358_v34  ;;  %v1691_v38 = vmul.f32 0.2, %v591_v11  ;;  %1448 = vmatprep.mubr.f32.mxu0 %v6148_v0  ;;  %1561 = vmatprep.mubr.f32.mxu1 %v6148_v0  ;;  %v4373_v47 = vmax.f32 %v587_v26, %v1722_v28  ;;  %6336 = vst [vmem:[#allocation28_spill] sm:$0xff] %v4381_v50 }
 0x10d   : > { %v456_v32 = vpop.f32.mrf.mxu0  ;;  %v593_v5 = vpop.f32.mrf.mxu1  ;;  %6335 = vst [vmem:[#allocation27_spill] sm:$0xff] %v4379_v39  ;;  %v1630_v26 = vmul.f32 0.2, %v448_v31  ;;  %v1662_v28 = vmul.f32 0.2, %v450_v23 }
 0x10e   : > { %6333 = vst [vmem:[#allocation25_spill] sm:$0xff] %v4373_v47  ;;  %v4377_v40 = vmax.f32 %v591_v11, %v1691_v38  ;;  %v1723_v8 = vmul.f32 0.2, %v593_v5  ;;  %v1631_v38 = vmul.f32 0.2, %v454_v22 }
 0x10f   : > { %v460_v34 = vpop.f32.mrf.mxu0  ;;  %v597_v33 = vpop.f32.mrf.mxu1  ;;  %3257 = vmatmul.mubr.msk.f32.gmra.mxu0 %vm285_vm0, %v3899_v24  ;;  %3265 = vmatmul.mubr.msk.f32.gmra.mxu1 %vm285_vm0, %v3939_v44  ;;  %v1663_v29 = vmul.f32 0.2, %v456_v32  ;;  %v1885_v44 = vmax.f32 %v4379_v39, %v4381_v50 }
 0x110   : > { %6334 = vst [vmem:[#allocation26_spill] sm:$0xff] %v4377_v40  ;;  %v4390_v11 = vmax.f32 %v1883_v45, %v4377_v40  ;;  %v1692_v10 = vmul.f32 0.2, %v597_v33  ;;  %1454 = vmatprep.mubr.f32.mxu0 %v6148_v0  ;;  %1567 = vmatprep.mubr.f32.mxu1 %v6148_v0  ;;  %v4394_v27 = vmax.f32 %v593_v5, %v1723_v8  ;;  %v1632_v45 = vmul.f32 0.2, %v460_v34 }
 0x111   : > { %v462_v9 = vpop.f32.mrf.mxu0  ;;  %v599_v21 = vpop.f32.mrf.mxu1  ;;  %v4406_v8 = vmax.f32 %v448_v31, %v1630_v26  ;;  %v4408_v5 = vmax.f32 %v450_v23, %v1662_v28  ;;  %v4418_v48 = vmax.f32 %v456_v32, %v1663_v29 }
 0x112   : > { %6337 = vst [vmem:[#allocation29_spill] sm:$0xff] %v4394_v27  ;;  %v4396_v24 = vmax.f32 %v597_v33, %v1692_v10  ;;  %v1724_v40 = vmul.f32 0.2, %v599_v21  ;;  %v1664_v50 = vmul.f32 0.2, %v462_v9 }
 0x113   : > { %v466_v3 = vpop.f32.mrf.mxu0  ;;  %v603_v51 = vpop.f32.mrf.mxu1  ;;  %3258 = vmatmul.mubr.msk.f32.gmra.mxu0 %vm285_vm0, %v3911_v30  ;;  %3266 = vmatmul.mubr.msk.f32.gmra.mxu1 %vm285_vm0, %v3948_v49  ;;  %6339 = vst [vmem:[#allocation31_spill] sm:$0xff] %v4408_v5  ;;  %v4416_v30 = vmax.f32 %v454_v22, %v1631_v38  ;;  %6342 = vst [vmem:[#allocation34_spill] sm:$0xff] %v4418_v48 }
 0x114   : > { %6338 = vst [vmem:[#allocation30_spill] sm:$0xff] %v4396_v24  ;;  %v4411_v33 = vmax.f32 %v1884_v18, %v4396_v24  ;;  %v1693_v10 = vmul.f32 0.2, %v603_v51  ;;  %1573 = vmatprep.mubr.f32.mxu1 %v6148_v0  ;;  %v4414_v39 = vmax.f32 %v599_v21, %v1724_v40  ;;  %v1886_v40 = vmax.f32 %v4406_v8, %v4408_v5 }
 0x115   : > { %v468_v12 = vpop.f32.mrf.mxu0  ;;  %v605_v4 = vpop.f32.mrf.mxu1  ;;  %6341 = vst [vmem:[#allocation33_spill] sm:$0xff] %v4416_v30  ;;  %v4434_v29 = vmax.f32 %v462_v9, %v1664_v50 }
 0x116   : > { %6340 = vst [vmem:[#allocation32_spill] sm:$0xff] %v4414_v39  ;;  %v4420_v49 = vmax.f32 %v603_v51, %v1693_v10  ;;  %v1725_v23 = vmul.f32 0.2, %v605_v4  ;;  %v4432_v51 = vmax.f32 %v460_v34, %v1632_v45  ;;  %v1665_v5 = vmul.f32 0.2, %v468_v12 }
 0x117   : > { %v609_v18 = vpop.f32.mrf.mxu1  ;;  %v722_v26 = vpop.f32.mrf.mxu0  ;;  %3267 = vmatmul.mubr.msk.f32.gmra.mxu1 %vm285_vm0, %v3957_v54  ;;  %6345 = vst [vmem:[#allocation37_spill] sm:$0xff] %v4434_v29  ;;  %v1887_v54 = vmax.f32 %v4416_v30, %v4418_v48 }
 0x118   : > { %6343 = vst [vmem:[#allocation35_spill] sm:$0xff] %v4420_v49  ;;  %v4429_v28 = vmax.f32 %v1885_v44, %v4420_v49  ;;  %v1694_v22 = vmul.f32 0.2, %v609_v18  ;;  %v1750_v32 = vmul.f32 0.2, %v722_v26  ;;  %1579 = vmatprep.mubr.f32.mxu1 %v6148_v0  ;;  %6344 = vst [vmem:[#allocation36_spill] sm:$0xff] %v4432_v51  ;;  %v4436_v21 = vmax.f32 %v605_v4, %v1725_v23 }
 0x119   : > { %v611_v38 = vpop.f32.mrf.mxu1  ;;  %v724_v10 = vpop.f32.mrf.mxu0  ;;  %v1633_v49 = vmul.f32 0.2, %v466_v3  ;;  %v6349_v23 = vmax.f32 %v4293_v13, %v4295_v14 }
 0x11a   : > { %6346 = vst [vmem:[#allocation38_spill] sm:$0xff] %v4436_v21  ;;  %v4440_v31 = vmax.f32 %v609_v18, %v1694_v22  ;;  %v4442_v24 = vmax.f32 %v722_v26, %v1750_v32  ;;  %v1726_v44 = vmul.f32 0.2, %v611_v38  ;;  %v1782_v45 = vmul.f32 0.2, %v724_v10 }
 0x11b   : > { %v615_v50 = vpop.f32.mrf.mxu1  ;;  %v728_v9 = vpop.f32.mrf.mxu0  ;;  %3268 = vmatmul.mubr.msk.f32.gmra.mxu1 %vm285_vm0, %v3966_v56  ;;  %v1888_v32 = vmax.f32 %v4432_v51, %v4434_v29 }
 0x11c   : > { %6347 = vst [vmem:[#allocation39_spill] sm:$0xff] %v4440_v31  ;;  %6348 = vst [vmem:[#allocation40_spill] sm:$0xff] %v4442_v24  ;;  %v4449_v4 = vmax.f32 %v1886_v40, %v4440_v31  ;;  %v4455_v18 = vmax.f32 %v6349_v23, %v4442_v24  ;;  %v4457_v26 = vmax.f32 %v611_v38, %v1726_v44  ;;  %v1695_v22 = vmul.f32 0.2, %v615_v50 }
 0x11d   : > { %1585 = vmatprep.mubr.f32.mxu1 %v6148_v0  ;;  %v4462_v34 = vmax.f32 %v724_v10, %v1782_v45  ;;  %v1751_v56 = vmul.f32 0.2, %v728_v9  ;;  %v617_v48 = vpop.f32.mrf.mxu1  ;;  %v730_v40 = vpop.f32.mrf.mxu0  ;;  %v4468_v38 = vmax.f32 %v466_v3, %v1633_v49  ;;  %v4470_v44 = vmax.f32 %v468_v12, %v1665_v5 }
 0x11e   : > { %v4466_v30 = vmax.f32 %v615_v50, %v1695_v22  ;;  %v1727_v13 = vmul.f32 0.2, %v617_v48  ;;  %v1783_v23 = vmul.f32 0.2, %v730_v40  ;;  %v6357_v12 = vmov 0.0  }
 0x11f   : > { %6350 = vst [vmem:[#allocation41_spill] sm:$0xff] %v4462_v34  ;;  %6352 = vst [vmem:[#allocation43_spill] sm:$0xff] %v4468_v38  ;;  %v4474_v24 = vmax.f32 %v728_v9, %v1751_v56  ;;  %v621_v10 = vpop.f32.mrf.mxu1  ;;  %v734_v45 = vpop.f32.mrf.mxu0  ;;  %3269 = vmatmul.mubr.msk.f32.gmra.mxu1 %vm285_vm0, %v3975_v57  ;;  %v6358_v5 = vmax.f32 %v4310_v41, %v4312_v42 }
 0x120   : > { %6351 = vst [vmem:[#allocation42_spill] sm:$0xff] %v4466_v30  ;;  %6353 = vst [vmem:[#allocation44_spill] sm:$0xff] %v4470_v44  ;;  %v4479_v31 = vmax.f32 %v1887_v54, %v4466_v30  ;;  %v4481_v50 = vmax.f32 %v617_v48, %v1727_v13  ;;  %v4483_v22 = vmax.f32 %v730_v40, %v1783_v23  ;;  %v1696_v3 = vmul.f32 0.2, %v621_v10 }
 0x121   : > { %6354 = vst [vmem:[#allocation45_spill] sm:$0xff] %v4474_v24  ;;  %1591 = vmatprep.mubr.f32.mxu1 %v6357_v12  ;;  %v4490_v49 = vmax.f32 %v6358_v5, %v4474_v24  ;;  %v1752_v9 = vmul.f32 0.2, %v734_v45  ;;  %v623_v56 = vpop.f32.mrf.mxu1  ;;  %v736_v0 = vpop.f32.mrf.mxu0  ;;  %v1889_v13 = vmax.f32 %v4468_v38, %v4470_v44 }
 0x122   : > { %6355 = vst [vmem:[#allocation46_spill] sm:$0xff] %v4481_v50  ;;  %6356 = vst [vmem:[#allocation47_spill] sm:$0xff] %v4483_v22  ;;  %v4494_v54 = vmax.f32 %v621_v10, %v1696_v3  ;;  %v1728_v48 = vmul.f32 0.2, %v623_v56  ;;  %v1784_v40 = vmul.f32 0.2, %v736_v0 }
 0x123   : > { %v4500_v30 = vmax.f32 %v734_v45, %v1752_v9  ;;  %v627_v41 = vpop.f32.mrf.mxu1  ;;  %v740_v5 = vpop.f32.mrf.mxu0  ;;  %3270 = vmatmul.mubr.msk.f32.gmra.mxu1 %vm285_vm0, %v3984_v58  ;;  %v6363_v45 = vmax.f32 %v4327_v17, %v4331_v1  ;;  %v3765_v17 = vld [vmem:[%s3870_s27 + $0x60] sm:$0xff] }
 0x124   : > { %6359 = vst [vmem:[#allocation48_spill] sm:$0xff] %v4494_v54  ;;  %v4505_v24 = vmax.f32 %v1888_v32, %v4494_v54  ;;  %v4507_v10 = vmax.f32 %v623_v56, %v1728_v48  ;;  %v4509_v3 = vmax.f32 %v736_v0, %v1784_v40  ;;  %v1697_v57 = vmul.f32 0.2, %v627_v41  ;;  %1597 = vmatprep.mubr.f32.mxu1 %v6357_v12 }
 0x125   : > { %6360 = vst [vmem:[#allocation49_spill] sm:$0xff] %v4500_v30  ;;  %v4516_v9 = vmax.f32 %v6363_v45, %v4500_v30  ;;  %v1753_v23 = vmul.f32 0.2, %v740_v5  ;;  %v629_v44 = vpop.f32.mrf.mxu1  ;;  %v742_v58 = vpop.f32.mrf.mxu0 }
 0x126   : > { %6361 = vst [vmem:[#allocation50_spill] sm:$0xff] %v4507_v10  ;;  %6362 = vst [vmem:[#allocation51_spill] sm:$0xff] %v4509_v3  ;;  %v4520_v56 = vmax.f32 %v627_v41, %v1697_v57  ;;  %v1729_v48 = vmul.f32 0.2, %v629_v44  ;;  %v1785_v0 = vmul.f32 0.2, %v742_v58 }
 0x127   : > { %v4524_v54 = vmax.f32 %v740_v5, %v1753_v23  ;;  %v633_v38 = vpop.f32.mrf.mxu1  ;;  %v746_v29 = vpop.f32.mrf.mxu0  ;;  %3271 = vmatmul.mubr.msk.f32.gmra.mxu1 %vm285_vm0, %v3765_v17  ;;  %v6368_v23 = vmax.f32 %v4348_v15, %v4352_v43  ;;  %v3766_v15 = vld [vmem:[%s3870_s27 + $0x68] sm:$0xff] }
 0x128   : > { %6364 = vst [vmem:[#allocation52_spill] sm:$0xff] %v4520_v56  ;;  %v4529_v45 = vmax.f32 %v1889_v13, %v4520_v56  ;;  %v4531_v30 = vmax.f32 %v629_v44, %v1729_v48  ;;  %v4533_v57 = vmax.f32 %v742_v58, %v1785_v0  ;;  %v1698_v41 = vmul.f32 0.2, %v633_v38  ;;  %1603 = vmatprep.mubr.f32.mxu1 %v6357_v12 }
 0x129   : > { %6365 = vst [vmem:[#allocation53_spill] sm:$0xff] %v4524_v54  ;;  %v4540_v5 = vmax.f32 %v6368_v23, %v4524_v54  ;;  %v1754_v40 = vmul.f32 0.2, %v746_v29  ;;  %v635_v32 = vpop.f32.mrf.mxu1  ;;  %v748_v17 = vpop.f32.mrf.mxu0  ;;  %v6371_v23 = vmax.f32 %v4220_v61, %v4224_v63 }
 0x12a   : > { %6366 = vst [vmem:[#allocation54_spill] sm:$0xff] %v4531_v30  ;;  %6367 = vst [vmem:[#allocation55_spill] sm:$0xff] %v4533_v57  ;;  %v4544_v44 = vmax.f32 %v633_v38, %v1698_v41  ;;  %v1730_v48 = vmul.f32 0.2, %v635_v32  ;;  %v1786_v58 = vmul.f32 0.2, %v748_v17 }
 0x12b   : > { %v4548_v56 = vmax.f32 %v746_v29, %v1754_v40  ;;  %v639_v1 = vpop.f32.mrf.mxu1  ;;  %v752_v51 = vpop.f32.mrf.mxu0  ;;  %3272 = vmatmul.mubr.msk.f32.gmra.mxu1 %vm285_vm0, %v3766_v15  ;;  %v6374_v29 = vmax.f32 %v4369_v6, %v4373_v47  ;;  %v3767_v6 = vld [vmem:[%s3870_s27 + $0x70] sm:$0xff] }
 0x12c   : > { %6369 = vst [vmem:[#allocation56_spill] sm:$0xff] %v4544_v44  ;;  %v4556_v54 = vmax.f32 %v6371_v23, %v4544_v44  ;;  %v4558_v38 = vmax.f32 %v635_v32, %v1730_v48  ;;  %v4560_v41 = vmax.f32 %v748_v17, %v1786_v58  ;;  %v1699_v13 = vmul.f32 0.2, %v639_v1  ;;  %1609 = vmatprep.mubr.f32.mxu1 %v6357_v12 }
 0x12d   : > { %6370 = vst [vmem:[#allocation57_spill] sm:$0xff] %v4548_v56  ;;  %v4567_v40 = vmax.f32 %v6374_v29, %v4548_v56  ;;  %v1755_v15 = vmul.f32 0.2, %v752_v51  ;;  %v641_v0 = vpop.f32.mrf.mxu1  ;;  %v754_v43 = vpop.f32.mrf.mxu0  ;;  %v6377_v29 = vmax.f32 %v4240_v16, %v4244_v20 }
 0x12e   : > { %6372 = vst [vmem:[#allocation58_spill] sm:$0xff] %v4558_v38  ;;  %6373 = vst [vmem:[#allocation59_spill] sm:$0xff] %v4560_v41  ;;  %v4571_v32 = vmax.f32 %v639_v1, %v1699_v13  ;;  %v1731_v48 = vmul.f32 0.2, %v641_v0  ;;  %v1787_v17 = vmul.f32 0.2, %v754_v43 }
 0x12f   : > { %v4575_v44 = vmax.f32 %v752_v51, %v1755_v15  ;;  %v645_v63 = vpop.f32.mrf.mxu1  ;;  %v758_v61 = vpop.f32.mrf.mxu0  ;;  %3273 = vmatmul.mubr.msk.f32.gmra.mxu1 %vm285_vm0, %v3767_v6  ;;  %v6380_v51 = vmax.f32 %v4390_v11, %v4394_v27  ;;  %v3768_v11 = vld [vmem:[%s3870_s27 + $0x78] sm:$0xff] }
 0x130   : > { %6375 = vst [vmem:[#allocation60_spill] sm:$0xff] %v4571_v32  ;;  %v4583_v56 = vmax.f32 %v6377_v29, %v4571_v32  ;;  %v4585_v1 = vmax.f32 %v641_v0, %v1731_v48  ;;  %v4587_v13 = vmax.f32 %v754_v43, %v1787_v17  ;;  %v1700_v23 = vmul.f32 0.2, %v645_v63  ;;  %1615 = vmatprep.mubr.f32.mxu1 %v6357_v12 }
 0x131   : > { %6376 = vst [vmem:[#allocation61_spill] sm:$0xff] %v4575_v44  ;;  %v4594_v15 = vmax.f32 %v6380_v51, %v4575_v44  ;;  %v1756_v6 = vmul.f32 0.2, %v758_v61  ;;  %v647_v58 = vpop.f32.mrf.mxu1  ;;  %v760_v47 = vpop.f32.mrf.mxu0  ;;  %v6383_v51 = vmax.f32 %v4256_v35, %v4260_v37 }
 0x132   : > { %6378 = vst [vmem:[#allocation62_spill] sm:$0xff] %v4585_v1  ;;  %6379 = vst [vmem:[#allocation63_spill] sm:$0xff] %v4587_v13  ;;  %v4598_v0 = vmax.f32 %v645_v63, %v1700_v23  ;;  %v1732_v48 = vmul.f32 0.2, %v647_v58  ;;  %v1788_v43 = vmul.f32 0.2, %v760_v47 }
 0x133   : > { %v4602_v12 = vmax.f32 %v758_v61, %v1756_v6  ;;  %v651_v32 = vpop.f32.mrf.mxu1  ;;  %v764_v20 = vpop.f32.mrf.mxu0  ;;  %3274 = vmatmul.mubr.msk.f32.gmra.mxu1 %vm285_vm0, %v3768_v11  ;;  %v6386_v61 = vmax.f32 %v4411_v33, %v4414_v39  ;;  %v6389_v33 = vmax.f32 %v4276_v55, %v4280_v60 }
 0x134   : > { %6381 = vst [vmem:[#allocation64_spill] sm:$0xff] %v4598_v0  ;;  %v4610_v44 = vmax.f32 %v6383_v51, %v4598_v0  ;;  %v4612_v63 = vmax.f32 %v647_v58, %v1732_v48  ;;  %v4614_v23 = vmax.f32 %v760_v47, %v1788_v43  ;;  %v1701_v29 = vmul.f32 0.2, %v651_v32 }
 0x135   : > { %6382 = vst [vmem:[#allocation65_spill] sm:$0xff] %v4602_v12  ;;  %v4620_v6 = vmax.f32 %v6386_v61, %v4602_v12  ;;  %v1757_v17 = vmul.f32 0.2, %v764_v20  ;;  %v653_v27 = vpop.f32.mrf.mxu1  ;;  %v766_v11 = vpop.f32.mrf.mxu0 }
 0x136   : > { %6384 = vst [vmem:[#allocation66_spill] sm:$0xff] %v4612_v63  ;;  %6385 = vst [vmem:[#allocation67_spill] sm:$0xff] %v4614_v23  ;;  %v4624_v37 = vmax.f32 %v651_v32, %v1701_v29  ;;  %v1733_v51 = vmul.f32 0.2, %v653_v27  ;;  %v1789_v58 = vmul.f32 0.2, %v766_v11  ;;  %v6392_v29 = vmax.f32 %v4429_v28, %v4436_v21 }
 0x137   : > { %v4628_v48 = vmax.f32 %v764_v20, %v1757_v17  ;;  %v770_v43 = vpop.f32.mrf.mxu0  ;;  %v883_v0 = vpop.f32.mrf.mxu1  ;;  %v6395_v28 = vmax.f32 %v4449_v4, %v4457_v26 }
 0x138   : > { %6387 = vst [vmem:[#allocation68_spill] sm:$0xff] %v4624_v37  ;;  %v4634_v61 = vmax.f32 %v6389_v33, %v4624_v37  ;;  %v4636_v12 = vmax.f32 %v653_v27, %v1733_v51  ;;  %v4638_v16 = vmax.f32 %v766_v11, %v1789_v58  ;;  %v1758_v32 = vmul.f32 0.2, %v770_v43 }
 0x139   : > { %6388 = vst [vmem:[#allocation69_spill] sm:$0xff] %v4628_v48  ;;  %v4644_v47 = vmax.f32 %v6392_v29, %v4628_v48  ;;  %v1814_v20 = vmul.f32 0.2, %v883_v0  ;;  %v772_v17 = vpop.f32.mrf.mxu0  ;;  %v885_v39 = vpop.f32.mrf.mxu1 }
 0x13a   : > { %6390 = vst [vmem:[#allocation70_spill] sm:$0xff] %v4636_v12  ;;  %6391 = vst [vmem:[#allocation71_spill] sm:$0xff] %v4638_v16  ;;  %v4648_v60 = vmax.f32 %v770_v43, %v1758_v32  ;;  %v1790_v33 = vmul.f32 0.2, %v772_v17  ;;  %v1846_v27 = vmul.f32 0.2, %v885_v39  ;;  %v6397_v32 = vmax.f32 %v4455_v18, %v4462_v34 }
 0x13b   : > { %v4652_v51 = vmax.f32 %v883_v0, %v1814_v20  ;;  %v776_v58 = vpop.f32.mrf.mxu0  ;;  %v889_v37 = vpop.f32.mrf.mxu1  ;;  %v6401_v18 = vmax.f32 %v4479_v31, %v4481_v50 }
 0x13c   : > { %6393 = vst [vmem:[#allocation72_spill] sm:$0xff] %v4648_v60  ;;  %v4658_v29 = vmax.f32 %v6395_v28, %v4648_v60  ;;  %v4660_v48 = vmax.f32 %v772_v17, %v1790_v33  ;;  %v1862_v35 = vmax.f32 %v885_v39, %v1846_v27  ;;  %v1759_v43 = vmul.f32 0.2, %v776_v58 }
 0x13d   : > { %6394 = vst [vmem:[#allocation73_spill] sm:$0xff] %v4652_v51  ;;  %v1958_v21 = vmax.f32 %v6397_v32, %v4652_v51  ;;  %v1815_v11 = vmul.f32 0.2, %v889_v37  ;;  %v778_v0 = vpop.f32.mrf.mxu0  ;;  %v891_v20 = vpop.f32.mrf.mxu1 }
 0x13e   : > { %6396 = vst [vmem:[#allocation74_spill] sm:$0xff] %v4660_v48  ;;  %v4668_v42 = vmax.f32 %v776_v58, %v1759_v43  ;;  %v1791_v4 = vmul.f32 0.2, %v778_v0  ;;  %v1847_v28 = vmul.f32 0.2, %v891_v20  ;;  %v2805_v58 = vld [vmem:[%s6128_s2 + $0x78] sm:$0xff] }
 0x13f   : > { %v4670_v60 = vmax.f32 %v1958_v21, %v1862_v35  ;;  %v4672_v17 = vmax.f32 %v889_v37, %v1815_v11  ;;  %v782_v39 = vpop.f32.mrf.mxu0  ;;  %v895_v33 = vpop.f32.mrf.mxu1  ;;  %v6403_v37 = vmax.f32 %v4490_v49, %v4483_v22  ;;  %3325 = vmatprep.subr.mxu0 %v2805_v58 }
 0x140   : > { %6398 = vst [vmem:[#allocation75_spill] sm:$0xff] %v4668_v42  ;;  %v4678_v27 = vmax.f32 %v6401_v18, %v4668_v42  ;;  %v4680_v32 = vmax.f32 %v778_v0, %v1791_v4  ;;  %v1863_v51 = vmax.f32 %v891_v20, %v1847_v28  ;;  %v1760_v55 = vmul.f32 0.2, %v782_v39  ;;  %3326 = vmatpush3.msra.mxu0 %v2805_v58 }
 0x141   : > { %6399 = vst [vmem:[#allocation76_spill] sm:$0xff] %v4670_v60  ;;  %6400 = vst [vmem:[#allocation77_spill] sm:$0xff] %v4672_v17  ;;  %v2662_v21 = vsub.f32 %v1862_v35, %v4670_v60  ;;  %v1959_v11 = vmax.f32 %v6403_v37, %v4672_v17  ;;  %v1816_v43 = vmul.f32 0.2, %v895_v33  ;;  %v784_v34 = vpop.f32.mrf.mxu0  ;;  %v897_v31 = vpop.f32.mrf.mxu1  ;;  %v1990_v0 = vsub.f32 %v4214_v52, %v4670_v60 }
 0x142   : > { %6402 = vst [vmem:[#allocation78_spill] sm:$0xff] %v4680_v32  ;;  %v4694_v4 = vmax.f32 %v782_v39, %v1760_v55  ;;  %v1792_v28 = vmul.f32 0.2, %v784_v34  ;;  %v1848_v18 = vmul.f32 0.2, %v897_v31  ;;  %v6407_v52 = vmax.f32 %v4505_v24, %v4507_v10  ;;  %v2804_v24 = vld [vmem:[%s6128_s2 + $0x70] sm:$0xff] }
 0x143   : > { %v2678_v35 = vmul.f32 1.442695, %v2662_v21  ;;  %v4696_v42 = vmax.f32 %v1959_v11, %v1863_v51  ;;  %v4698_v49 = vmax.f32 %v895_v33, %v1816_v43  ;;  %v788_v37 = vpop.f32.mrf.mxu0  ;;  %v901_v17 = vpop.f32.mrf.mxu1  ;;  %v2006_v22 = vmul.f32 1.442695, %v1990_v0  ;;  %3327 = vmatprep.subr.mxu0 %v2804_v24 }
 0x144   : > { %6404 = vst [vmem:[#allocation79_spill] sm:$0xff] %v4694_v4  ;;  %v4704_v50 = vmax.f32 %v6407_v52, %v4694_v4  ;;  %v4706_v20 = vmax.f32 %v784_v34, %v1792_v28  ;;  %v1864_v55 = vmax.f32 %v897_v31, %v1848_v18  ;;  %v1761_v39 = vmul.f32 0.2, %v788_v37  ;;  %3328 = vmatpush3.msra.mxu0 %v2804_v24 }
 0x145   : > { %6405 = vst [vmem:[#allocation80_spill] sm:$0xff] %v4696_v42  ;;  %6406 = vst [vmem:[#allocation81_spill] sm:$0xff] %v4698_v49  ;;  %3413 = vpow2.f32 %v2678_v35  ;;  %v2663_v58 = vsub.f32 %v1863_v51, %v4696_v42  ;;  %v6409_v33 = vmax.f32 %v4516_v9, %v4509_v3  ;;  %v1817_v11 = vmul.f32 0.2, %v901_v17  ;;  %v790_v43 = vpop.f32.mrf.mxu0  ;;  %v903_v0 = vpop.f32.mrf.mxu1 }
 0x146   : > { %6408 = vst [vmem:[#allocation82_spill] sm:$0xff] %v4706_v20  ;;  %v4718_v31 = vmax.f32 %v788_v37, %v1761_v39  ;;  %v1793_v28 = vmul.f32 0.2, %v790_v43  ;;  %v1849_v18 = vmul.f32 0.2, %v903_v0  ;;  %3415 = vpow2.f32 %v2006_v22 }
 0x147   : > { %v1960_v21 = vmax.f32 %v6409_v33, %v4698_v49  ;;  %v2680_v51 = vmul.f32 1.442695, %v2663_v58  ;;  %v4722_v9 = vmax.f32 %v901_v17, %v1817_v11  ;;  %v794_v52 = vpop.f32.mrf.mxu0  ;;  %v907_v33 = vpop.f32.mrf.mxu1  ;;  %v6413_v49 = vmax.f32 %v4529_v45, %v4531_v30  ;;  %v2803_v45 = vld [vmem:[%s6128_s2 + $0x68] sm:$0xff] }
 0x148   : > { %6410 = vst [vmem:[#allocation83_spill] sm:$0xff] %v4718_v31  ;;  %v4730_v37 = vmax.f32 %v790_v43, %v1793_v28  ;;  %v1865_v39 = vmax.f32 %v903_v0, %v1849_v18  ;;  %v1762_v34 = vmul.f32 0.2, %v794_v52  ;;  %v6415_v17 = vmax.f32 %v4540_v5, %v4533_v57  ;;  %3329 = vmatprep.subr.mxu0 %v2803_v45 }
 0x149   : > { %v4720_v35 = vmax.f32 %v1960_v21, %v1864_v55  ;;  %6412 = vst [vmem:[#allocation85_spill] sm:$0xff] %v4722_v9  ;;  %v4728_v4 = vmax.f32 %v6413_v49, %v4718_v31  ;;  %3417 = vpow2.f32 %v2680_v51  ;;  %v1818_v22 = vmul.f32 0.2, %v907_v33  ;;  %v796_v11 = vpop.f32.mrf.mxu0  ;;  %v909_v24 = vpop.f32.mrf.mxu1  ;;  %3330 = vmatpush3.msra.mxu0 %v2803_v45  ;;  %v2802_v49 = vld [vmem:[%s6128_s2 + $0x60] sm:$0xff] }
 0x14a   : > { %6414 = vst [vmem:[#allocation86_spill] sm:$0xff] %v4730_v37  ;;  %v1961_v21 = vmax.f32 %v6415_v17, %v4722_v9  ;;  %v4742_v43 = vmax.f32 %v794_v52, %v1762_v34  ;;  %v1794_v0 = vmul.f32 0.2, %v796_v11  ;;  %v1850_v28 = vmul.f32 0.2, %v909_v24  ;;  %3331 = vmatprep.subr.mxu0 %v2802_v49 }
 0x14b   : > { %6411 = vst [vmem:[#allocation84_spill] sm:$0xff] %v4720_v35  ;;  %v2664_v58 = vsub.f32 %v1864_v55, %v4720_v35  ;;  %v4746_v5 = vmax.f32 %v907_v33, %v1818_v22  ;;  %v800_v51 = vpop.f32.mrf.mxu0  ;;  %v913_v17 = vpop.f32.mrf.mxu1  ;;  %v2086_v9 = vsub.f32 %v4222_v62, %v4670_v60  ;;  %v6419_v34 = vmax.f32 %v4556_v54, %v4558_v38 }
 0x14c   : > { %6416 = vst [vmem:[#allocation87_spill] sm:$0xff] %v4742_v43  ;;  %v4744_v18 = vmax.f32 %v1961_v21, %v1865_v39  ;;  %v1866_v33 = vmax.f32 %v909_v24, %v1850_v28  ;;  %v1763_v21 = vmul.f32 0.2, %v800_v51  ;;  %v6421_v62 = vmax.f32 %v4567_v40, %v4560_v41  ;;  %3332 = vmatpush3.msra.mxu0 %v2802_v49 }
 0x14d   : > { %v2682_v55 = vmul.f32 1.442695, %v2664_v58  ;;  %6418 = vst [vmem:[#allocation89_spill] sm:$0xff] %v4746_v5  ;;  %v4757_v52 = vmax.f32 %v6419_v34, %v4742_v43  ;;  %v4759_v58 = vmax.f32 %v796_v11, %v1794_v0  ;;  %v1819_v31 = vmul.f32 0.2, %v913_v17  ;;  %v802_v57 = vpop.f32.mrf.mxu0  ;;  %v915_v30 = vpop.f32.mrf.mxu1 }
 0x14e   : > { %6417 = vst [vmem:[#allocation88_spill] sm:$0xff] %v4744_v18  ;;  %v2665_v22 = vsub.f32 %v1865_v39, %v4744_v18  ;;  %v1962_v45 = vmax.f32 %v6421_v62, %v4746_v5  ;;  %v4768_v11 = vmax.f32 %v800_v51, %v1763_v21  ;;  %v1795_v24 = vmul.f32 0.2, %v802_v57  ;;  %v2801_v39 = vld [vmem:[%s6128_s2 + $0x58] sm:$0xff] }
 0x14f   : > { %6420 = vst [vmem:[#allocation90_spill] sm:$0xff] %v4759_v58  ;;  %3419 = vpow2.f32 %v2682_v55  ;;  %v1851_v0 = vmul.f32 0.2, %v915_v30  ;;  %v4775_v40 = vmax.f32 %v913_v17, %v1819_v31  ;;  %v806_v34 = vpop.f32.mrf.mxu0  ;;  %v919_v62 = vpop.f32.mrf.mxu1  ;;  %v2102_v5 = vmul.f32 1.442695, %v2086_v9  ;;  %3333 = vmatprep.subr.mxu0 %v2801_v39  ;;  %v2800_v31 = vld [vmem:[%s6128_s2 + $0x50] sm:$0xff] }
 0x150   : > { %6422 = vst [vmem:[#allocation91_spill] sm:$0xff] %v4768_v11  ;;  %v2684_v28 = vmul.f32 1.442695, %v2665_v22  ;;  %v4773_v55 = vmax.f32 %v1962_v45, %v1866_v33  ;;  %v6425_v49 = vmax.f32 %v4583_v56, %v4585_v1  ;;  %v4783_v21 = vmax.f32 %v802_v57, %v1795_v24  ;;  %3334 = vmatpush3.msra.mxu0 %v2801_v39 }
 0x151   : > { %6424 = vst [vmem:[#allocation93_spill] sm:$0xff] %v4775_v40  ;;  %v1867_v54 = vmax.f32 %v915_v30, %v1851_v0  ;;  %v1764_v43 = vmul.f32 0.2, %v806_v34  ;;  %v6427_v9 = vmax.f32 %v4594_v15, %v4587_v13  ;;  %v1820_v56 = vmul.f32 0.2, %v919_v62  ;;  %v808_v45 = vpop.f32.mrf.mxu0  ;;  %3335 = vmatprep.subr.mxu0 %v2800_v31 }
 0x152   : > { %6423 = vst [vmem:[#allocation92_spill] sm:$0xff] %v4773_v55  ;;  %v4781_v51 = vmax.f32 %v6425_v49, %v4768_v11  ;;  %6426 = vst [vmem:[#allocation94_spill] sm:$0xff] %v4783_v21  ;;  %3421 = vpow2.f32 %v2684_v28  ;;  %v2666_v17 = vsub.f32 %v1866_v33, %v4773_v55  ;;  %v921_v49 = vpop.f32.mrf.mxu1  ;;  %v4793_v57 = vpop.eup %3413  ;;  %v1796_v0 = vmul.f32 0.2, %v808_v45  ;;  %3336 = vmatpush3.msra.mxu0 %v2800_v31 }
 0x153   : > { %v1963_v22 = vmax.f32 %v6427_v9, %v4775_v40  ;;  %6428 = vst [vmem:[#allocation95_spill] sm:$0xff] %v4793_v57  ;;  %v4797_v24 = vmax.f32 %v806_v34, %v1764_v43  ;;  %v1852_v39 = vmul.f32 0.2, %v921_v49  ;;  %v4801_v11 = vmax.f32 %v919_v62, %v1820_v56  ;;  %v812_v15 = vpop.f32.mrf.mxu0  ;;  %v4803_v40 = vpop.eup %3415  ;;  %v2799_v62 = vld [vmem:[%s6128_s2 + $0x48] sm:$0xff] }
 0x154   : > { %v2686_v33 = vmul.f32 1.442695, %v2666_v17  ;;  %v925_v9 = vpop.f32.mrf.mxu1  ;;  %3423 = vpow2.f32 %v2102_v5  ;;  %v6431_v57 = vmax.f32 %v4610_v44, %v4612_v63  ;;  %v4811_v43 = vmax.f32 %v808_v45, %v1796_v0  ;;  %3337 = vmatprep.subr.mxu0 %v2799_v62 }
 0x155   : > { %6429 = vst [vmem:[#allocation96_spill] sm:$0xff] %v4797_v24  ;;  %v4799_v28 = vmax.f32 %v1963_v22, %v1867_v54  ;;  %6430 = vst [vmem:[#allocation97_spill] sm:$0xff] %v4801_v11  ;;  %v1868_v34 = vmax.f32 %v921_v49, %v1852_v39  ;;  %v1765_v31 = vmul.f32 0.2, %v812_v15  ;;  %v6433_v5 = vmax.f32 %v4620_v6, %v4614_v23  ;;  %v814_v44 = vpop.f32.mrf.mxu0 }
 0x156   : > { %v4809_v30 = vmax.f32 %v6431_v57, %v4797_v24  ;;  %6432 = vst [vmem:[#allocation98_spill] sm:$0xff] %v4811_v43  ;;  %3425 = vpow2.f32 %v2686_v33  ;;  %v1821_v56 = vmul.f32 0.2, %v925_v9  ;;  %v927_v57 = vpop.f32.mrf.mxu1  ;;  %v4821_v45 = vpop.eup %3417  ;;  %v1797_v39 = vmul.f32 0.2, %v814_v44  ;;  %3338 = vmatpush3.msra.mxu0 %v2799_v62 }
 0x157   : > { %v2667_v17 = vsub.f32 %v1867_v54, %v4799_v28  ;;  %v1964_v22 = vmax.f32 %v6433_v5, %v4801_v11  ;;  %6434 = vst [vmem:[#allocation99_spill] sm:$0xff] %v4821_v45  ;;  %v4825_v0 = vmax.f32 %v812_v15, %v1765_v31  ;;  %v1853_v33 = vmul.f32 0.2, %v927_v57  ;;  %v1044_v5 = vpop.f32.mrf.mxu0  ;;  %v2798_v45 = vld [vmem:[%s6128_s2 + $0x40] sm:$0xff] }
 0x158   : > { %v4829_v63 = vmax.f32 %v925_v9, %v1821_v56  ;;  %v931_v6 = vpop.f32.mrf.mxu1  ;;  %v1991_v11 = vsub.f32 %v4232_v7, %v4696_v42  ;;  %v6438_v15 = vmax.f32 %v4634_v61, %v4636_v12  ;;  %v4842_v62 = vmax.f32 %v814_v44, %v1797_v39  ;;  %3339 = vmatprep.subr.mxu0 %v2798_v45  ;;  %v2797_v44 = vld [vmem:[%s6128_s2 + $0x38] sm:$0xff] }
 0x159   : > { %6435 = vst [vmem:[#allocation100_spill] sm:$0xff] %v4825_v0  ;;  %v2688_v54 = vmul.f32 1.442695, %v2667_v17  ;;  %v4827_v24 = vmax.f32 %v1964_v22, %v1868_v34  ;;  %v1869_v17 = vmax.f32 %v927_v57, %v1853_v33  ;;  %v1822_v9 = vmul.f32 0.2, %v931_v6  ;;  %v1046_v61 = vpop.f32.mrf.mxu0  ;;  %3340 = vmatpush3.msra.mxu0 %v2798_v45 }
 0x15a   : > { %6437 = vst [vmem:[#allocation102_spill] sm:$0xff] %v4829_v63  ;;  %v4840_v31 = vmax.f32 %v6438_v15, %v4825_v0  ;;  %6439 = vst [vmem:[#allocation103_spill] sm:$0xff] %v4842_v62  ;;  %v6440_v7 = vmax.f32 %v4644_v47, %v4638_v16  ;;  %v4850_v49 = vmul.f32 %v4803_v40, %v1044_v5  ;;  %v933_v23 = vpop.f32.mrf.mxu1  ;;  %v2008_v47 = vmul.f32 1.442695, %v1991_v11 }
 0x15b   : > { %6436 = vst [vmem:[#allocation101_spill] sm:$0xff] %v4827_v24  ;;  %3427 = vpow2.f32 %v2688_v54  ;;  %v2668_v22 = vsub.f32 %v1868_v34, %v4827_v24  ;;  %v4859_v39 = vmax.f32 %v931_v6, %v1822_v9  ;;  %v1854_v33 = vmul.f32 0.2, %v933_v23  ;;  %3341 = vmatprep.subr.mxu0 %v2797_v44  ;;  %v2796_v6 = vld [vmem:[%s6128_s2 + $0x30] sm:$0xff] }
 0x15c   : > { %v1965_v56 = vmax.f32 %v6440_v7, %v4829_v63  ;;  %v4855_v57 = vpop.eup %3419  ;;  %v937_v15 = vpop.f32.mrf.mxu1  ;;  %v2087_v45 = vsub.f32 %v4242_v19, %v4696_v42  ;;  %v1992_v63 = vsub.f32 %v4246_v25, %v4720_v35  ;;  %3342 = vmatpush3.msra.mxu0 %v2797_v44  ;;  %v6443_v11 = vmax.f32 %v4658_v29, %v4660_v48 }
 0x15d   : > { %6441 = vst [vmem:[#allocation104_spill] sm:$0xff] %v4855_v57  ;;  %6442 = vst [vmem:[#allocation105_spill] sm:$0xff] %v4859_v39  ;;  %v2690_v54 = vmul.f32 1.442695, %v2668_v22  ;;  %v4863_v7 = vpop.f32.mrf.mxu0  ;;  %v1870_v22 = vmax.f32 %v933_v23, %v1854_v33  ;;  %3429 = vpow2.f32 %v2008_v47  ;;  %3343 = vmatprep.subr.mxu0 %v2796_v6  ;;  %v2088_v23 = vsub.f32 %v4258_v36, %v4720_v35 }
 0x15e   : > { %v4861_v5 = vmax.f32 %v1965_v56, %v1869_v17  ;;  %v1966_v9 = vmax.f32 %v6443_v11, %v4859_v39  ;;  %v1823_v56 = vmul.f32 0.2, %v937_v15  ;;  %v939_v34 = vpop.f32.mrf.mxu1  ;;  %v2104_v25 = vmul.f32 1.442695, %v2087_v45  ;;  %3344 = vmatpush3.msra.mxu0 %v2796_v6 }
 0x15f   : > { %3431 = vpow2.f32 %v2690_v54  ;;  %v4877_v0 = vpop.f32.mrf.mxu0  ;;  %v2010_v44 = vmul.f32 1.442695, %v1992_v63  ;;  %v4879_v57 = vpop.eup %3421  ;;  %v1855_v29 = vmul.f32 0.2, %v939_v34  ;;  %v1993_v54 = vsub.f32 %v4268_v46, %v4744_v18 }
 0x160   : > { %v2669_v19 = vsub.f32 %v1869_v17, %v4861_v5  ;;  %6444 = vst [vmem:[#allocation106_spill] sm:$0xff] %v4879_v57  ;;  %v4881_v16 = vmax.f32 %v1966_v9, %v1870_v22  ;;  %v4883_v12 = vmax.f32 %v937_v15, %v1823_v56  ;;  %3433 = vpow2.f32 %v2104_v25  ;;  %v943_v47 = vpop.f32.mrf.mxu1  ;;  %v2795_v15 = vld [vmem:[%s6128_s2 + $0x28] sm:$0xff] }
 0x161   : > { %v4887_v17 = vpop.f32.mrf.mxu0  ;;  %v2089_v63 = vsub.f32 %v4278_v59, %v4744_v18  ;;  %v3424_v45 = vpop.eup %3423  ;;  %v6447_v36 = vmax.f32 %v4678_v27, %v4680_v32  ;;  %v1871_v9 = vmax.f32 %v939_v34, %v1855_v29  ;;  %v1824_v56 = vmul.f32 0.2, %v943_v47  ;;  %3345 = vmatprep.subr.mxu0 %v2795_v15 }
 0x162   : > { %6445 = vst [vmem:[#allocation107_spill] sm:$0xff] %v4881_v16  ;;  %6446 = vst [vmem:[#allocation108_spill] sm:$0xff] %v4883_v12  ;;  %v2692_v33 = vmul.f32 1.442695, %v2669_v19  ;;  %v2670_v6 = vsub.f32 %v1870_v22, %v4881_v16  ;;  %v4902_v46 = vadd.f32 %v3424_v45, %v4803_v40  ;;  %v2150_v59 = vmul.f32 %v3424_v45, %v1046_v61  ;;  %v945_v19 = vpop.f32.mrf.mxu1  ;;  %v2794_v22 = vld [vmem:[%s6128_s2 + $0x20] sm:$0xff] }
 0x163   : > { %v1967_v11 = vmax.f32 %v6447_v36, %v4883_v12  ;;  %v4904_v25 = vpop.f32.mrf.mxu0  ;;  %v2106_v39 = vmul.f32 1.442695, %v2088_v23  ;;  %3346 = vmatpush3.msra.mxu0 %v2795_v15  ;;  %v4909_v57 = vpop.eup %3425  ;;  %v4913_v29 = vmax.f32 %v943_v47, %v1824_v56  ;;  %v1856_v61 = vmul.f32 0.2, %v945_v19 }
 0x164   : > { %3435 = vpow2.f32 %v2692_v33  ;;  %6448 = vst [vmem:[#allocation109_spill] sm:$0xff] %v4902_v46  ;;  %6449 = vst [vmem:[#allocation110_spill] sm:$0xff] %v4909_v57  ;;  %v2694_v27 = vmul.f32 1.442695, %v2670_v6  ;;  %3347 = vmatprep.subr.mxu0 %v2794_v22  ;;  %v4916_v40 = vadd.f32 %v2150_v59, %v4850_v49  ;;  %v949_v23 = vpop.f32.mrf.mxu1  ;;  %v2012_v15 = vmul.f32 1.442695, %v1993_v54 }
 0x165   : > { %v4911_v34 = vmax.f32 %v1967_v11, %v1871_v9  ;;  %6451 = vst [vmem:[#allocation112_spill] sm:$0xff] %v4913_v29  ;;  %3437 = vpow2.f32 %v2010_v44  ;;  %v4918_v33 = vpop.f32.mrf.mxu0  ;;  %3348 = vmatpush3.msra.mxu0 %v2794_v22  ;;  %v6452_v47 = vmax.f32 %v4704_v50, %v4706_v20  ;;  %v1825_v44 = vmul.f32 0.2, %v949_v23  ;;  %v2793_v49 = vld [vmem:[%s6128_s2 + $0x18] sm:$0xff] }
 0x166   : > { %3439 = vpow2.f32 %v2106_v39  ;;  %v1872_v36 = vmax.f32 %v945_v19, %v1856_v61  ;;  %v951_v39 = vpop.f32.mrf.mxu1  ;;  %v2108_v54 = vmul.f32 1.442695, %v2089_v63  ;;  %v1994_v56 = vsub.f32 %v4316_v53, %v4773_v55  ;;  %3349 = vmatprep.subr.mxu0 %v2793_v49  ;;  %v6456_v53 = vld [vmem:[#allocation19_spill] sm:$0xff] }
 0x167   : > { %6450 = vst [vmem:[#allocation111_spill] sm:$0xff] %v4911_v34  ;;  %3441 = vpow2.f32 %v2694_v27  ;;  %v2671_v45 = vsub.f32 %v1871_v9, %v4911_v34  ;;  %v1968_v6 = vmax.f32 %v6452_v47, %v4913_v29  ;;  %v4928_v11 = vpop.f32.mrf.mxu0  ;;  %v4934_v50 = vmax.f32 %v949_v23, %v1825_v44  ;;  %3350 = vmatpush3.msra.mxu0 %v2793_v49 }
 0x168   : > { %3443 = vpow2.f32 %v2012_v15  ;;  %v4932_v9 = vpop.eup %3427  ;;  %v1857_v22 = vmul.f32 0.2, %v951_v39  ;;  %v2090_v27 = vsub.f32 %v4318_v2, %v4773_v55  ;;  %v955_v61 = vpop.f32.mrf.mxu1  ;;  %v2014_v63 = vmul.f32 1.442695, %v1994_v56 }
 0x169   : > { %6453 = vst [vmem:[#allocation113_spill] sm:$0xff] %v4932_v9  ;;  %v2696_v59 = vmul.f32 1.442695, %v2671_v45  ;;  %6454 = vst [vmem:[#allocation114_spill] sm:$0xff] %v4934_v50  ;;  %v4938_v19 = vmax.f32 %v1968_v6, %v1872_v36  ;;  %3445 = vpow2.f32 %v2108_v54  ;;  %v4940_v15 = vpop.f32.mrf.mxu0  ;;  %v1995_v47 = vsub.f32 %v6456_v53, %v4799_v28 }
 0x16a   : > { %v6457_v23 = vmax.f32 %v4728_v4, %v4730_v37  ;;  %v1873_v44 = vmax.f32 %v951_v39, %v1857_v22  ;;  %v1826_v29 = vmul.f32 0.2, %v955_v61  ;;  %v3430_v2 = vpop.eup %3429  ;;  %v957_v49 = vpop.f32.mrf.mxu1  ;;  %v2110_v12 = vmul.f32 1.442695, %v2090_v27 }
 0x16b   : > { %6455 = vst [vmem:[#allocation115_spill] sm:$0xff] %v4938_v19  ;;  %3447 = vpow2.f32 %v2696_v59  ;;  %v2672_v6 = vsub.f32 %v1872_v36, %v4938_v19  ;;  %v4949_v54 = vpop.f32.mrf.mxu0  ;;  %v1858_v53 = vmul.f32 0.2, %v957_v49  ;;  %v2016_v57 = vmul.f32 1.442695, %v1995_v47  ;;  %v6461_v36 = vld [vmem:[#allocation20_spill] sm:$0xff] }
 0x16c   : > { %v1969_v45 = vmax.f32 %v6457_v23, %v4934_v50  ;;  %3449 = vpow2.f32 %v2014_v63  ;;  %v4951_v56 = vpop.eup %3431  ;;  %v4955_v59 = vmax.f32 %v955_v61, %v1826_v29  ;;  %v961_v39 = vpop.f32.mrf.mxu1  ;;  %v2091_v63 = vsub.f32 %v6461_v36, %v4799_v28  ;;  %v6462_v23 = vld [vmem:[#allocation22_spill] sm:$0xff] }
 0x16d   : > { %6458 = vst [vmem:[#allocation19_spill] sm:$0xff] %v4951_v56  ;;  %v2698_v4 = vmul.f32 1.442695, %v2672_v6  ;;  %3451 = vpow2.f32 %v2110_v12  ;;  %v4957_v22 = vpop.f32.mrf.mxu0  ;;  %v1996_v50 = vsub.f32 %v6462_v23, %v4827_v24  ;;  %v3434_v27 = vpop.eup %3433  ;;  %v6463_v29 = vmax.f32 %v4757_v52, %v4759_v58 }
 0x16e   : > { %v4953_v9 = vmax.f32 %v1969_v45, %v1873_v44  ;;  %6460 = vst [vmem:[#allocation117_spill] sm:$0xff] %v4955_v59  ;;  %v4968_v47 = vmax.f32 %v957_v49, %v1858_v53  ;;  %v1827_v12 = vmul.f32 0.2, %v961_v39  ;;  %v2055_v45 = vmul.f32 %v3430_v2, %v4863_v7  ;;  %v963_v37 = vpop.f32.mrf.mxu1 }
 0x16f   : > { %v1970_v61 = vmax.f32 %v6463_v29, %v4955_v59  ;;  %v4971_v6 = vadd.f32 %v3434_v27, %v3430_v2  ;;  %v2151_v36 = vmul.f32 %v3434_v27, %v4877_v0  ;;  %v4974_v20 = vpop.f32.mrf.mxu0  ;;  %v2112_v23 = vmul.f32 1.442695, %v2091_v63 }
 0x170   : > { %6459 = vst [vmem:[#allocation116_spill] sm:$0xff] %v4953_v9  ;;  %v2673_v56 = vsub.f32 %v1873_v44, %v4953_v9  ;;  %v4981_v52 = vmax.f32 %v961_v39, %v1827_v12  ;;  %3453 = vpow2.f32 %v2016_v57  ;;  %v1859_v7 = vmul.f32 0.2, %v963_v37  ;;  %v967_v2 = vpop.f32.mrf.mxu1 }
 0x171   : > { %v4976_v46 = vpop.eup %3435  ;;  %v4979_v32 = vmax.f32 %v1970_v61, %v4968_v47  ;;  %v4983_v53 = vadd.f32 %v2151_v36, %v2055_v45  ;;  %3455 = vpow2.f32 %v2112_v23  ;;  %v4985_v0 = vpop.f32.mrf.mxu0  ;;  %v2018_v27 = vmul.f32 1.442695, %v1996_v50 }
 0x172   : > { %6464 = vst [vmem:[#allocation20_spill] sm:$0xff] %v4976_v46  ;;  %v2700_v44 = vmul.f32 1.442695, %v2673_v56  ;;  %6466 = vst [vmem:[#allocation118_spill] sm:$0xff] %v4981_v52  ;;  %v3438_v49 = vpop.eup %3437  ;;  %3457 = vpow2.f32 %v2698_v4  ;;  %v6467_v57 = vmax.f32 %v4781_v51, %v4783_v21  ;;  %v1875_v36 = vmax.f32 %v963_v37, %v1859_v7  ;;  %v969_v23 = vpop.f32.mrf.mxu1 }
 0x173   : > { %6465 = vst [vmem:[#allocation22_spill] sm:$0xff] %v4979_v32  ;;  %v3440_v29 = vpop.eup %3439  ;;  %v2056_v63 = vmul.f32 %v3438_v49, %v4887_v17  ;;  %v2674_v56 = vsub.f32 %v4968_v47, %v4979_v32  ;;  %v1828_v50 = vmul.f32 0.2, %v967_v2  ;;  %v4999_v59 = vpop.f32.mrf.mxu0  ;;  %3459 = vpow2.f32 %v2018_v27  ;;  %v6470_v47 = vld [vmem:[#allocation23_spill] sm:$0xff] }
 0x174   : > { %v1971_v39 = vmax.f32 %v6467_v57, %v4981_v52  ;;  %v4994_v61 = vpop.eup %3441  ;;  %v4996_v12 = vadd.f32 %v3440_v29, %v3438_v49  ;;  %v2152_v45 = vmul.f32 %v3440_v29, %v4904_v25  ;;  %v1860_v4 = vmul.f32 0.2, %v969_v23  ;;  %v973_v57 = vpop.f32.mrf.mxu1 }
 0x175   : > { %6468 = vst [vmem:[#allocation119_spill] sm:$0xff] %v4994_v61  ;;  %v3444_v17 = vpop.eup %3443  ;;  %v2092_v46 = vsub.f32 %v6470_v47, %v4827_v24  ;;  %3461 = vpow2.f32 %v2700_v44  ;;  %v5007_v49 = vmax.f32 %v967_v2, %v1828_v50  ;;  %v5009_v25 = vpop.f32.mrf.mxu0  ;;  %v1829_v52 = vmul.f32 0.2, %v973_v57  ;;  %v2791_v44 = vld [vmem:[%s6128_s2 + $0x8] sm:$0xff] }
 0x176   : > { %6469 = vst [vmem:[#allocation120_spill] sm:$0xff] %v4996_v12  ;;  %v5003_v58 = vadd.f32 %v2152_v45, %v2056_v63  ;;  %v5005_v51 = vmax.f32 %v1971_v39, %v1875_v36  ;;  %v3446_v37 = vpop.eup %3445  ;;  %v2057_v7 = vmul.f32 %v3444_v17, %v4918_v33  ;;  %v5012_v29 = vmax.f32 %v969_v23, %v1860_v4  ;;  %v2792_v63 = vld [vmem:[%s6128_s2 + $0x10] sm:$0xff]  ;;  %v975_v23 = vpop.f32.mrf.mxu1 }
 0x177   : > { %6472 = vst [vmem:[#allocation121_spill] sm:$0xff] %v5007_v49  ;;  %v2114_v27 = vmul.f32 1.442695, %v2092_v46  ;;  %v5022_v39 = vadd.f32 %v3446_v37, %v3444_v17  ;;  %v2153_v45 = vmul.f32 %v3446_v37, %v4928_v11  ;;  %v6474_v46 = vmax.f32 %v4809_v30, %v4811_v43  ;;  %v5030_v4 = vpop.f32.mrf.mxu0  ;;  %3351 = vmatprep.subr.mxu0 %v2792_v63  ;;  %v6476_v17 = vld [vmem:[#allocation27_spill] sm:$0xff]  ;;  %v2790_v11 = vld [vmem:[%s6128_s2] sm:$0xff] }
 0x178   : > { %6471 = vst [vmem:[#allocation23_spill] sm:$0xff] %v5005_v51  ;;  %v5020_v2 = vpop.eup %3447  ;;  %v2675_v33 = vsub.f32 %v1875_v36, %v5005_v51  ;;  %v5032_v61 = vmax.f32 %v973_v57, %v1829_v52  ;;  %v1861_v21 = vmul.f32 0.2, %v975_v23  ;;  %3352 = vmatpush3.msra.mxu0 %v2792_v63  ;;  %v2702_v37 = vmul.f32 1.442695, %v2674_v56  ;;  %v5047_v52 = vpop.f32.mrf.mxu1 }
 0x179   : > { %6473 = vst [vmem:[#allocation122_spill] sm:$0xff] %v5020_v2  ;;  %v1972_v50 = vmax.f32 %v6474_v46, %v5007_v49  ;;  %v3450_v47 = vpop.eup %3449  ;;  %3463 = vpow2.f32 %v2114_v27  ;;  %v1997_v2 = vsub.f32 %v6476_v17, %v4861_v5  ;;  %v5039_v36 = vadd.f32 %v2153_v45, %v2057_v7  ;;  %v5045_v27 = vpop.f32.mrf.mxu0  ;;  %3353 = vmatprep.subr.mxu0 %v2791_v44 }
 0x17a   : > { %6475 = vst [vmem:[#allocation123_spill] sm:$0xff] %v5032_v61  ;;  %v2058_v30 = vmul.f32 %v3450_v47, %v4940_v15  ;;  %v3452_v57 = vpop.eup %3451  ;;  %v6478_v63 = vmax.f32 %v4840_v31, %v4842_v62  ;;  %v5053_v7 = vmax.f32 %v975_v23, %v1861_v21  ;;  %v6480_v15 = vld [vmem:[#allocation28_spill] sm:$0xff]  ;;  %3354 = vmatpush3.msra.mxu0 %v2791_v44  ;;  %v2704_v43 = vmul.f32 1.442695, %v2675_v33  ;;  %v5064_v13 = vpop.f32.mrf.mxu1  ;;  %v6484_v23 = vld [vmem:[#allocation31_spill] sm:$0xff] }
 0x17b   : > { %v5043_v46 = vmax.f32 %v1972_v50, %v5012_v29  ;;  %v2020_v49 = vmul.f32 1.442695, %v1997_v2  ;;  %v2093_v56 = vsub.f32 %v6480_v15, %v4861_v5  ;;  %v5057_v45 = vadd.f32 %v3452_v57, %v3450_v47  ;;  %v5062_v48 = vpop.f32.mrf.mxu0  ;;  %3355 = vmatprep.subr.mxu0 %v2790_v11 }
 0x17c   : > { %v1973_v17 = vmax.f32 %v6478_v63, %v5032_v61  ;;  %6479 = vst [vmem:[#allocation124_spill] sm:$0xff] %v5053_v7  ;;  %v2154_v50 = vmul.f32 %v3452_v57, %v4949_v54  ;;  %v1998_v44 = vsub.f32 %v4406_v8, %v4881_v16  ;;  %3356 = vmatpush3.msra.mxu0 %v2790_v11 }
 0x17d   : > { %6477 = vst [vmem:[#allocation27_spill] sm:$0xff] %v5043_v46  ;;  %6481 = vst [vmem:[#allocation28_spill] sm:$0xff] %v5057_v45  ;;  %v2676_v12 = vsub.f32 %v5012_v29, %v5043_v46  ;;  %3465 = vpow2.f32 %v2020_v49  ;;  %v2116_v31 = vmul.f32 1.442695, %v2093_v56  ;;  %v3454_v2 = vpop.eup %3453  ;;  %v6483_v29 = vld [vmem:[#allocation13_spill] sm:$0xff]  ;;  %v2094_v47 = vsub.f32 %v6484_v23, %v4881_v16  ;;  %v5077_v57 = vpop.f32.mrf.mxu0 }
 0x17e   : > { %v5067_v21 = vmax.f32 %v1973_v17, %v5053_v7  ;;  %3467 = vpow2.f32 %v2702_v37  ;;  %v5071_v54 = vadd.f32 %v2154_v50, %v2058_v30  ;;  %v2182_v33 = vsub.f32 %v6483_v29, %v4670_v60  ;;  %v5079_v49 = vpop.f32.mrf.mxu1  ;;  %v3456_v63 = vpop.eup %3455 }
 0x17f   : > { %v2059_v17 = vmul.f32 %v3454_v2, %v4957_v22  ;;  %3469 = vpow2.f32 %v2116_v31  ;;  %v2022_v11 = vmul.f32 1.442695, %v1998_v44  ;;  %v5084_v30 = vpop.eup %3457  ;;  %v5086_v37 = vadd.f32 %v3456_v63, %v3454_v2  ;;  %v5089_v50 = vpop.f32.mrf.mxu0  ;;  %v6487_v2 = vld [vmem:[#allocation14_spill] sm:$0xff] }
 0x180   : > { %6482 = vst [vmem:[#allocation125_spill] sm:$0xff] %v5067_v21  ;;  %6485 = vst [vmem:[#allocation13_spill] sm:$0xff] %v5084_v30  ;;  %3471 = vpow2.f32 %v2704_v43  ;;  %v2155_v15 = vmul.f32 %v3456_v63, %v4974_v20  ;;  %v2198_v56 = vmul.f32 1.442695, %v2182_v33  ;;  %v5091_v29 = vpop.f32.mrf.mxu1  ;;  %v2118_v23 = vmul.f32 1.442695, %v2094_v47  ;;  %v3460_v8 = vpop.eup %3459 }
 0x181   : > { %3473 = vpow2.f32 %v2022_v11  ;;  %v2278_v22 = vsub.f32 %v4295_v14, %v4670_v60  ;;  %v6486_v43 = vld [vmem:[#allocation33_spill] sm:$0xff]  ;;  %v2183_v20 = vsub.f32 %v6487_v2, %v4696_v42  ;;  %v5101_v33 = vpop.f32.mrf.mxu0  ;;  %v2060_v47 = vmul.f32 %v3460_v8, %v4985_v0  ;;  %v6491_v30 = vld [vmem:[#allocation15_spill] sm:$0xff]  ;;  %v6492_v0 = vld [vmem:[#allocation36_spill] sm:$0xff] }
 0x182   : > { %v5095_v31 = vadd.f32 %v2155_v15, %v2059_v17  ;;  %3475 = vpow2.f32 %v2198_v56  ;;  %v1999_v44 = vsub.f32 %v6486_v43, %v4911_v34  ;;  %v5103_v63 = vpop.f32.mrf.mxu1  ;;  %v5105_v61 = vpop.eup %3461  ;;  %v5108_v11 = vmul.f32 1.442695, %v2676_v12  ;;  %v6490_v17 = vld [vmem:[#allocation34_spill] sm:$0xff] }
 0x183   : > { %6488 = vst [vmem:[#allocation31_spill] sm:$0xff] %v5105_v61  ;;  %v2294_v14 = vmul.f32 1.442695, %v2278_v22  ;;  %v2095_v15 = vsub.f32 %v6490_v17, %v4911_v34  ;;  %3477 = vpow2.f32 %v2118_v23  ;;  %v2200_v43 = vmul.f32 1.442695, %v2183_v20  ;;  %v5114_v7 = vpop.f32.mrf.mxu0  ;;  %v6493_v22 = vld [vmem:[#allocation16_spill] sm:$0xff] }
 0x184   : > { %6489 = vst [vmem:[#allocation33_spill] sm:$0xff] %v5108_v11  ;;  %v2024_v56 = vmul.f32 1.442695, %v1999_v44  ;;  %v2279_v2 = vsub.f32 %v6491_v30, %v4696_v42  ;;  %v5116_v62 = vpop.f32.mrf.mxu1  ;;  %v2000_v12 = vsub.f32 %v6492_v0, %v4938_v19  ;;  %v2184_v45 = vsub.f32 %v6493_v22, %v4720_v35  ;;  %v6494_v44 = vld [vmem:[#allocation37_spill] sm:$0xff] }
 0x185   : > { %3479 = vpow2.f32 %v2294_v14  ;;  %v2120_v61 = vmul.f32 1.442695, %v2095_v15  ;;  %v2096_v20 = vsub.f32 %v6494_v44, %v4938_v19  ;;  %v6495_v30 = vld [vmem:[#allocation17_spill] sm:$0xff]  ;;  %v5126_v1 = vpop.f32.mrf.mxu0 }
 0x186   : > { %v3464_v11 = vpop.eup %3463  ;;  %3481 = vpow2.f32 %v2024_v56  ;;  %v2296_v23 = vmul.f32 1.442695, %v2279_v2  ;;  %v2280_v17 = vsub.f32 %v6495_v30, %v4720_v35  ;;  %v5128_v41 = vpop.f32.mrf.mxu1  ;;  %v2026_v0 = vmul.f32 1.442695, %v2000_v12  ;;  %v6498_v30 = vld [vmem:[#allocation43_spill] sm:$0xff] }
 0x187   : > { %v5130_v14 = vadd.f32 %v3464_v11, %v3460_v8  ;;  %v2156_v15 = vmul.f32 %v3464_v11, %v4999_v59  ;;  %3483 = vpow2.f32 %v2200_v43  ;;  %v2202_v22 = vmul.f32 1.442695, %v2184_v45  ;;  %v5133_v38 = vpop.f32.mrf.mxu0  ;;  %v6499_v8 = vld [vmem:[#allocation18_spill] sm:$0xff]  ;;  %v6501_v11 = vld [vmem:[#allocation21_spill] sm:$0xff] }
 0x188   : > { %3485 = vpow2.f32 %v2120_v61  ;;  %v2122_v56 = vmul.f32 1.442695, %v2096_v20  ;;  %v2298_v2 = vmul.f32 1.442695, %v2280_v17  ;;  %v5135_v44 = vpop.f32.mrf.mxu1  ;;  %v2001_v10 = vsub.f32 %v6498_v30, %v4953_v9  ;;  %v6500_v61 = vld [vmem:[#allocation44_spill] sm:$0xff] }
 0x189   : > { %6496 = vst [vmem:[#allocation14_spill] sm:$0xff] %v5130_v14  ;;  %v5137_v3 = vadd.f32 %v2156_v15, %v2060_v47  ;;  %3487 = vpow2.f32 %v2296_v23  ;;  %v2185_v14 = vsub.f32 %v6499_v8, %v4744_v18  ;;  %v2097_v45 = vsub.f32 %v6500_v61, %v4953_v9  ;;  %v5147_v12 = vpop.f32.mrf.mxu0  ;;  %v6502_v47 = vld [vmem:[#allocation5_spill] sm:$0xff] }
 0x18a   : > { %v3466_v59 = vpop.eup %3465  ;;  %3489 = vpow2.f32 %v2026_v0  ;;  %v2281_v43 = vsub.f32 %v6501_v11, %v4744_v18  ;;  %v2002_v20 = vsub.f32 %v6502_v47, %v4979_v32  ;;  %v5151_v23 = vpop.f32.mrf.mxu1  ;;  %v2028_v30 = vmul.f32 1.442695, %v2001_v10 }
 0x18b   : > { %6497 = vst [vmem:[#allocation34_spill] sm:$0xff] %v5137_v3  ;;  %v5153_v17 = vpop.eup %3467  ;;  %v2061_v15 = vmul.f32 %v3466_v59, %v5009_v25  ;;  %3491 = vpow2.f32 %v2202_v22  ;;  %v2204_v0 = vmul.f32 1.442695, %v2185_v14  ;;  %v2124_v61 = vmul.f32 1.442695, %v2097_v45  ;;  %v5156_v11 = vpop.f32.mrf.mxu0  ;;  %v6506_v25 = vld [vmem:[#allocation24_spill] sm:$0xff] }
 0x18c   : > { %6503 = vst [vmem:[#allocation15_spill] sm:$0xff] %v5153_v17  ;;  %v3470_v8 = vpop.eup %3469  ;;  %3493 = vpow2.f32 %v2122_v56  ;;  %v2300_v9 = vmul.f32 1.442695, %v2281_v43  ;;  %v2030_v35 = vmul.f32 1.442695, %v2002_v20  ;;  %v5158_v18 = vpop.f32.mrf.mxu1  ;;  %v2186_v10 = vsub.f32 %v6506_v25, %v4773_v55  ;;  %v6507_v22 = vld [vmem:[#allocation6_spill] sm:$0xff] }
 0x18d   : > { %v5160_v3 = vpop.eup %3471  ;;  %v5162_v47 = vadd.f32 %v3470_v8, %v3466_v59  ;;  %v2157_v17 = vmul.f32 %v3470_v8, %v5030_v4  ;;  %3495 = vpow2.f32 %v2298_v2  ;;  %v2098_v56 = vsub.f32 %v6507_v22, %v4979_v32  ;;  %v6508_v45 = vld [vmem:[#allocation25_spill] sm:$0xff]  ;;  %v5171_v20 = vpop.f32.mrf.mxu0 }
 0x18e   : > { %6504 = vst [vmem:[#allocation36_spill] sm:$0xff] %v5160_v3  ;;  %v3474_v14 = vpop.eup %3473  ;;  %3497 = vpow2.f32 %v2028_v30  ;;  %v2282_v43 = vsub.f32 %v6508_v45, %v4773_v55  ;;  %v6509_v3 = vld [vmem:[#allocation7_spill] sm:$0xff]  ;;  %v2206_v30 = vmul.f32 1.442695, %v2186_v10 }
 0x18f   : > { %6505 = vst [vmem:[#allocation16_spill] sm:$0xff] %v5162_v47  ;;  %v2003_v59 = vsub.f32 %v6509_v3, %v5005_v51  ;;  %v5175_v47 = vpop.f32.mrf.mxu1  ;;  %v5177_v4 = vpop.eup %3475  ;;  %v5179_v2 = vadd.f32 %v2157_v17, %v2061_v15  ;;  %v2062_v8 = vmul.f32 %v3474_v14, %v5045_v27  ;;  %3499 = vpow2.f32 %v2204_v0  ;;  %v6512_v17 = vld [vmem:[#allocation26_spill] sm:$0xff]  ;;  %v6513_v27 = vld [vmem:[#allocation8_spill] sm:$0xff] }
 0x190   : > { %6510 = vst [vmem:[#allocation37_spill] sm:$0xff] %v5177_v4  ;;  %v2246_v25 = vmul.f32 %v5177_v4, %v5047_v52  ;;  %3501 = vpow2.f32 %v2124_v61  ;;  %v2126_v22 = vmul.f32 1.442695, %v2098_v56  ;;  %v2302_v45 = vmul.f32 1.442695, %v2282_v43  ;;  %v5184_v55 = vpop.f32.mrf.mxu0  ;;  %v3478_v3 = vpop.eup %3477 }
 0x191   : > { %6511 = vst [vmem:[#allocation17_spill] sm:$0xff] %v5179_v2  ;;  %v5186_v32 = vpop.f32.mrf.mxu1  ;;  %3503 = vpow2.f32 %v2300_v9  ;;  %v2032_v19 = vmul.f32 1.442695, %v2003_v59  ;;  %v2187_v15 = vsub.f32 %v6512_v17, %v4799_v28  ;;  %v2099_v0 = vsub.f32 %v6513_v27, %v5005_v51 }
 0x192   : > { %v5192_v10 = vpop.eup %3479  ;;  %v2262_v52 = vadd.f32 %v2246_v25, %v4916_v40  ;;  %v5195_v61 = vadd.f32 %v3478_v3, %v3474_v14  ;;  %v2158_v56 = vmul.f32 %v3478_v3, %v5062_v48  ;;  %3505 = vpow2.f32 %v2030_v35  ;;  %v5198_v43 = vpop.f32.mrf.mxu0  ;;  %v6516_v48 = vld [vmem:[#allocation29_spill] sm:$0xff] }
 0x193   : > { %6514 = vst [vmem:[#allocation43_spill] sm:$0xff] %v5192_v10  ;;  %v5200_v4 = vpop.f32.mrf.mxu1  ;;  %v3482_v9 = vpop.eup %3481  ;;  %v2342_v59 = vmul.f32 %v5192_v10, %v5064_v13  ;;  %3507 = vpow2.f32 %v2206_v30  ;;  %v2208_v17 = vmul.f32 1.442695, %v2187_v15  ;;  %v2128_v27 = vmul.f32 1.442695, %v2099_v0 }
 0x194   : > { %6515 = vst [vmem:[#allocation18_spill] sm:$0xff] %v5195_v61  ;;  %v3484_v51 = vpop.eup %3483  ;;  %v5204_v2 = vadd.f32 %v2158_v56, %v2062_v8  ;;  %v2063_v40 = vmul.f32 %v3482_v9, %v5077_v57  ;;  %3509 = vpow2.f32 %v2126_v22  ;;  %v2283_v35 = vsub.f32 %v6516_v48, %v4799_v28  ;;  %v5209_v14 = vpop.f32.mrf.mxu0 }
 0x195   : > { %v5211_v25 = vpop.f32.mrf.mxu1  ;;  %v3486_v3 = vpop.eup %3485  ;;  %v5213_v61 = vadd.f32 %v2342_v59, %v2262_v52  ;;  %v5216_v13 = vadd.f32 %v3484_v51, %v4971_v6  ;;  %v2247_v30 = vmul.f32 %v3484_v51, %v5079_v49  ;;  %3511 = vpow2.f32 %v2302_v45  ;;  %v6519_v51 = vld [vmem:[#allocation9_spill] sm:$0xff] }
 0x196   : > { %v5219_v8 = vpop.eup %3487  ;;  %v5221_v57 = vadd.f32 %v3486_v3, %v3482_v9  ;;  %v2159_v22 = vmul.f32 %v3486_v3, %v5089_v50  ;;  %3513 = vpow2.f32 %v2032_v19  ;;  %v2304_v15 = vmul.f32 1.442695, %v2283_v35  ;;  %v5224_v0 = vpop.f32.mrf.mxu0  ;;  %v6521_v50 = vld [vmem:[#allocation30_spill] sm:$0xff] }
 0x197   : > { %6517 = vst [vmem:[#allocation44_spill] sm:$0xff] %v5216_v13  ;;  %6518 = vst [vmem:[#allocation21_spill] sm:$0xff] %v5219_v8  ;;  %v5226_v56 = vpop.f32.mrf.mxu1  ;;  %v3490_v52 = vpop.eup %3489  ;;  %v2263_v59 = vadd.f32 %v2247_v30, %v4983_v53  ;;  %v2343_v6 = vmul.f32 %v5219_v8, %v5091_v29  ;;  %3515 = vpow2.f32 %v2208_v17  ;;  %v2004_v49 = vsub.f32 %v6519_v51, %v5043_v46  ;;  %v6524_v51 = vld [vmem:[#allocation10_spill] sm:$0xff] }
 0x198   : > { %v5233_v45 = vpop.eup %3491  ;;  %v5235_v9 = vadd.f32 %v2159_v22, %v2063_v40  ;;  %v2064_v19 = vmul.f32 %v3490_v52, %v5101_v33  ;;  %3517 = vpow2.f32 %v2128_v27  ;;  %v2188_v48 = vsub.f32 %v6521_v50, %v4827_v24  ;;  %v5240_v35 = vpop.f32.mrf.mxu0 }
 0x199   : > { %6520 = vst [vmem:[#allocation5_spill] sm:$0xff] %v5233_v45  ;;  %v5242_v53 = vpop.f32.mrf.mxu1  ;;  %v3494_v3 = vpop.eup %3493  ;;  %v5244_v29 = vadd.f32 %v2343_v6, %v2263_v59  ;;  %v2248_v17 = vmul.f32 %v5233_v45, %v5103_v63  ;;  %3519 = vpow2.f32 %v2304_v15  ;;  %v2034_v30 = vmul.f32 1.442695, %v2004_v49  ;;  %v6525_v15 = vld [vmem:[#allocation32_spill] sm:$0xff] }
 0x19a   : > { %v5248_v40 = vpop.eup %3495  ;;  %v5250_v22 = vadd.f32 %v3494_v3, %v3490_v52  ;;  %v2160_v33 = vmul.f32 %v3494_v3, %v5114_v7  ;;  %v2210_v27 = vmul.f32 1.442695, %v2188_v48  ;;  %v2100_v50 = vsub.f32 %v6524_v51, %v5043_v46  ;;  %v5257_v8 = vpop.f32.mrf.mxu0 }
 0x19b   : > { %6522 = vst [vmem:[#allocation24_spill] sm:$0xff] %v5248_v40  ;;  %v5255_v10 = vpop.f32.mrf.mxu1  ;;  %v3498_v59 = vpop.eup %3497  ;;  %v2264_v6 = vadd.f32 %v2248_v17, %v5003_v58  ;;  %v2344_v63 = vmul.f32 %v5248_v40, %v5116_v62  ;;  %3521 = vpow2.f32 %v2034_v30  ;;  %v2284_v52 = vsub.f32 %v6525_v15, %v4827_v24 }
 0x19c   : > { %6523 = vst [vmem:[#allocation6_spill] sm:$0xff] %v5250_v22  ;;  %v3500_v49 = vpop.eup %3499  ;;  %v5264_v7 = vadd.f32 %v2160_v33, %v2064_v19  ;;  %v2065_v48 = vmul.f32 %v3498_v59, %v5126_v1  ;;  %3523 = vpow2.f32 %v2210_v27  ;;  %v2130_v3 = vmul.f32 1.442695, %v2100_v50  ;;  %v5269_v22 = vpop.f32.mrf.mxu0  ;;  %v6528_v33 = vld [vmem:[#allocation11_spill] sm:$0xff] }
 0x19d   : > { %v5267_v51 = vpop.f32.mrf.mxu1  ;;  %v3502_v45 = vpop.eup %3501  ;;  %v5271_v58 = vadd.f32 %v2344_v63, %v2264_v6  ;;  %v5274_v62 = vadd.f32 %v3500_v49, %v5022_v39  ;;  %v2249_v17 = vmul.f32 %v3500_v49, %v5128_v41  ;;  %v2306_v30 = vmul.f32 1.442695, %v2284_v52 }
 0x19e   : > { %v5277_v15 = vpop.eup %3503  ;;  %v5279_v19 = vadd.f32 %v3502_v45, %v3498_v59  ;;  %v2161_v1 = vmul.f32 %v3502_v45, %v5133_v38  ;;  %3525 = vpow2.f32 %v2130_v3  ;;  %v2005_v27 = vsub.f32 %v6528_v33, %v5067_v21  ;;  %v5286_v6 = vpop.f32.mrf.mxu0  ;;  %v6529_v59 = vld [vmem:[#allocation35_spill] sm:$0xff]  ;;  %v6531_v33 = vld [vmem:[#allocation12_spill] sm:$0xff] }
 0x19f   : > { %6526 = vst [vmem:[#allocation25_spill] sm:$0xff] %v5274_v62  ;;  %6527 = vst [vmem:[#allocation7_spill] sm:$0xff] %v5277_v15  ;;  %v5284_v50 = vpop.f32.mrf.mxu1  ;;  %v3506_v63 = vpop.eup %3505  ;;  %v2265_v39 = vadd.f32 %v2249_v17, %v5039_v36  ;;  %v2345_v41 = vmul.f32 %v5277_v15, %v5135_v44  ;;  %3527 = vpow2.f32 %v2306_v30  ;;  %v2189_v52 = vsub.f32 %v6529_v59, %v4861_v5 }
 0x1a0   : > { %v5293_v49 = vpop.eup %3507  ;;  %v5295_v38 = vadd.f32 %v2161_v1, %v2065_v48  ;;  %v2066_v45 = vmul.f32 %v3506_v63, %v5147_v12  ;;  %v2036_v3 = vmul.f32 1.442695, %v2005_v27  ;;  %v2101_v40 = vsub.f32 %v6531_v33, %v5067_v21  ;;  %v5302_v36 = vpop.f32.mrf.mxu0  ;;  %v6532_v48 = vld [vmem:[#allocation38_spill] sm:$0xff] }
 0x1a1   : > { %6530 = vst [vmem:[#allocation26_spill] sm:$0xff] %v5293_v49  ;;  %v5300_v62 = vpop.f32.mrf.mxu1  ;;  %v3510_v17 = vpop.eup %3509  ;;  %v5304_v44 = vadd.f32 %v2345_v41, %v2265_v39  ;;  %v2250_v30 = vmul.f32 %v5293_v49, %v5151_v23  ;;  %v2212_v59 = vmul.f32 1.442695, %v2189_v52  ;;  %v2285_v1 = vsub.f32 %v6532_v48, %v4861_v5 }
 0x1a2   : > { %v5310_v15 = vpop.eup %3511  ;;  %v5312_v12 = vadd.f32 %v3510_v17, %v3506_v63  ;;  %v2162_v27 = vmul.f32 %v3510_v17, %v5156_v11  ;;  %3529 = vpow2.f32 %v2036_v3  ;;  %v2132_v33 = vmul.f32 1.442695, %v2101_v40  ;;  %v5317_v21 = vpop.f32.mrf.mxu0  ;;  %v6535_v11 = vld [vmem:[#allocation39_spill] sm:$0xff] }
 0x1a3   : > { %6533 = vst [vmem:[#allocation8_spill] sm:$0xff] %v5310_v15  ;;  %v5315_v13 = vpop.f32.mrf.mxu1  ;;  %v3514_v39 = vpop.eup %3513  ;;  %v2266_v41 = vadd.f32 %v2250_v30, %v5071_v54  ;;  %v2346_v23 = vmul.f32 %v5310_v15, %v5158_v18  ;;  %3531 = vpow2.f32 %v2212_v59  ;;  %v2308_v52 = vmul.f32 1.442695, %v2285_v1 }
 0x1a4   : > { %6534 = vst [vmem:[#allocation29_spill] sm:$0xff] %v5312_v12  ;;  %v3516_v48 = vpop.eup %3515  ;;  %v5322_v49 = vadd.f32 %v2162_v27, %v2066_v45  ;;  %v2067_v63 = vmul.f32 %v3514_v39, %v5171_v20  ;;  %3533 = vpow2.f32 %v2132_v33  ;;  %v2190_v40 = vsub.f32 %v6535_v11, %v4881_v16  ;;  %v5329_v17 = vpop.f32.mrf.mxu0  ;;  %v6539_v27 = vld [vmem:[#allocation40_spill] sm:$0xff] }
 0x1a5   : > { %v5327_v3 = vpop.f32.mrf.mxu1  ;;  %v3518_v12 = vpop.eup %3517  ;;  %v5331_v54 = vadd.f32 %v2346_v23, %v2266_v41  ;;  %v5334_v18 = vadd.f32 %v3516_v48, %v5086_v37  ;;  %v2251_v30 = vmul.f32 %v3516_v48, %v5175_v47  ;;  %3535 = vpow2.f32 %v2308_v52 }
 0x1a6   : > { %v5337_v45 = vpop.eup %3519  ;;  %v5339_v20 = vadd.f32 %v3518_v12, %v3514_v39  ;;  %v2163_v59 = vmul.f32 %v3518_v12, %v5184_v55  ;;  %v2214_v1 = vmul.f32 1.442695, %v2190_v40  ;;  %v2374_v33 = vsub.f32 %v6539_v27, %v4670_v60  ;;  %v5346_v41 = vpop.f32.mrf.mxu0  ;;  %v6540_v39 = vld [vmem:[#allocation41_spill] sm:$0xff]  ;;  %v6542_v40 = vld [vmem:[#allocation42_spill] sm:$0xff] }
 0x1a7   : > { %6536 = vst [vmem:[#allocation9_spill] sm:$0xff] %v5334_v18  ;;  %6537 = vst [vmem:[#allocation30_spill] sm:$0xff] %v5337_v45  ;;  %v5344_v11 = vpop.f32.mrf.mxu1  ;;  %v2267_v37 = vadd.f32 %v2251_v30, %v5095_v31  ;;  %v2347_v47 = vmul.f32 %v5337_v45, %v5186_v32  ;;  %v2286_v23 = vsub.f32 %v4457_v26, %v4881_v16 }
 0x1a8   : > { %6538 = vst [vmem:[#allocation10_spill] sm:$0xff] %v5339_v20  ;;  %v2470_v52 = vsub.f32 %v6540_v39, %v4670_v60  ;;  %v3522_v55 = vpop.eup %3521  ;;  %v5355_v12 = vadd.f32 %v2163_v59, %v2067_v63  ;;  %3537 = vpow2.f32 %v2214_v1  ;;  %v2390_v48 = vmul.f32 1.442695, %v2374_v33  ;;  %v5361_v31 = vpop.f32.mrf.mxu0  ;;  %v6545_v1 = vld [vmem:[#allocation45_spill] sm:$0xff] }
 0x1a9   : > { %v2191_v27 = vsub.f32 %v6542_v40, %v4911_v34  ;;  %v5359_v15 = vpop.f32.mrf.mxu1  ;;  %v5363_v30 = vpop.eup %3523  ;;  %v5365_v32 = vadd.f32 %v2347_v47, %v2267_v37  ;;  %v2068_v26 = vmul.f32 %v3522_v55, %v5198_v43  ;;  %v2310_v45 = vmul.f32 1.442695, %v2286_v23  ;;  %v6546_v37 = vld [vmem:[#allocation46_spill] sm:$0xff]  ;;  %v6547_v43 = vld [vmem:[#allocation47_spill] sm:$0xff] }
 0x1aa   : > { %6541 = vst [vmem:[#allocation32_spill] sm:$0xff] %v5355_v12  ;;  %6543 = vst [vmem:[#allocation11_spill] sm:$0xff] %v5363_v30  ;;  %v2486_v39 = vmul.f32 1.442695, %v2470_v52  ;;  %v2252_v63 = vmul.f32 %v5363_v30, %v5200_v4  ;;  %3539 = vpow2.f32 %v2390_v48  ;;  %v2375_v33 = vsub.f32 %v6545_v1, %v4696_v42  ;;  %v5374_v18 = vpop.f32.mrf.mxu0  ;;  %v6548_v52 = vld [vmem:[#allocation115_spill] sm:$0xff] }
 0x1ab   : > { %6544 = vst [vmem:[#allocation35_spill] sm:$0xff] %v5365_v32  ;;  %v2216_v59 = vmul.f32 1.442695, %v2191_v27  ;;  %v5372_v40 = vpop.f32.mrf.mxu1  ;;  %v3526_v12 = vpop.eup %3525  ;;  %3541 = vpow2.f32 %v2310_v45  ;;  %v2287_v47 = vsub.f32 %v6546_v37, %v4911_v34  ;;  %v2471_v23 = vsub.f32 %v6547_v43, %v4696_v42  ;;  %v6549_v32 = vld [vmem:[#allocation48_spill] sm:$0xff]  ;;  %v6551_v27 = vld [vmem:[#allocation34_spill] sm:$0xff] }
 0x1ac   : > { %v2192_v4 = vsub.f32 %v6549_v32, %v6548_v52  ;;  %v5382_v48 = vpop.eup %3527  ;;  %v2268_v30 = vadd.f32 %v2252_v63, %v6551_v27  ;;  %v5385_v1 = vadd.f32 %v3526_v12, %v3522_v55  ;;  %v2164_v20 = vmul.f32 %v3526_v12, %v5209_v14  ;;  %v5392_v42 = vpop.f32.mrf.mxu0  ;;  %v6554_v63 = vld [vmem:[#allocation84_spill] sm:$0xff]  ;;  %v6555_v55 = vld [vmem:[#allocation49_spill] sm:$0xff] }
 0x1ad   : > { %6550 = vst [vmem:[#allocation12_spill] sm:$0xff] %v5382_v48  ;;  %3543 = vpow2.f32 %v2486_v39  ;;  %v5388_v60 = vpop.f32.mrf.mxu1  ;;  %v2348_v45 = vmul.f32 %v5382_v48, %v5211_v25  ;;  %v2392_v37 = vmul.f32 1.442695, %v2375_v33  ;;  %v2312_v43 = vmul.f32 1.442695, %v2287_v47  ;;  %v6557_v25 = vld [vmem:[#allocation50_spill] sm:$0xff] }
 0x1ae   : > { %6552 = vst [vmem:[#allocation38_spill] sm:$0xff] %v5385_v1  ;;  %3545 = vpow2.f32 %v2216_v59  ;;  %v5394_v32 = vadd.f32 %v2164_v20, %v2068_v26  ;;  %v2488_v34 = vmul.f32 1.442695, %v2471_v23  ;;  %v2218_v16 = vmul.f32 1.442695, %v2192_v4  ;;  %v6558_v59 = vld [vmem:[#allocation51_spill] sm:$0xff] }
 0x1af   : > { %v2376_v27 = vsub.f32 %v6555_v55, %v6554_v63  ;;  %v5398_v1 = vpop.f32.mrf.mxu1  ;;  %v3530_v14 = vpop.eup %3529  ;;  %v5400_v12 = vadd.f32 %v2348_v45, %v2268_v30  ;;  %3547 = vpow2.f32 %v2392_v37  ;;  %v2288_v39 = vsub.f32 %v6557_v25, %v6548_v52  ;;  %v6559_v23 = vld [vmem:[#allocation116_spill] sm:$0xff] }
 0x1b0   : > { %6553 = vst [vmem:[#allocation39_spill] sm:$0xff] %v5394_v32  ;;  %v2472_v33 = vsub.f32 %v6558_v59, %v6554_v63  ;;  %v3532_v47 = vpop.eup %3531  ;;  %v2069_v20 = vmul.f32 %v3530_v14, %v5224_v0  ;;  %3549 = vpow2.f32 %v2312_v43  ;;  %v6560_v4 = vld [vmem:[#allocation52_spill] sm:$0xff]  ;;  %v6564_v63 = vld [vmem:[#allocation17_spill] sm:$0xff] }
 0x1b1   : > { %6556 = vst [vmem:[#allocation40_spill] sm:$0xff] %v5400_v12  ;;  %v2394_v26 = vmul.f32 1.442695, %v2376_v27  ;;  %v2193_v55 = vsub.f32 %v6560_v4, %v6559_v23  ;;  %v5409_v48 = vpop.f32.mrf.mxu1  ;;  %v3534_v32 = vpop.eup %3533  ;;  %v6561_v30 = vld [vmem:[#allocation16_spill] sm:$0xff]  ;;  %v2253_v37 = vmul.f32 %v3532_v47, %v5226_v56  ;;  %3551 = vpow2.f32 %v2488_v34 }
 0x1b2   : > { %v5412_v45 = vadd.f32 %v3532_v47, %v6561_v30  ;;  %v2314_v25 = vmul.f32 1.442695, %v2288_v39  ;;  %v5415_v12 = vpop.f32.mrf.mxu0  ;;  %v5417_v59 = vpop.eup %3535  ;;  %v5419_v0 = vadd.f32 %v3534_v32, %v3530_v14  ;;  %v2165_v43 = vmul.f32 %v3534_v32, %v5240_v35  ;;  %v6566_v39 = vld [vmem:[#allocation88_spill] sm:$0xff]  ;;  %v6567_v47 = vld [vmem:[#allocation53_spill] sm:$0xff] }
 0x1b3   : > { %6563 = vst [vmem:[#allocation42_spill] sm:$0xff] %v5417_v59  ;;  %3553 = vpow2.f32 %v2218_v16  ;;  %v2490_v27 = vmul.f32 1.442695, %v2472_v33  ;;  %v5422_v4 = vpop.f32.mrf.mxu1  ;;  %v2269_v52 = vadd.f32 %v2253_v37, %v6564_v63  ;;  %v2349_v30 = vmul.f32 %v5417_v59, %v5242_v53  ;;  %v6571_v53 = vld [vmem:[#allocation55_spill] sm:$0xff] }
 0x1b4   : > { %6562 = vst [vmem:[#allocation41_spill] sm:$0xff] %v5412_v45  ;;  %3555 = vpow2.f32 %v2394_v26  ;;  %v2220_v34 = vmul.f32 1.442695, %v2193_v55  ;;  %v5427_v56 = vadd.f32 %v2165_v43, %v2069_v20  ;;  %v2377_v14 = vsub.f32 %v6567_v47, %v6566_v39  ;;  %v6568_v45 = vld [vmem:[#allocation54_spill] sm:$0xff]  ;;  %v6573_v20 = vld [vmem:[#allocation56_spill] sm:$0xff]  ;;  %v5443_v37 = vpop.f32.mrf.mxu0 }
 0x1b5   : > { %3557 = vpow2.f32 %v2314_v25  ;;  %v2289_v35 = vsub.f32 %v6568_v45, %v6559_v23  ;;  %v5433_v16 = vpop.f32.mrf.mxu1  ;;  %v5435_v32 = vpop.eup %3537  ;;  %v5437_v33 = vadd.f32 %v2349_v30, %v2269_v52  ;;  %v2473_v63 = vsub.f32 %v6571_v53, %v6566_v39  ;;  %v6572_v26 = vld [vmem:[#allocation22_spill] sm:$0xff]  ;;  %v6574_v30 = vld [vmem:[#allocation92_spill] sm:$0xff]  ;;  %v6575_v23 = vld [vmem:[#allocation57_spill] sm:$0xff] }
 0x1b6   : > { %6565 = vst [vmem:[#allocation45_spill] sm:$0xff] %v5427_v56  ;;  %6569 = vst [vmem:[#allocation46_spill] sm:$0xff] %v5435_v32  ;;  %3559 = vpow2.f32 %v2490_v27  ;;  %v2194_v55 = vsub.f32 %v6573_v20, %v6572_v26  ;;  %v2254_v25 = vmul.f32 %v5435_v32, %v5255_v10  ;;  %v2396_v45 = vmul.f32 1.442695, %v2377_v14  ;;  %v6576_v39 = vld [vmem:[#allocation58_spill] sm:$0xff]  ;;  %v5468_v32 = vpop.f32.mrf.mxu0 }
 0x1b7   : > { %6570 = vst [vmem:[#allocation47_spill] sm:$0xff] %v5437_v33  ;;  %3561 = vpow2.f32 %v2220_v34  ;;  %v2316_v43 = vmul.f32 1.442695, %v2289_v35  ;;  %v5447_v47 = vpop.f32.mrf.mxu1  ;;  %v5449_v59 = vpop.eup %3539  ;;  %v2492_v52 = vmul.f32 1.442695, %v2473_v63  ;;  %v2378_v53 = vsub.f32 %v6575_v23, %v6574_v30  ;;  %v6578_v34 = vld [vmem:[#allocation59_spill] sm:$0xff] }
 0x1b8   : > { %v2222_v27 = vmul.f32 1.442695, %v2194_v55  ;;  %v2290_v20 = vsub.f32 %v6576_v39, %v6572_v26  ;;  %v5455_v33 = vpop.eup %3541  ;;  %v2270_v56 = vadd.f32 %v2254_v25, %v5204_v2  ;;  %v2438_v10 = vmul.f32 %v5449_v59, %v5257_v8 }
 0x1b9   : > { %6577 = vst [vmem:[#allocation48_spill] sm:$0xff] %v5455_v33  ;;  %3563 = vpow2.f32 %v2396_v45  ;;  %v2474_v14 = vsub.f32 %v6578_v34, %v6574_v30  ;;  %v5462_v35 = vpop.f32.mrf.mxu1  ;;  %v2350_v23 = vmul.f32 %v5455_v33, %v5267_v51  ;;  %v2398_v39 = vmul.f32 1.442695, %v2378_v53 }
 0x1ba   : > { %v5464_v63 = vpop.eup %3543  ;;  %3565 = vpow2.f32 %v2316_v43  ;;  %v2318_v55 = vmul.f32 1.442695, %v2290_v20  ;;  %v2454_v25 = vadd.f32 %v2438_v10, %v5213_v61  ;;  %v6580_v61 = vld [vmem:[#allocation23_spill] sm:$0xff]  ;;  %v6581_v20 = vld [vmem:[#allocation60_spill] sm:$0xff] }
 0x1bb   : > { %v3546_v2 = vpop.eup %3545  ;;  %v2534_v8 = vmul.f32 %v5464_v63, %v5269_v22  ;;  %3567 = vpow2.f32 %v2492_v52  ;;  %v2494_v45 = vmul.f32 1.442695, %v2474_v14  ;;  %v5473_v34 = vpop.f32.mrf.mxu1  ;;  %v5475_v30 = vadd.f32 %v2350_v23, %v2270_v56  ;;  %v6582_v52 = vld [vmem:[#allocation61_spill] sm:$0xff] }
 0x1bc   : > { %v5478_v26 = vadd.f32 %v3546_v2, %v5221_v57  ;;  %v2255_v51 = vmul.f32 %v3546_v2, %v5284_v50  ;;  %3569 = vpow2.f32 %v2222_v27  ;;  %v5481_v43 = vpop.eup %3547  ;;  %v2195_v22 = vsub.f32 %v6581_v20, %v6580_v61  ;;  %v6584_v27 = vld [vmem:[#allocation62_spill] sm:$0xff] }
 0x1bd   : > { %v5483_v53 = vadd.f32 %v2534_v8, %v2454_v25  ;;  %3571 = vpow2.f32 %v2398_v39  ;;  %v2379_v10 = vsub.f32 %v6582_v52, %v4799_v28  ;;  %v5489_v14 = vpop.f32.mrf.mxu1  ;;  %v5491_v56 = vpop.eup %3549  ;;  %v2439_v50 = vmul.f32 %v5481_v43, %v5286_v6 }
 0x1be   : > { %6579 = vst [vmem:[#allocation34_spill] sm:$0xff] %v5478_v26  ;;  %6583 = vst [vmem:[#allocation49_spill] sm:$0xff] %v5491_v56  ;;  %v2271_v57 = vadd.f32 %v2255_v51, %v5235_v9  ;;  %3573 = vpow2.f32 %v2318_v55  ;;  %v2291_v23 = vsub.f32 %v6584_v27, %v6580_v61  ;;  %v5498_v39 = vpop.f32.mrf.mxu0  ;;  %v5500_v2 = vpop.eup %3551  ;;  %v2351_v25 = vmul.f32 %v5491_v56, %v5300_v62  ;;  %v6586_v27 = vld [vmem:[#allocation63_spill] sm:$0xff] }
 0x1bf   : > { %3575 = vpow2.f32 %v2494_v45  ;;  %v2224_v8 = vmul.f32 1.442695, %v2195_v22  ;;  %v2400_v20 = vmul.f32 1.442695, %v2379_v10  ;;  %v5504_v52 = vpop.f32.mrf.mxu1  ;;  %v2455_v6 = vadd.f32 %v2439_v50, %v5244_v29  ;;  %v6587_v45 = vld [vmem:[#allocation64_spill] sm:$0xff] }
 0x1c0   : > { %v5506_v9 = vpop.eup %3553  ;;  %v2535_v55 = vmul.f32 %v5500_v2, %v5302_v36  ;;  %v2320_v51 = vmul.f32 1.442695, %v2291_v23  ;;  %v2475_v33 = vsub.f32 %v6586_v27, %v4799_v28  ;;  %v5515_v61 = vadd.f32 %v2351_v25, %v2271_v57  ;;  %v5529_v57 = vpop.f32.mrf.mxu0 }
 0x1c1   : > { %6585 = vst [vmem:[#allocation50_spill] sm:$0xff] %v5506_v9  ;;  %v5513_v26 = vpop.eup %3555  ;;  %v2256_v62 = vmul.f32 %v5506_v9, %v5315_v13  ;;  %3577 = vpow2.f32 %v2224_v8  ;;  %v2196_v22 = vsub.f32 %v6587_v45, %v5043_v46  ;;  %v5521_v10 = vpop.f32.mrf.mxu1 }
 0x1c2   : > { %v5523_v29 = vpop.eup %3557  ;;  %v5525_v36 = vadd.f32 %v2535_v55, %v2455_v6  ;;  %v2440_v50 = vmul.f32 %v5513_v26, %v5317_v21  ;;  %3579 = vpow2.f32 %v2400_v20  ;;  %v2496_v23 = vmul.f32 1.442695, %v2475_v33  ;;  %v6589_v33 = vld [vmem:[#allocation65_spill] sm:$0xff] }
 0x1c3   : > { %6588 = vst [vmem:[#allocation51_spill] sm:$0xff] %v5523_v29  ;;  %v5531_v25 = vpop.eup %3559  ;;  %v2272_v13 = vadd.f32 %v2256_v62, %v5264_v7  ;;  %v2352_v8 = vmul.f32 %v5523_v29, %v5327_v3  ;;  %3581 = vpow2.f32 %v2320_v51  ;;  %v2226_v27 = vmul.f32 1.442695, %v2196_v22  ;;  %v5536_v45 = vpop.f32.mrf.mxu1 }
 0x1c4   : > { %v3562_v6 = vpop.eup %3561  ;;  %v2456_v55 = vadd.f32 %v2440_v50, %v5271_v58  ;;  %v2536_v21 = vmul.f32 %v5531_v25, %v5329_v17  ;;  %3583 = vpow2.f32 %v2496_v23  ;;  %v2380_v20 = vsub.f32 %v6589_v33, %v4827_v24  ;;  %v6591_v17 = vld [vmem:[#allocation66_spill] sm:$0xff]  ;;  %v6592_v23 = vld [vmem:[#allocation67_spill] sm:$0xff]  ;;  %v6595_v33 = vld [vmem:[#allocation68_spill] sm:$0xff] }
 0x1c5   : > { %v5543_v9 = vadd.f32 %v2352_v8, %v2272_v13  ;;  %v5546_v7 = vadd.f32 %v3562_v6, %v5279_v19  ;;  %v2257_v3 = vmul.f32 %v3562_v6, %v5344_v11  ;;  %3585 = vpow2.f32 %v2226_v27  ;;  %v5549_v51 = vpop.f32.mrf.mxu1  ;;  %v5559_v8 = vpop.f32.mrf.mxu0  ;;  %v6594_v6 = vld [vmem:[#allocation125_spill] sm:$0xff] }
 0x1c6   : > { %v5551_v62 = vpop.eup %3563  ;;  %v5553_v58 = vadd.f32 %v2536_v21, %v2456_v55  ;;  %v2402_v22 = vmul.f32 1.442695, %v2380_v20  ;;  %v2292_v50 = vsub.f32 %v6591_v17, %v5043_v46  ;;  %v2476_v13 = vsub.f32 %v6592_v23, %v4827_v24  ;;  %v6596_v21 = vld [vmem:[#allocation69_spill] sm:$0xff] }
 0x1c7   : > { %6590 = vst [vmem:[#allocation52_spill] sm:$0xff] %v5546_v7  ;;  %v5561_v19 = vpop.eup %3565  ;;  %v2273_v11 = vadd.f32 %v2257_v3, %v5295_v38  ;;  %v2441_v27 = vmul.f32 %v5551_v62, %v5346_v41  ;;  %v2197_v55 = vsub.f32 %v6595_v33, %v6594_v6  ;;  %v2381_v20 = vsub.f32 %v6596_v21, %v4861_v5  ;;  %v5570_v29 = vpop.f32.mrf.mxu1 }
 0x1c8   : > { %6593 = vst [vmem:[#allocation16_spill] sm:$0xff] %v5561_v19  ;;  %6597 = vst [vmem:[#allocation17_spill] sm:$0xff] %v5570_v29  ;;  %v5572_v17 = vpop.eup %3567  ;;  %v2353_v23 = vmul.f32 %v5561_v19, %v5359_v15  ;;  %3587 = vpow2.f32 %v2402_v22  ;;  %v2322_v7 = vmul.f32 1.442695, %v2292_v50  ;;  %v2498_v56 = vmul.f32 1.442695, %v2476_v13  ;;  %v5591_v13 = vpop.f32.mrf.mxu0 }
 0x1c9   : > { %v5576_v38 = vpop.eup %3569  ;;  %v2457_v41 = vadd.f32 %v2441_v27, %v5304_v44  ;;  %v2537_v3 = vmul.f32 %v5572_v17, %v5361_v31  ;;  %v2228_v33 = vmul.f32 1.442695, %v2197_v55  ;;  %v2404_v24 = vmul.f32 1.442695, %v2381_v20  ;;  %v5581_v21 = vpop.f32.mrf.mxu1  ;;  %v6600_v22 = vld [vmem:[#allocation70_spill] sm:$0xff]  ;;  %v6604_v19 = vld [vmem:[#allocation107_spill] sm:$0xff] }
 0x1ca   : > { %6598 = vst [vmem:[#allocation53_spill] sm:$0xff] %v5576_v38  ;;  %v5583_v29 = vpop.eup %3571  ;;  %v5585_v46 = vadd.f32 %v2353_v23, %v2273_v11  ;;  %v2258_v15 = vmul.f32 %v5576_v38, %v5372_v40  ;;  %3589 = vpow2.f32 %v2322_v7  ;;  %v2293_v50 = vsub.f32 %v6600_v22, %v6594_v6  ;;  %v6602_v11 = vld [vmem:[#allocation71_spill] sm:$0xff] }
 0x1cb   : > { %6599 = vst [vmem:[#allocation54_spill] sm:$0xff] %v5583_v29  ;;  %v5593_v44 = vpop.eup %3573  ;;  %v5595_v31 = vadd.f32 %v2537_v3, %v2457_v41  ;;  %v2442_v27 = vmul.f32 %v5583_v29, %v5374_v18  ;;  %3591 = vpow2.f32 %v2498_v56  ;;  %v2477_v55 = vsub.f32 %v6602_v11, %v4861_v5  ;;  %v5601_v20 = vpop.f32.mrf.mxu1  ;;  %v6606_v29 = vld [vmem:[#allocation76_spill] sm:$0xff] }
 0x1cc   : > { %6601 = vst [vmem:[#allocation55_spill] sm:$0xff] %v5593_v44  ;;  %v5603_v40 = vpop.eup %3575  ;;  %v2274_v7 = vadd.f32 %v2258_v15, %v5322_v49  ;;  %v2354_v23 = vmul.f32 %v5593_v44, %v5388_v60  ;;  %3593 = vpow2.f32 %v2228_v33  ;;  %v2324_v22 = vmul.f32 1.442695, %v2293_v50  ;;  %v6605_v49 = vld [vmem:[#allocation72_spill] sm:$0xff]  ;;  %v6607_v60 = vld [vmem:[#allocation73_spill] sm:$0xff]  ;;  %v5619_v50 = vpop.f32.mrf.mxu0 }
 0x1cd   : > { %6603 = vst [vmem:[#allocation56_spill] sm:$0xff] %v5603_v40  ;;  %v2458_v41 = vadd.f32 %v2442_v27, %v5331_v54  ;;  %v2538_v18 = vmul.f32 %v5603_v40, %v5392_v42  ;;  %3595 = vpow2.f32 %v2404_v24  ;;  %v2500_v56 = vmul.f32 1.442695, %v2477_v55  ;;  %v5611_v3 = vpop.f32.mrf.mxu1  ;;  %v6609_v42 = vld [vmem:[#allocation10_spill] sm:$0xff] }
 0x1ce   : > { %v3578_v11 = vpop.eup %3577  ;;  %v5613_v38 = vadd.f32 %v2354_v23, %v2274_v7  ;;  %3597 = vpow2.f32 %v2324_v22  ;;  %v2382_v15 = vsub.f32 %v6605_v49, %v6604_v19  ;;  %v2566_v33 = vsub.f32 %v6607_v60, %v6606_v29  ;;  %v6613_v60 = vld [vmem:[#allocation74_spill] sm:$0xff] }
 0x1cf   : > { %v5621_v54 = vpop.eup %3579  ;;  %v5623_v27 = vadd.f32 %v2538_v18, %v2458_v41  ;;  %v5626_v24 = vadd.f32 %v3578_v11, %v6609_v42  ;;  %v2259_v55 = vmul.f32 %v3578_v11, %v5398_v1  ;;  %3599 = vpow2.f32 %v2500_v56  ;;  %v5629_v7 = vpop.f32.mrf.mxu1  ;;  %v6614_v18 = vld [vmem:[#allocation33_spill] sm:$0xff]  ;;  %v6615_v42 = vld [vmem:[#allocation32_spill] sm:$0xff]  ;;  %v6616_v56 = vld [vmem:[#allocation111_spill] sm:$0xff] }
 0x1d0   : > { %6611 = vst [vmem:[#allocation59_spill] sm:$0xff] %v5629_v7  ;;  %v5631_v23 = vpop.eup %3581  ;;  %v2443_v22 = vmul.f32 %v5621_v54, %v5415_v12  ;;  %v2406_v29 = vmul.f32 1.442695, %v2382_v15  ;;  %v2582_v49 = vmul.f32 1.442695, %v2566_v33  ;;  %v2478_v44 = vsub.f32 %v6613_v60, %v6604_v19  ;;  %v6617_v11 = vld [vmem:[#allocation75_spill] sm:$0xff]  ;;  %v5650_v19 = vpop.f32.mrf.mxu0 }
 0x1d1   : > { %6608 = vst [vmem:[#allocation57_spill] sm:$0xff] %v5623_v27  ;;  %6610 = vst [vmem:[#allocation58_spill] sm:$0xff] %v5626_v24  ;;  %v5637_v41 = vpop.eup %3583  ;;  %3601 = vpow2.f32 %v6614_v18  ;;  %v2275_v24 = vadd.f32 %v2259_v55, %v6615_v42  ;;  %v2355_v1 = vmul.f32 %v5631_v23, %v5409_v48  ;;  %v2383_v7 = vsub.f32 %v6617_v11, %v6616_v56  ;;  %v6619_v12 = vld [vmem:[#allocation35_spill] sm:$0xff]  ;;  %v5656_v42 = vpop.f32.mrf.mxu1 }
 0x1d2   : > { %6612 = vst [vmem:[#allocation60_spill] sm:$0xff] %v5631_v23  ;;  %v5645_v40 = vpop.eup %3585  ;;  %v2459_v15 = vadd.f32 %v2443_v22, %v6619_v12  ;;  %v2539_v33 = vmul.f32 %v5637_v41, %v5443_v37  ;;  %3603 = vpow2.f32 %v2406_v29  ;;  %v2502_v60 = vmul.f32 1.442695, %v2478_v44  ;;  %6621 = vst [vmem:[#allocation63_spill] sm:$0xff] %v5656_v42  ;;  %v6623_v22 = vld [vmem:[#allocation80_spill] sm:$0xff]  ;;  %v6624_v12 = vld [vmem:[#allocation77_spill] sm:$0xff] }
 0x1d3   : > { %6618 = vst [vmem:[#allocation61_spill] sm:$0xff] %v5645_v40  ;;  %v5652_v18 = vadd.f32 %v2355_v1, %v2275_v24  ;;  %v2260_v55 = vmul.f32 %v5645_v40, %v5422_v4  ;;  %3605 = vpow2.f32 %v2582_v49  ;;  %v2408_v48 = vmul.f32 1.442695, %v2383_v7  ;;  %v6625_v37 = vld [vmem:[#allocation78_spill] sm:$0xff]  ;;  %v6627_v24 = vld [vmem:[#allocation39_spill] sm:$0xff]  ;;  %v6629_v4 = vld [vmem:[#allocation21_spill] sm:$0xff] }
 0x1d4   : > { %v5658_v11 = vadd.f32 %v2539_v33, %v2459_v15  ;;  %3607 = vpow2.f32 %v2502_v60  ;;  %v2567_v23 = vsub.f32 %v6624_v12, %v6623_v22  ;;  %v2479_v44 = vsub.f32 %v6625_v37, %v6616_v56  ;;  %v5671_v33 = vpop.f32.mrf.mxu0  ;;  %v6630_v40 = vld [vmem:[#allocation115_spill] sm:$0xff]  ;;  %v6633_v56 = vld [vmem:[#allocation84_spill] sm:$0xff]  ;;  %v6636_v42 = vld [vmem:[#allocation37_spill] sm:$0xff] }
 0x1d5   : > { %6620 = vst [vmem:[#allocation62_spill] sm:$0xff] %v5652_v18  ;;  %v5664_v29 = vpop.eup %3587  ;;  %v2276_v1 = vadd.f32 %v2260_v55, %v6627_v24  ;;  %3609 = vpow2.f32 %v2408_v48  ;;  %v6628_v18 = vld [vmem:[#allocation44_spill] sm:$0xff]  ;;  %v6631_v22 = vld [vmem:[#allocation79_spill] sm:$0xff]  ;;  %v6634_v55 = vld [vmem:[#allocation81_spill] sm:$0xff] }
 0x1d6   : > { %6622 = vst [vmem:[#allocation64_spill] sm:$0xff] %v5658_v11  ;;  %6626 = vst [vmem:[#allocation65_spill] sm:$0xff] %v5664_v29  ;;  %v2327_v49 = vadd.f32 %v6629_v4, %v6628_v18  ;;  %v2444_v7 = vmul.f32 %v5664_v29, %v5468_v32  ;;  %v2584_v15 = vmul.f32 1.442695, %v2567_v23  ;;  %v2504_v60 = vmul.f32 1.442695, %v2479_v44  ;;  %v5684_v23 = vpop.f32.mrf.mxu1 }
 0x1d7   : > { %v2384_v12 = vsub.f32 %v6631_v22, %v6630_v40  ;;  %v5675_v11 = vpop.eup %3589  ;;  %v2568_v48 = vsub.f32 %v6634_v55, %v6633_v56  ;;  %v6635_v24 = vld [vmem:[#allocation109_spill] sm:$0xff]  ;;  %v6637_v4 = vld [vmem:[#allocation82_spill] sm:$0xff]  ;;  %v6638_v44 = vld [vmem:[#allocation40_spill] sm:$0xff] }
 0x1d8   : > { %6632 = vst [vmem:[#allocation66_spill] sm:$0xff] %v5675_v11  ;;  %v2423_v37 = vadd.f32 %v5481_v43, %v2327_v49  ;;  %v2230_v18 = vadd.f32 %v6636_v42, %v6635_v24  ;;  %v2480_v32 = vsub.f32 %v6637_v4, %v6630_v40  ;;  %v5686_v29 = vpop.eup %3591  ;;  %v2460_v27 = vadd.f32 %v2444_v7, %v6638_v44 }
 0x1d9   : > { %v2356_v22 = vmul.f32 %v5675_v11, %v5433_v16  ;;  %3611 = vpow2.f32 %v2584_v15  ;;  %v2410_v43 = vmul.f32 1.442695, %v2384_v12  ;;  %v3594_v49 = vpop.eup %3593  ;;  %v2540_v56 = vmul.f32 %v5686_v29, %v5498_v39  ;;  %v5704_v15 = vpop.f32.mrf.mxu0 }
 0x1da   : > { %3613 = vpow2.f32 %v2504_v60  ;;  %v5694_v42 = vadd.f32 %v5500_v2, %v2423_v37  ;;  %v2586_v55 = vmul.f32 1.442695, %v2568_v48  ;;  %v5696_v24 = vpop.eup %3595  ;;  %v5701_v7 = vadd.f32 %v3594_v49, %v5419_v0  ;;  %v6642_v60 = vld [vmem:[#allocation43_spill] sm:$0xff]  ;;  %v6643_v0 = vld [vmem:[#allocation45_spill] sm:$0xff] }
 0x1db   : > { %v5698_v4 = vadd.f32 %v2356_v22, %v2276_v1  ;;  %v2261_v16 = vmul.f32 %v3594_v49, %v5447_v47  ;;  %3615 = vpow2.f32 %v2410_v43  ;;  %v5706_v12 = vpop.eup %3597  ;;  %v5708_v39 = vadd.f32 %v2540_v56, %v2460_v27  ;;  %v5713_v1 = vpop.f32.mrf.mxu1  ;;  %v6644_v22 = vld [vmem:[#allocation95_spill] sm:$0xff] }
 0x1dc   : > { %6639 = vst [vmem:[#allocation67_spill] sm:$0xff] %v5701_v7  ;;  %6640 = vst [vmem:[#allocation125_spill] sm:$0xff] %v5706_v12  ;;  %v2445_v2 = vmul.f32 %v5696_v24, %v5529_v57  ;;  %3617 = vpow2.f32 %v2586_v55  ;;  %v2326_v37 = vadd.f32 %v6642_v60, %v2230_v18  ;;  %v5715_v48 = vpop.eup %3599  ;;  %v2357_v47 = vmul.f32 %v5706_v12, %v5462_v35  ;;  %v6645_v49 = vld [vmem:[#allocation47_spill] sm:$0xff]  ;;  %v6646_v55 = vld [vmem:[#allocation116_spill] sm:$0xff] }
 0x1dd   : > { %6641 = vst [vmem:[#allocation68_spill] sm:$0xff] %v5708_v39  ;;  %v2277_v44 = vadd.f32 %v2261_v16, %v6643_v0  ;;  %v2726_v43 = vmul.f32 %v6644_v22, %v5489_v14  ;;  %v2506_v27 = vmul.f32 1.442695, %v2480_v32  ;;  %v2541_v57 = vmul.f32 %v5715_v48, %v5559_v8  ;;  %v6647_v60 = vld [vmem:[#allocation83_spill] sm:$0xff]  ;;  %v5732_v0 = vpop.f32.mrf.mxu0  ;;  %v6650_v35 = vld [vmem:[#allocation88_spill] sm:$0xff]  ;;  %v6651_v14 = vld [vmem:[#allocation85_spill] sm:$0xff] }
 0x1de   : > { %v2461_v56 = vadd.f32 %v2445_v2, %v6645_v49  ;;  %v2422_v18 = vadd.f32 %v5449_v59, %v2326_v37  ;;  %v2385_v11 = vsub.f32 %v6647_v60, %v6646_v55  ;;  %v5728_v7 = vpop.eup %3601  ;;  %v2569_v32 = vsub.f32 %v6651_v14, %v6650_v35  ;;  %v6652_v2 = vld [vmem:[#allocation86_spill] sm:$0xff]  ;;  %v6653_v60 = vld [vmem:[#allocation25_spill] sm:$0xff]  ;;  %v6655_v35 = vld [vmem:[#allocation99_spill] sm:$0xff] }
 0x1df   : > { %6648 = vst [vmem:[#allocation69_spill] sm:$0xff] %v5728_v7  ;;  %v5730_v16 = vadd.f32 %v2357_v47, %v2277_v44  ;;  %3619 = vpow2.f32 %v2506_v27  ;;  %v2481_v49 = vsub.f32 %v6652_v2, %v6646_v55  ;;  %v5738_v12 = vpop.eup %3603  ;;  %v6654_v7 = vld [vmem:[#allocation7_spill] sm:$0xff]  ;;  %v5745_v47 = vpop.f32.mrf.mxu1  ;;  %v2727_v14 = vmul.f32 %v6655_v35, %v5521_v10  ;;  %v6656_v10 = vld [vmem:[#allocation22_spill] sm:$0xff] }
 0x1e0   : > { %v5740_v8 = vadd.f32 %v2541_v57, %v2461_v56  ;;  %v2518_v59 = vadd.f32 %v5464_v63, %v2422_v18  ;;  %v2412_v37 = vmul.f32 1.442695, %v2385_v11  ;;  %v2329_v44 = vadd.f32 %v6654_v7, %v6653_v60  ;;  %v5760_v18 = vpop.f32.mrf.mxu0 }
 0x1e1   : > { %6649 = vst [vmem:[#allocation70_spill] sm:$0xff] %v5730_v16  ;;  %v3606_v16 = vpop.eup %3605  ;;  %v2446_v27 = vmul.f32 %v5738_v12, %v5591_v13  ;;  %v2588_v2 = vmul.f32 1.442695, %v2569_v32  ;;  %v2508_v39 = vmul.f32 1.442695, %v2481_v49  ;;  %v6657_v32 = vld [vmem:[#allocation87_spill] sm:$0xff] }
 0x1e2   : > { %v5751_v55 = vpop.eup %3607  ;;  %v2630_v56 = vmul.f32 %v3606_v16, %v5473_v34  ;;  %v2614_v63 = vadd.f32 %v3606_v16, %v2518_v59  ;;  %3621 = vpow2.f32 %v2412_v37  ;;  %v2425_v11 = vadd.f32 %v5551_v62, %v2329_v44  ;;  %v5768_v16 = vpop.f32.mrf.mxu1  ;;  %v6658_v37 = vld [vmem:[#allocation92_spill] sm:$0xff]  ;;  %v6659_v44 = vld [vmem:[#allocation89_spill] sm:$0xff] }
 0x1e3   : > { %v5755_v7 = vpop.eup %3609  ;;  %v2462_v57 = vadd.f32 %v2446_v27, %v5475_v30  ;;  %v2542_v13 = vmul.f32 %v5751_v55, %v5619_v50  ;;  %3623 = vpow2.f32 %v2588_v2  ;;  %v2386_v49 = vsub.f32 %v6657_v32, %v6656_v10 }
 0x1e4   : > { %v2646_v60 = vadd.f32 %v2630_v56, %v5483_v53  ;;  %v2447_v34 = vmul.f32 %v5755_v7, %v5650_v19  ;;  %v2710_v62 = vadd.f32 %v6644_v22, %v2614_v63  ;;  %3625 = vpow2.f32 %v2508_v39  ;;  %v6660_v19 = vld [vmem:[#allocation120_spill] sm:$0xff]  ;;  %v6661_v56 = vld [vmem:[#allocation5_spill] sm:$0xff] }
 0x1e5   : > { %v5770_v30 = vadd.f32 %v2542_v13, %v2462_v57  ;;  %v2521_v50 = vadd.f32 %v5572_v17, %v2425_v11  ;;  %v2414_v59 = vmul.f32 1.442695, %v2386_v49  ;;  %v2570_v27 = vsub.f32 %v6659_v44, %v6658_v37  ;;  %v1434_v17 = vpop.f32.mrf.mxu0  ;;  %v5793_v44 = vpop.f32.mrf.mxu1 }
 0x1e6   : > { %v3612_v2 = vpop.eup %3611  ;;  %v5775_v32 = vadd.f32 %v2726_v43, %v2646_v60  ;;  %v2463_v53 = vadd.f32 %v2447_v34, %v5515_v61  ;;  %3627 = vrcp.f32 %v2710_v62  ;;  %v2232_v22 = vadd.f32 %v6661_v56, %v6660_v19  ;;  %v6662_v61 = vld [vmem:[#allocation104_spill] sm:$0xff]  ;;  %v6664_v62 = vld [vmem:[#allocation90_spill] sm:$0xff] }
 0x1e7   : > { %v5780_v39 = vpop.eup %3613  ;;  %v2631_v63 = vmul.f32 %v3612_v2, %v5504_v52  ;;  %v2615_v57 = vadd.f32 %v3612_v2, %v5694_v42  ;;  %3629 = vpow2.f32 %v2414_v59  ;;  %v2590_v11 = vmul.f32 1.442695, %v2570_v27  ;;  %v6663_v60 = vld [vmem:[#allocation24_spill] sm:$0xff] }
 0x1e8   : > { %v5784_v13 = vpop.eup %3615  ;;  %v2543_v43 = vmul.f32 %v5780_v39, %v5671_v33  ;;  %v2728_v49 = vmul.f32 %v6662_v61, %v5549_v51  ;;  %v2328_v34 = vadd.f32 %v6663_v60, %v2232_v22  ;;  %v2482_v37 = vsub.f32 %v6664_v62, %v6656_v10  ;;  %v1438_v60 = vpop.f32.mrf.mxu0  ;;  %v6669_v62 = vld [vmem:[#allocation9_spill] sm:$0xff] }
 0x1e9   : > { %v3618_v52 = vpop.eup %3617  ;;  %v2647_v42 = vadd.f32 %v2631_v63, %v5525_v36  ;;  %v2711_v59 = vadd.f32 %v6655_v35, %v2615_v57  ;;  %v2448_v27 = vmul.f32 %v5784_v13, %v5704_v15  ;;  %3631 = vpow2.f32 %v2590_v11  ;;  %v6665_v36 = vld [vmem:[#allocation23_spill] sm:$0xff]  ;;  %v5814_v11 = vpop.f32.mrf.mxu1 }
 0x1ea   : > { %v5799_v33 = vadd.f32 %v2543_v43, %v2463_v53  ;;  %v2632_v51 = vmul.f32 %v3618_v52, %v5536_v45  ;;  %v2424_v2 = vadd.f32 %v5513_v26, %v2328_v34  ;;  %v2510_v19 = vmul.f32 1.442695, %v2482_v37  ;;  %v6666_v63 = vld [vmem:[#allocation91_spill] sm:$0xff]  ;;  %v6667_v45 = vld [vmem:[#allocation93_spill] sm:$0xff]  ;;  %v6668_v43 = vld [vmem:[#allocation94_spill] sm:$0xff] }
 0x1eb   : > { %v5803_v56 = vadd.f32 %v2727_v14, %v2647_v42  ;;  %3633 = vrcp.f32 %v2711_v59  ;;  %v2464_v22 = vadd.f32 %v2448_v27, %v5543_v9  ;;  %v2387_v35 = vsub.f32 %v6666_v63, %v6665_v36  ;;  %v6670_v37 = vld [vmem:[#allocation30_spill] sm:$0xff] }
 0x1ec   : > { %v5808_v57 = vpop.eup %3619  ;;  %v2648_v15 = vadd.f32 %v2632_v51, %v5553_v58  ;;  %v2520_v53 = vadd.f32 %v5531_v25, %v2424_v2  ;;  %3635 = vpow2.f32 %v2510_v19  ;;  %v2571_v26 = vsub.f32 %v6667_v45, %v4799_v28  ;;  %v6671_v25 = vld [vmem:[#allocation106_spill] sm:$0xff]  ;;  %v1440_v19 = vpop.f32.mrf.mxu0 }
 0x1ed   : > { %v2544_v14 = vmul.f32 %v5808_v57, %v5732_v0  ;;  %v2416_v9 = vmul.f32 1.442695, %v2387_v35  ;;  %v2483_v34 = vsub.f32 %v6668_v43, %v6665_v36  ;;  %v2331_v42 = vadd.f32 %v6670_v37, %v6669_v62 }
 0x1ee   : > { %v5822_v59 = vadd.f32 %v2728_v49, %v2648_v15  ;;  %v2729_v58 = vmul.f32 %v6671_v25, %v5581_v21  ;;  %v2616_v27 = vadd.f32 %v3618_v52, %v2520_v53  ;;  %v2592_v51 = vmul.f32 1.442695, %v2571_v26  ;;  %v6672_v15 = vld [vmem:[#allocation27_spill] sm:$0xff]  ;;  %v6673_v21 = vld [vmem:[#allocation96_spill] sm:$0xff]  ;;  %v5836_v53 = vpop.f32.mrf.mxu1 }
 0x1ef   : > { %v5826_v28 = vpop.eup %3621  ;;  %v5828_v2 = vadd.f32 %v2544_v14, %v2464_v22  ;;  %3637 = vpow2.f32 %v2416_v9  ;;  %v2512_v0 = vmul.f32 1.442695, %v2483_v34  ;;  %v2427_v63 = vadd.f32 %v5621_v54, %v2331_v42  ;;  %v6674_v22 = vld [vmem:[#allocation17_spill] sm:$0xff]  ;;  %v1444_v42 = vpop.f32.mrf.mxu0 }
 0x1f0   : > { %v3624_v35 = vpop.eup %3623  ;;  %v2449_v45 = vmul.f32 %v5826_v28, %v5760_v18  ;;  %v2712_v49 = vadd.f32 %v6662_v61, %v2616_v27  ;;  %3639 = vpow2.f32 %v2592_v51  ;;  %v2388_v52 = vsub.f32 %v6673_v21, %v6672_v15  ;;  %v6675_v27 = vld [vmem:[#allocation101_spill] sm:$0xff] }
 0x1f1   : > { %v5838_v26 = vpop.eup %3625  ;;  %v2633_v14 = vmul.f32 %v3624_v35, %v6674_v22  ;;  %v2617_v9 = vadd.f32 %v3624_v35, %v2521_v50  ;;  %3641 = vpow2.f32 %v2512_v0  ;;  %v5842_v54 = vadd.f32 %v5637_v41, %v2427_v63  ;;  %v6676_v51 = vld [vmem:[#allocation97_spill] sm:$0xff]  ;;  %v6677_v50 = vld [vmem:[#allocation28_spill] sm:$0xff]  ;;  %v6678_v0 = vld [vmem:[#allocation26_spill] sm:$0xff] }
 0x1f2   : > { %v2465_v43 = vadd.f32 %v2449_v45, %v5585_v46  ;;  %v2545_v18 = vmul.f32 %v5838_v26, %v1434_v17  ;;  %3643 = vrcp.f32 %v2712_v49  ;;  %v2418_v61 = vmul.f32 1.442695, %v2388_v52  ;;  %v6681_v17 = vld [vmem:[#allocation98_spill] sm:$0xff] }
 0x1f3   : > { %v3628_v34 = vpop.eup %3627  ;;  %v2649_v62 = vadd.f32 %v2633_v14, %v5595_v31  ;;  %v2713_v37 = vadd.f32 %v6671_v25, %v2617_v9  ;;  %v2572_v21 = vsub.f32 %v6676_v51, %v6675_v27  ;;  %v2234_v35 = vadd.f32 %v6678_v0, %v6677_v50  ;;  %v5859_v31 = vpop.f32.mrf.mxu1  ;;  %v6682_v14 = vld [vmem:[#allocation110_spill] sm:$0xff]  ;;  %v6687_v0 = vld [vmem:[#allocation103_spill] sm:$0xff] }
 0x1f4   : > { %v5852_v41 = vpop.eup %3629  ;;  %v2759_v46 = vmul.f32 %v3628_v34, %v5775_v32  ;;  %v5855_v63 = vadd.f32 %v2545_v18, %v2465_v43  ;;  %3645 = vpow2.f32 %v2418_v61  ;;  %v2484_v45 = vsub.f32 %v6681_v17, %v6672_v15  ;;  %v6683_v32 = vld [vmem:[#allocation8_spill] sm:$0xff] }
 0x1f5   : > { %6679 = vst [vmem:[#allocation71_spill] sm:$0xff] %v5852_v41  ;;  %v5861_v25 = vadd.f32 %v2729_v58, %v2649_v62  ;;  %3647 = vrcp.f32 %v2713_v37  ;;  %v2450_v49 = vmul.f32 %v5852_v41, %v1438_v60  ;;  %v2594_v52 = vmul.f32 1.442695, %v2572_v21  ;;  %v6684_v61 = vld [vmem:[#allocation100_spill] sm:$0xff]  ;;  %v1446_v62 = vpop.f32.mrf.mxu0  ;;  %v6685_v60 = vld [vmem:[#allocation102_spill] sm:$0xff] }
 0x1f6   : > { %6680 = vst [vmem:[#allocation72_spill] sm:$0xff] %v5855_v63  ;;  %v3632_v22 = vpop.eup %3631  ;;  %3357 = vmatprep.mubr.f32.mxu0 %v2759_v46  ;;  %v2730_v9 = vmul.f32 %v6682_v14, %v5611_v3  ;;  %v2330_v43 = vadd.f32 %v6683_v32, %v2234_v35  ;;  %v2514_v18 = vmul.f32 1.442695, %v2484_v45  ;;  %v2389_v34 = vsub.f32 %v6684_v61, %v6594_v6  ;;  %v6686_v21 = vld [vmem:[#allocation54_spill] sm:$0xff]  ;;  %v5876_v46 = vpop.f32.mrf.mxu1  ;;  %v6707_v41 = vld [vmem:[#allocation64_spill] sm:$0xff] }
 0x1f7   : > { %v2466_v27 = vadd.f32 %v2450_v49, %v5613_v38  ;;  %v2634_v58 = vmul.f32 %v3632_v22, %v5601_v20  ;;  %3649 = vpow2.f32 %v2594_v52  ;;  %v2573_v37 = vsub.f32 %v6685_v60, %v4861_v5  ;;  %v6689_v20 = vld [vmem:[#allocation57_spill] sm:$0xff]  ;;  %v6691_v32 = vld [vmem:[#allocation42_spill] sm:$0xff]  ;;  %v6693_v60 = vld [vmem:[#allocation124_spill] sm:$0xff] }
 0x1f8   : > { %v3634_v51 = vpop.eup %3633  ;;  %v2426_v50 = vadd.f32 %v6686_v21, %v2330_v43  ;;  %3651 = vpow2.f32 %v2514_v18  ;;  %v2420_v3 = vmul.f32 1.442695, %v2389_v34  ;;  %v2485_v35 = vsub.f32 %v6687_v0, %v6594_v6  ;;  %v6690_v52 = vld [vmem:[#allocation41_spill] sm:$0xff]  ;;  %v6692_v43 = vld [vmem:[#allocation56_spill] sm:$0xff] }
 0x1f9   : > { %v5878_v17 = vpop.eup %3635  ;;  %v2761_v38 = vmul.f32 %v3634_v51, %v5803_v56  ;;  %v2650_v45 = vadd.f32 %v2634_v58, %v6689_v20  ;;  %v2596_v49 = vmul.f32 1.442695, %v2573_v37  ;;  %v2333_v5 = vadd.f32 %v6691_v32, %v6690_v52  ;;  %v1450_v56 = vpop.f32.mrf.mxu0 }
 0x1fa   : > { %6688 = vst [vmem:[#allocation76_spill] sm:$0xff] %v5878_v17  ;;  %v2546_v61 = vmul.f32 %v5878_v17, %v1440_v19  ;;  %v2522_v18 = vadd.f32 %v6692_v43, %v2426_v50  ;;  %3653 = vpow2.f32 %v2420_v3  ;;  %v2516_v34 = vmul.f32 1.442695, %v2485_v35  ;;  %v6696_v50 = vld [vmem:[#allocation107_spill] sm:$0xff]  ;;  %v6697_v3 = vld [vmem:[#allocation105_spill] sm:$0xff]  ;;  %v5900_v20 = vpop.f32.mrf.mxu1  ;;  %v6706_v17 = vld [vmem:[#allocation108_spill] sm:$0xff] }
 0x1fb   : > { %v6694_v21 = vsub.f32 %v6693_v60, %v6594_v6  ;;  %3358 = vmatmul.mubr.f32.vlgmr.msra.gmra.mxu0 %v2761_v38  ;;  %v5891_v63 = vadd.f32 %v2730_v9, %v2650_v45  ;;  %3655 = vpow2.f32 %v2596_v49  ;;  %v2429_v58 = vadd.f32 %v5696_v24, %v2333_v5  ;;  %v6698_v9 = vld [vmem:[#allocation63_spill] sm:$0xff]  ;;  %v6699_v45 = vld [vmem:[#allocation113_spill] sm:$0xff]  ;;  %v6700_v24 = vld [vmem:[#allocation14_spill] sm:$0xff] }
 0x1fc   : > { %v5894_v37 = vpop.eup %3637  ;;  %v5896_v51 = vadd.f32 %v2546_v61, %v2466_v27  ;;  %v2618_v19 = vadd.f32 %v3632_v22, %v2522_v18  ;;  %3657 = vpow2.f32 %v2516_v34  ;;  %v2574_v35 = vsub.f32 %v6697_v3, %v6696_v50  ;;  %v6701_v5 = vld [vmem:[#allocation11_spill] sm:$0xff] }
 0x1fd   : > { %v5889_v0 = vmul.f32 1.442695, %v6694_v21  ;;  %v3640_v52 = vpop.eup %3639  ;;  %v2451_v38 = vmul.f32 %v5894_v37, %v1444_v42  ;;  %v2731_v32 = vmul.f32 %v6699_v45, %v6698_v9  ;;  %v5906_v49 = vadd.f32 %v5715_v48, %v2429_v58  ;;  %v6702_v22 = vld [vmem:[#allocation59_spill] sm:$0xff]  ;;  %v6703_v42 = vld [vmem:[#allocation62_spill] sm:$0xff]  ;;  %v1452_v9 = vpop.f32.mrf.mxu0  ;;  %v6704_v48 = vld [vmem:[#allocation12_spill] sm:$0xff] }
 0x1fe   : > { %6695 = vst [vmem:[#allocation73_spill] sm:$0xff] %v5896_v51  ;;  %v2236_v27 = vadd.f32 %v6701_v5, %v6700_v24  ;;  %v5910_v61 = vpop.eup %3641  ;;  %v2635_v43 = vmul.f32 %v3640_v52, %v6702_v22  ;;  %v2619_v18 = vadd.f32 %v3640_v52, %v5842_v54  ;;  %v2714_v34 = vadd.f32 %v6682_v14, %v2618_v19  ;;  %v6705_v51 = vld [vmem:[#allocation111_spill] sm:$0xff]  ;;  %v5923_v14 = vpop.f32.mrf.mxu1 }
 0x1ff   : > { %v2598_v60 = vmul.f32 1.442695, %v2574_v35  ;;  %v3644_v21 = vpop.eup %3643  ;;  %v2467_v50 = vadd.f32 %v2451_v38, %v6703_v42  ;;  %v2547_v3 = vmul.f32 %v5910_v61, %v1446_v62  ;;  %v2575_v24 = vsub.f32 %v6706_v17, %v6705_v51  ;;  %v6708_v62 = vld [vmem:[#allocation65_spill] sm:$0xff] }
 0x200   : > { %v2332_v58 = vadd.f32 %v6704_v48, %v2236_v27  ;;  %v2763_v5 = vmul.f32 %v3644_v21, %v5822_v59  ;;  %v2651_v22 = vadd.f32 %v2635_v43, %v6707_v41  ;;  %v2715_v54 = vadd.f32 %v6699_v45, %v2619_v18  ;;  %v6709_v41 = vld [vmem:[#allocation34_spill] sm:$0xff]  ;;  %v6710_v51 = vld [vmem:[#allocation49_spill] sm:$0xff]  ;;  %v6711_v18 = vld [vmem:[#allocation19_spill] sm:$0xff]  ;;  %v1456_v21 = vpop.f32.mrf.mxu0 }
 0x201   : > { %3659 = vrcp.f32 %v2714_v34  ;;  %v5925_v19 = vpop.eup %3645  ;;  %v5927_v35 = vadd.f32 %v2547_v3, %v2467_v50  ;;  %v2600_v38 = vmul.f32 1.442695, %v2575_v24  ;;  %v2335_v45 = vadd.f32 %v6710_v51, %v6709_v41  ;;  %v6712_v3 = vld [vmem:[#allocation112_spill] sm:$0xff]  ;;  %v6713_v48 = vld [vmem:[#allocation18_spill] sm:$0xff] }
 0x202   : > { %3661 = vpow2.f32 %v2598_v60  ;;  %v2428_v52 = vadd.f32 %v6708_v62, %v2332_v58  ;;  %v3648_v27 = vpop.eup %3647  ;;  %3360 = vmatprep.mubr.f32.mxu0 %v2763_v5  ;;  %v5930_v17 = vadd.f32 %v2731_v32, %v2651_v22  ;;  %v2452_v59 = vmul.f32 %v5925_v19, %v1450_v56  ;;  %v6714_v58 = vld [vmem:[#allocation46_spill] sm:$0xff]  ;;  %v5945_v5 = vpop.f32.mrf.mxu1  ;;  %v6719_v51 = vld [vmem:[#allocation68_spill] sm:$0xff] }
 0x203   : > { %3663 = vrcp.f32 %v2715_v54  ;;  %v2765_v43 = vmul.f32 %v3648_v27, %v5861_v25  ;;  %v2732_v34 = vmul.f32 %v6711_v18, %v5713_v1  ;;  %v2431_v32 = vadd.f32 %v5755_v7, %v2335_v45  ;;  %v6717_v62 = vld [vmem:[#allocation114_spill] sm:$0xff]  ;;  %v6718_v27 = vld [vmem:[#allocation48_spill] sm:$0xff] }
 0x204   : > { %v2524_v60 = vadd.f32 %v5686_v29, %v2428_v52  ;;  %3665 = vpow2.f32 %v2600_v38  ;;  %v3650_v42 = vpop.eup %3649  ;;  %v2468_v50 = vadd.f32 %v2452_v59, %v5698_v4  ;;  %v2576_v56 = vsub.f32 %v6712_v3, %v6630_v40  ;;  %v6715_v29 = vld [vmem:[#allocation20_spill] sm:$0xff] }
 0x205   : > { %v2238_v24 = vadd.f32 %v6714_v58, %v6713_v48  ;;  %v5947_v25 = vpop.eup %3651  ;;  %3361 = vmatmul.mubr.f32.gmra.mxu0 %v2765_v43  ;;  %v2636_v1 = vmul.f32 %v3650_v42, %v5684_v23  ;;  %v2733_v22 = vmul.f32 %v6715_v29, %v5768_v16  ;;  %v6716_v4 = vld [vmem:[#allocation116_spill] sm:$0xff]  ;;  %v2527_v40 = vadd.f32 %v5780_v39, %v2431_v32  ;;  %v1458_v43 = vpop.f32.mrf.mxu0 }
 0x206   : > { %v2620_v54 = vadd.f32 %v3650_v42, %v2524_v60  ;;  %v2577_v7 = vsub.f32 %v6717_v62, %v6716_v4  ;;  %v2548_v52 = vmul.f32 %v5947_v25, %v1452_v9  ;;  %v2602_v38 = vmul.f32 1.442695, %v2576_v56  ;;  %v6720_v16 = vld [vmem:[#allocation52_spill] sm:$0xff]  ;;  %v5967_v32 = vpop.f32.mrf.mxu1 }
 0x207   : > { %v2334_v59 = vadd.f32 %v6718_v27, %v2238_v24  ;;  %v5957_v41 = vpop.eup %3653  ;;  %v2652_v45 = vadd.f32 %v2636_v1, %v6719_v51  ;;  %v6721_v60 = vld [vmem:[#allocation16_spill] sm:$0xff]  ;;  %v6725_v27 = vld [vmem:[#allocation6_spill] sm:$0xff] }
 0x208   : > { %v2716_v23 = vadd.f32 %v6711_v18, %v2620_v54  ;;  %v2604_v3 = vmul.f32 1.442695, %v2577_v7  ;;  %v2337_v42 = vadd.f32 %v6721_v60, %v6720_v16  ;;  %v3656_v48 = vpop.eup %3655  ;;  %v5963_v58 = vadd.f32 %v2548_v52, %v2468_v50  ;;  %v6722_v54 = vld [vmem:[#allocation70_spill] sm:$0xff]  ;;  %v6724_v52 = vld [vmem:[#allocation117_spill] sm:$0xff]  ;;  %v5990_v51 = vpop.f32.mrf.mxu1  ;;  %v6730_v60 = vld [vmem:[#allocation60_spill] sm:$0xff] }
 0x209   : > { %v2453_v9 = vmul.f32 %v5957_v41, %v1456_v21  ;;  %3667 = vpow2.f32 %v2602_v38  ;;  %v2430_v39 = vadd.f32 %v5738_v12, %v2334_v59  ;;  %v5969_v56 = vpop.eup %3657  ;;  %v5971_v24 = vadd.f32 %v2732_v34, %v2652_v45  ;;  %v6726_v59 = vld [vmem:[#allocation50_spill] sm:$0xff] }
 0x20a   : > { %v2637_v18 = vmul.f32 %v3656_v48, %v5745_v47  ;;  %v2621_v1 = vadd.f32 %v3656_v48, %v5906_v49  ;;  %3669 = vrcp.f32 %v2716_v23  ;;  %v2549_v50 = vmul.f32 %v5969_v56, %v1458_v43  ;;  %v6723_v47 = vld [vmem:[#allocation119_spill] sm:$0xff]  ;;  %v6729_v16 = vld [vmem:[#allocation58_spill] sm:$0xff] }
 0x20b   : > { %v2469_v4 = vadd.f32 %v2453_v9, %v6722_v54  ;;  %v2526_v21 = vadd.f32 %v5751_v55, %v2430_v39  ;;  %3671 = vpow2.f32 %v2604_v3  ;;  %v2433_v34 = vadd.f32 %v5826_v28, %v2337_v42  ;;  %v6727_v28 = vld [vmem:[#allocation118_spill] sm:$0xff]  ;;  %v6728_v3 = vld [vmem:[#allocation51_spill] sm:$0xff]  ;;  %v6006_v54 = vpop.f32.mrf.mxu1 }
 0x20c   : > { %3673 = vpow2.f32 %v5889_v0  ;;  %v2653_v12 = vadd.f32 %v2637_v18, %v5740_v8  ;;  %v2717_v62 = vadd.f32 %v6715_v29, %v2621_v1  ;;  %v2734_v49 = vmul.f32 %v6723_v47, %v5814_v11 }
 0x20d   : > { %v5982_v7 = vadd.f32 %v2549_v50, %v2469_v4  ;;  %v2578_v38 = vsub.f32 %v6724_v52, %v6656_v10  ;;  %v2240_v55 = vadd.f32 %v6726_v59, %v6725_v27  ;;  %v2529_v8 = vadd.f32 %v5838_v26, %v2433_v34  ;;  %v6735_v27 = vld [vmem:[#allocation53_spill] sm:$0xff]  ;;  %v6736_v59 = vld [vmem:[#allocation123_spill] sm:$0xff] }
 0x20e   : > { %v3660_v0 = vpop.eup %3659  ;;  %v5992_v45 = vadd.f32 %v2733_v22, %v2653_v12  ;;  %3675 = vrcp.f32 %v2717_v62  ;;  %v2579_v29 = vsub.f32 %v6727_v28, %v6665_v36  ;;  %v2339_v42 = vadd.f32 %v6730_v60, %v6729_v16  ;;  %v6731_v22 = vld [vmem:[#allocation122_spill] sm:$0xff]  ;;  %v6732_v62 = vld [vmem:[#allocation121_spill] sm:$0xff] }
 0x20f   : > { %v3662_v43 = vpop.eup %3661  ;;  %v2767_v11 = vmul.f32 %v3660_v0, %v5891_v63  ;;  %v2606_v23 = vmul.f32 1.442695, %v2578_v38  ;;  %v2336_v10 = vadd.f32 %v6728_v3, %v2240_v55  ;;  %v2735_v39 = vmul.f32 %v6731_v22, %v5859_v31  ;;  %v6734_v38 = vld [vmem:[#allocation29_spill] sm:$0xff] }
 0x210   : > { %v3664_v48 = vpop.eup %3663  ;;  %v2638_v9 = vmul.f32 %v3662_v43, %v5793_v44  ;;  %v2622_v18 = vadd.f32 %v3662_v43, %v2526_v21  ;;  %v2608_v26 = vmul.f32 1.442695, %v2579_v29  ;;  %v2435_v4 = vadd.f32 %v5894_v37, %v2339_v42  ;;  %v6739_v28 = vld [vmem:[#allocation125_spill] sm:$0xff]  ;;  %v6741_v42 = vld [vmem:[#allocation38_spill] sm:$0xff] }
 0x211   : > { %v3666_v1 = vpop.eup %3665  ;;  %v2769_v36 = vmul.f32 %v3664_v48, %v5930_v17  ;;  %3363 = vmatprep.mubr.f32.mxu0 %v2767_v11  ;;  %3677 = vpow2.f32 %v2606_v23  ;;  %v2432_v63 = vadd.f32 %v5784_v13, %v2336_v10  ;;  %v2580_v13 = vsub.f32 %v6732_v62, %v6672_v15  ;;  %v6737_v15 = vld [vmem:[#allocation31_spill] sm:$0xff]  ;;  %v6742_v48 = vld [vmem:[#allocation61_spill] sm:$0xff] }
 0x212   : > { %v2654_v50 = vadd.f32 %v2638_v9, %v5770_v30  ;;  %v2639_v44 = vmul.f32 %v3666_v1, %v5836_v53  ;;  %v2623_v12 = vadd.f32 %v3666_v1, %v2527_v40  ;;  %v2718_v31 = vadd.f32 %v6723_v47, %v2622_v18  ;;  %v6733_v30 = vld [vmem:[#allocation13_spill] sm:$0xff]  ;;  %v1607_v40 = vpop.f32.mrf.mxu1  ;;  %v6740_v23 = vld [vmem:[#allocation55_spill] sm:$0xff] }
 0x213   : > { %3364 = vmatmul.mubr.f32.gmra.mxu0 %v2769_v36  ;;  %v2528_v21 = vadd.f32 %v5808_v57, %v2432_v63  ;;  %3679 = vpow2.f32 %v2608_v26  ;;  %v2531_v17 = vadd.f32 %v5910_v61, %v2435_v4  ;;  %v2736_v53 = vmul.f32 %v6733_v30, %v5900_v20  ;;  %v6743_v1 = vld [vmem:[#allocation71_spill] sm:$0xff] }
 0x214   : > { %v2750_v34 = vadd.f32 %v2734_v49, %v2654_v50  ;;  %v2655_v52 = vadd.f32 %v2639_v44, %v5799_v33  ;;  %v2719_v37 = vadd.f32 %v6731_v22, %v2623_v12  ;;  %3681 = vrcp.f32 %v2718_v31  ;;  %v6738_v49 = vld [vmem:[#allocation67_spill] sm:$0xff]  ;;  %v1611_v26 = vpop.f32.mrf.mxu1  ;;  %v6745_v44 = vld [vmem:[#allocation72_spill] sm:$0xff] }
 0x215   : > { %v2610_v47 = vmul.f32 1.442695, %v2580_v13  ;;  %v2242_v57 = vadd.f32 %v6735_v27, %v6734_v38  ;;  %v2581_v61 = vsub.f32 %v6736_v59, %v6594_v6  ;;  %v2737_v33 = vmul.f32 %v6737_v15, %v5945_v5  ;;  %v6748_v27 = vld [vmem:[#allocation36_spill] sm:$0xff]  ;;  %v6749_v59 = vld [vmem:[#allocation73_spill] sm:$0xff] }
 0x216   : > { %v3668_v55 = vpop.eup %3667  ;;  %v2751_v0 = vadd.f32 %v2735_v39, %v2655_v52  ;;  %3683 = vrcp.f32 %v2719_v37  ;;  %v2341_v29 = vadd.f32 %v6739_v28, %v6738_v49  ;;  %v2244_v9 = vadd.f32 %v6742_v48, %v6741_v42  ;;  %v1613_v13 = vpop.f32.mrf.mxu1 }
 0x217   : > { %v3670_v43 = vpop.eup %3669  ;;  %v2640_v20 = vmul.f32 %v3668_v55, %v5876_v46  ;;  %v2624_v11 = vadd.f32 %v3668_v55, %v2528_v21  ;;  %3685 = vpow2.f32 %v2610_v47  ;;  %v2338_v3 = vadd.f32 %v6740_v23, %v2242_v57 }
 0x218   : > { %v3672_v10 = vpop.eup %3671  ;;  %v2771_v16 = vmul.f32 %v3670_v43, %v5971_v24  ;;  %v2612_v6 = vmul.f32 1.442695, %v2581_v61  ;;  %v2437_v60 = vadd.f32 %v5957_v41, %v2341_v29  ;;  %v6744_v41 = vld [vmem:[#allocation66_spill] sm:$0xff] }
 0x219   : > { %v6034_v5 = vpop.eup %3673  ;;  %v2656_v22 = vadd.f32 %v2640_v20, %v5828_v2  ;;  %v2641_v39 = vmul.f32 %v3672_v10, %v5923_v14  ;;  %v2625_v46 = vadd.f32 %v3672_v10, %v2529_v8  ;;  %v2720_v18 = vadd.f32 %v6733_v30, %v2624_v11  ;;  %v6746_v8 = vld [vmem:[#allocation76_spill] sm:$0xff]  ;;  %v6747_v30 = vld [vmem:[#allocation15_spill] sm:$0xff] }
 0x21a   : > { %3366 = vmatprep.mubr.f32.mxu0 %v2771_v16  ;;  %v2434_v36 = vadd.f32 %v6743_v1, %v2338_v3  ;;  %3687 = vpow2.f32 %v2612_v6  ;;  %v2533_v24 = vadd.f32 %v5969_v56, %v2437_v60  ;;  %v2340_v63 = vadd.f32 %v6744_v41, %v2244_v9 }
 0x21b   : > { %v3676_v4 = vpop.eup %3675  ;;  %v2752_v50 = vadd.f32 %v2736_v53, %v2656_v22  ;;  %v2657_v12 = vadd.f32 %v2641_v39, %v6745_v44  ;;  %v2721_v2 = vadd.f32 %v6737_v15, %v2625_v46  ;;  %3689 = vrcp.f32 %v2720_v18 }
 0x21c   : > { %v2773_v14 = vmul.f32 %v3676_v4, %v5992_v45  ;;  %v2530_v31 = vadd.f32 %v6746_v8, %v2434_v36  ;;  %v2436_v21 = vadd.f32 %v5925_v19, %v2340_v63  ;;  %v2738_v53 = vmul.f32 %v6747_v30, %v5990_v51 }
 0x21d   : > { %v2753_v62 = vadd.f32 %v2737_v33, %v2657_v12  ;;  %3691 = vrcp.f32 %v2721_v2  ;;  %v2739_v45 = vmul.f32 %v6748_v27, %v1607_v40  ;;  %v1617_v33 = vpop.f32.mrf.mxu1  ;;  %v6750_v40 = vld [vmem:[#allocation69_spill] sm:$0xff] }
 0x21e   : > { %v3678_v52 = vpop.eup %3677  ;;  %3367 = vmatmul.mubr.f32.gmra.mxu0 %v2773_v14  ;;  %v2532_v56 = vadd.f32 %v5947_v25, %v2436_v21  ;;  %v2740_v20 = vmul.f32 %v6750_v40, %v1613_v13 }
 0x21f   : > { %v2642_v37 = vmul.f32 %v3678_v52, %v5967_v32  ;;  %v2626_v47 = vadd.f32 %v3678_v52, %v2530_v31 }
 0x220   : > { %v3680_v38 = vpop.eup %3679 }
 0x221   : > { %v3682_v57 = vpop.eup %3681  ;;  %v2658_v61 = vadd.f32 %v2642_v37, %v6749_v59  ;;  %v2643_v19 = vmul.f32 %v3680_v38, %v6006_v54  ;;  %v2627_v55 = vadd.f32 %v3680_v38, %v2531_v17  ;;  %v2722_v15 = vadd.f32 %v6747_v30, %v2626_v47  ;;  %v1619_v17 = vpop.f32.mrf.mxu1 }
 0x222   : > { %v2775_v49 = vmul.f32 %v3682_v57, %v2750_v34  ;;  %v2741_v60 = vmul.f32 %v6034_v5, %v1619_v17 }
 0x223   : > { %v3684_v25 = vpop.eup %3683  ;;  %v2754_v28 = vadd.f32 %v2738_v53, %v2658_v61  ;;  %v2659_v32 = vadd.f32 %v2643_v19, %v5927_v35  ;;  %v2723_v51 = vadd.f32 %v6748_v27, %v2627_v55  ;;  %3693 = vrcp.f32 %v2722_v15 }
 0x224   : > { %v3686_v29 = vpop.eup %3685  ;;  %v2777_v43 = vmul.f32 %v3684_v25, %v2751_v0  ;;  %3369 = vmatprep.mubr.f32.mxu0 %v2775_v49 }
 0x225   : > { %v2755_v11 = vadd.f32 %v2739_v45, %v2659_v32  ;;  %3695 = vrcp.f32 %v2723_v51  ;;  %v2644_v54 = vmul.f32 %v3686_v29, %v1611_v26  ;;  %v2628_v23 = vadd.f32 %v3686_v29, %v2532_v56 }
 0x226   : > { %3370 = vmatmul.mubr.f32.gmra.mxu0 %v2777_v43 }
 0x227   : > { %v3688_v3 = vpop.eup %3687  ;;  %v2660_v34 = vadd.f32 %v2644_v54, %v5963_v58  ;;  %v2724_v10 = vadd.f32 %v6750_v40, %v2628_v23 }
 0x228   : > { %v3690_v35 = vpop.eup %3689  ;;  %v2645_v16 = vmul.f32 %v3688_v3, %v1617_v33  ;;  %v2629_v6 = vadd.f32 %v3688_v3, %v2533_v24 }
 0x229   : > { %v2779_v0 = vmul.f32 %v3690_v35, %v2752_v50  ;;  %v2756_v42 = vadd.f32 %v2740_v20, %v2660_v34  ;;  %3697 = vrcp.f32 %v2724_v10  ;;  %v2806_v50 = vld [vmem:[%s6128_s2 + $0x80] sm:$0xff] }
 0x22a   : > { %v3692_v48 = vpop.eup %3691  ;;  %v2661_v9 = vadd.f32 %v2645_v16, %v5982_v7  ;;  %v2725_v22 = vadd.f32 %v6034_v5, %v2629_v6  ;;  %v2807_v7 = vlaneseq }
 0x22b   : > { %v2781_v39 = vmul.f32 %v3692_v48, %v2753_v62  ;;  %3372 = vmatprep.mubr.f32.mxu0 %v2779_v0 }
 0x22c   : > { %v2757_v46 = vadd.f32 %v2741_v60, %v2661_v9  ;;  %3699 = vrcp.f32 %v2725_v22  ;;  %v2808_v4 = vshrl.u32 %v2807_v7, 7 }
 0x22d   : > { %3373 = vmatmul.mubr.f32.gmra.mxu0 %v2781_v39 }
 0x22e   : > { %v2809_v5 = vsub.s32 0, %v2808_v4 }
 0x230   : > { %v3694_v58 = vpop.eup %3693  ;;  %v6066_v44 = vrot.slane %v2806_v50, %v2809_v5 }
 0x231   : > { %v2783_v18 = vmul.f32 %v3694_v58, %v2754_v28 }
 0x232   : > { %v3696_v26 = vpop.eup %3695 }
 0x233   : > { %v2785_v1 = vmul.f32 %v3696_v26, %v2755_v11  ;;  %3375 = vmatprep.mubr.f32.mxu0 %v2783_v18 }
 0x235   : > { %3376 = vmatmul.mubr.f32.gmra.mxu0 %v2785_v1 }
 0x236   : > { %v3698_v36 = vpop.eup %3697 }
 0x237   : > { %v2787_v24 = vmul.f32 %v3698_v36, %v2756_v42 }
 0x239   : > { %v3700_v41 = vpop.eup %3699  ;;  %3378 = vmatprep.mubr.f32.mxu0 %v2787_v24 }
 0x23a   : > { %v2789_v63 = vmul.f32 %v3700_v41, %v2757_v46 }
 0x23c   : > { %3379 = vmatmul.mubr.f32.gmra.mxu0 %v2789_v63 }
 0x2bb   : > { %v3359_v12 = vpop.f32.mrf.mxu0 }
 0x2bc   : > { %v2883_v2 = vadd.f32 %v3359_v12, %v6066_v44 }
 0x2bd   : > { %v2877_v14 = vpop.f32.mrf.mxu0 }
 0x2be   : > { %v3276_v8 = vmul.f32 -1.442695, %v2883_v2  ;;  %v2878_v31 = vadd.f32 %v2877_v14, %v6066_v44 }
 0x2c0   : > { %3701 = vpow2.f32 %v3276_v8  ;;  %v3275_v21 = vmul.f32 -1.442695, %v2878_v31 }
 0x2c2   : > { %3703 = vpow2.f32 %v3275_v21 }
 0x2c5   : > { %v3362_v62 = vpop.f32.mrf.mxu0 }
 0x2c6   : > { %v2893_v13 = vadd.f32 %v3362_v62, %v6066_v44 }
 0x2c7   : > { %v2887_v52 = vpop.f32.mrf.mxu0 }
 0x2c8   : > { %v3278_v56 = vmul.f32 -1.442695, %v2893_v13  ;;  %v2888_v37 = vadd.f32 %v2887_v52, %v6066_v44 }
 0x2ca   : > { %3705 = vpow2.f32 %v3278_v56  ;;  %v3277_v30 = vmul.f32 -1.442695, %v2888_v37 }
 0x2cc   : > { %3707 = vpow2.f32 %v3277_v30 }
 0x2cd   : > { %v3702_v53 = vpop.eup %3701 }
 0x2ce   : > { %v3005_v47 = vadd.f32 1.0, %v3702_v53 }
 0x2cf   : > { %v3704_v38 = vpop.eup %3703 }
 0x2d0   : > { %3709 = vrcp.f32 %v3005_v47  ;;  %v3004_v27 = vadd.f32 1.0, %v3704_v38 }
 0x2d2   : > { %3711 = vrcp.f32 %v3004_v27 }
 0x2d3   : > { %v3365_v45 = vpop.f32.mrf.mxu0 }
 0x2d4   : > { %v2903_v57 = vadd.f32 %v3365_v45, %v6066_v44 }
 0x2d5   : > { %v2897_v59 = vpop.f32.mrf.mxu0 }
 0x2d6   : > { %v3280_v61 = vmul.f32 -1.442695, %v2903_v57  ;;  %v2898_v19 = vadd.f32 %v2897_v59, %v6066_v44 }
 0x2d7   : > { %v3706_v55 = vpop.eup %3705 }
 0x2d8   : > { %3713 = vpow2.f32 %v3280_v61  ;;  %v3279_v15 = vmul.f32 -1.442695, %v2898_v19  ;;  %v3007_v33 = vadd.f32 1.0, %v3706_v55 }
 0x2d9   : > { %v3708_v49 = vpop.eup %3707 }
 0x2da   : > { %3715 = vpow2.f32 %v3279_v15  ;;  %v3006_v25 = vadd.f32 1.0, %v3708_v49 }
 0x2db   : > { %3717 = vrcp.f32 %v3007_v33 }
 0x2dc   : > { %3719 = vrcp.f32 %v3006_v25 }
 0x2dd   : > { %v3710_v28 = vpop.eup %3709 }
 0x2de   : > { %v3368_v32 = vpop.f32.mrf.mxu0  ;;  %3053 = vst.msk [vmem:[%s6079_s14 + $0x8] sm:$0xff] %vm285_vm0, %v3710_v28 }
 0x2df   : > { %v2913_v51 = vadd.f32 %v3368_v32, %v6066_v44  ;;  %v3712_v29 = vpop.eup %3711 }
 0x2e0   : > { %v2907_v43 = vpop.f32.mrf.mxu0  ;;  %3052 = vst.msk [vmem:[%s6079_s14] sm:$0xff] %vm285_vm0, %v3712_v29 }
 0x2e1   : > { %v3282_v40 = vmul.f32 -1.442695, %v2913_v51  ;;  %v2908_v20 = vadd.f32 %v2907_v43, %v6066_v44 }
 0x2e3   : > { %3721 = vpow2.f32 %v3282_v40  ;;  %v3281_v11 = vmul.f32 -1.442695, %v2908_v20 }
 0x2e5   : > { %v3714_v54 = vpop.eup %3713  ;;  %3723 = vpow2.f32 %v3281_v11 }
 0x2e6   : > { %v3009_v17 = vadd.f32 1.0, %v3714_v54  ;;  %v3371_v23 = vpop.f32.mrf.mxu0 }
 0x2e7   : > { %v3716_v3 = vpop.eup %3715  ;;  %v2923_v34 = vadd.f32 %v3371_v23, %v6066_v44 }
 0x2e8   : > { %v3718_v10 = vpop.eup %3717  ;;  %3725 = vrcp.f32 %v3009_v17  ;;  %v3008_v35 = vadd.f32 1.0, %v3716_v3  ;;  %v2917_v16 = vpop.f32.mrf.mxu0 }
 0x2e9   : > { %3055 = vst.msk [vmem:[%s6079_s14 + $0x18] sm:$0xff] %vm285_vm0, %v3718_v10  ;;  %v3284_v6 = vmul.f32 -1.442695, %v2923_v34  ;;  %v2918_v60 = vadd.f32 %v2917_v16, %v6066_v44  ;;  %v3720_v0 = vpop.eup %3719 }
 0x2ea   : > { %3727 = vrcp.f32 %v3008_v35  ;;  %3054 = vst.msk [vmem:[%s6079_s14 + $0x10] sm:$0xff] %vm285_vm0, %v3720_v0 }
 0x2eb   : > { %3729 = vpow2.f32 %v3284_v6  ;;  %v3283_v42 = vmul.f32 -1.442695, %v2918_v60 }
 0x2ed   : > { %3731 = vpow2.f32 %v3283_v42  ;;  %v3374_v48 = vpop.f32.mrf.mxu0 }
 0x2ee   : > { %v2933_v9 = vadd.f32 %v3374_v48, %v6066_v44 }
 0x2ef   : > { %v2927_v22 = vpop.f32.mrf.mxu0 }
 0x2f0   : > { %v3722_v39 = vpop.eup %3721  ;;  %v3286_v46 = vmul.f32 -1.442695, %v2933_v9  ;;  %v2928_v58 = vadd.f32 %v2927_v22, %v6066_v44 }
 0x2f1   : > { %v3011_v18 = vadd.f32 1.0, %v3722_v39 }
 0x2f2   : > { %v3724_v26 = vpop.eup %3723  ;;  %3733 = vpow2.f32 %v3286_v46  ;;  %v3285_v1 = vmul.f32 -1.442695, %v2928_v58 }
 0x2f3   : > { %3735 = vrcp.f32 %v3011_v18  ;;  %v3010_v36 = vadd.f32 1.0, %v3724_v26 }
 0x2f4   : > { %3737 = vpow2.f32 %v3285_v1 }
 0x2f5   : > { %v3726_v24 = vpop.eup %3725  ;;  %3739 = vrcp.f32 %v3010_v36  ;;  %v3377_v41 = vpop.f32.mrf.mxu0 }
 0x2f6   : > { %3057 = vst.msk [vmem:[%s6079_s14 + $0x28] sm:$0xff] %vm285_vm0, %v3726_v24  ;;  %v2943_v63 = vadd.f32 %v3377_v41, %v6066_v44 }
 0x2f7   : > { %v3728_v7 = vpop.eup %3727  ;;  %v2937_v4 = vpop.f32.mrf.mxu0 }
 0x2f8   : > { %v3730_v5 = vpop.eup %3729  ;;  %3056 = vst.msk [vmem:[%s6079_s14 + $0x20] sm:$0xff] %vm285_vm0, %v3728_v7  ;;  %v3288_v50 = vmul.f32 -1.442695, %v2943_v63  ;;  %v2938_v12 = vadd.f32 %v2937_v4, %v6066_v44 }
 0x2f9   : > { %v3013_v2 = vadd.f32 1.0, %v3730_v5 }
 0x2fa   : > { %v3732_v14 = vpop.eup %3731  ;;  %3741 = vpow2.f32 %v3288_v50  ;;  %v3287_v8 = vmul.f32 -1.442695, %v2938_v12 }
 0x2fb   : > { %3743 = vrcp.f32 %v3013_v2  ;;  %v3012_v31 = vadd.f32 1.0, %v3732_v14 }
 0x2fc   : > { %3745 = vpow2.f32 %v3287_v8  ;;  %v3380_v21 = vpop.f32.mrf.mxu0 }
 0x2fd   : > { %3747 = vrcp.f32 %v3012_v31  ;;  %v2953_v62 = vadd.f32 %v3380_v21, %v6066_v44 }
 0x2fe   : > { %v2947_v13 = vpop.f32.mrf.mxu0 }
 0x2ff   : > { %v3734_v52 = vpop.eup %3733  ;;  %v3290_v56 = vmul.f32 -1.442695, %v2953_v62  ;;  %v2948_v37 = vadd.f32 %v2947_v13, %v6066_v44 }
 0x300   : > { %v3736_v30 = vpop.eup %3735  ;;  %v3015_v53 = vadd.f32 1.0, %v3734_v52 }
 0x301   : > { %v3738_v47 = vpop.eup %3737  ;;  %3059 = vst.msk [vmem:[%s6079_s14 + $0x38] sm:$0xff] %vm285_vm0, %v3736_v30  ;;  %3749 = vpow2.f32 %v3290_v56  ;;  %v3289_v38 = vmul.f32 -1.442695, %v2948_v37 }
 0x302   : > { %v3740_v27 = vpop.eup %3739  ;;  %3751 = vrcp.f32 %v3015_v53  ;;  %v3014_v45 = vadd.f32 1.0, %v3738_v47 }
 0x303   : > { %3058 = vst.msk [vmem:[%s6079_s14 + $0x30] sm:$0xff] %vm285_vm0, %v3740_v27  ;;  %3753 = vpow2.f32 %v3289_v38 }
 0x304   : > { %3755 = vrcp.f32 %v3014_v45 }
 0x307   : > { %v3742_v57 = vpop.eup %3741 }
 0x308   : > { %v3744_v59 = vpop.eup %3743  ;;  %v3017_v44 = vadd.f32 1.0, %v3742_v57 }
 0x309   : > { %v3746_v61 = vpop.eup %3745  ;;  %3061 = vst.msk [vmem:[%s6079_s14 + $0x48] sm:$0xff] %vm285_vm0, %v3744_v59 }
 0x30a   : > { %v3748_v19 = vpop.eup %3747  ;;  %3757 = vrcp.f32 %v3017_v44  ;;  %v3016_v55 = vadd.f32 1.0, %v3746_v61 }
 0x30b   : > { %3060 = vst.msk [vmem:[%s6079_s14 + $0x40] sm:$0xff] %vm285_vm0, %v3748_v19 }
 0x30c   : > { %3759 = vrcp.f32 %v3016_v55 }
 0x30e   : > { %v3750_v15 = vpop.eup %3749 }
 0x30f   : > { %v3752_v33 = vpop.eup %3751  ;;  %v3019_v49 = vadd.f32 1.0, %v3750_v15 }
 0x310   : > { %v3754_v25 = vpop.eup %3753  ;;  %3063 = vst.msk [vmem:[%s6079_s14 + $0x58] sm:$0xff] %vm285_vm0, %v3752_v33 }
 0x311   : > { %v3756_v28 = vpop.eup %3755  ;;  %3761 = vrcp.f32 %v3019_v49  ;;  %v3018_v32 = vadd.f32 1.0, %v3754_v25 }
 0x312   : > { %3062 = vst.msk [vmem:[%s6079_s14 + $0x50] sm:$0xff] %vm285_vm0, %v3756_v28 }
 0x313   : > { %3763 = vrcp.f32 %v3018_v32 }
 0x317   : > { %v3758_v51 = vpop.eup %3757 }
 0x318   : > { %3065 = vst.msk [vmem:[%s6079_s14 + $0x68] sm:$0xff] %vm285_vm0, %v3758_v51 }
 0x319   : > { %v3760_v29 = vpop.eup %3759 }
 0x31a   : > { %3064 = vst.msk [vmem:[%s6079_s14 + $0x60] sm:$0xff] %vm285_vm0, %v3760_v29 }
 0x31e   : > { %v3762_v43 = vpop.eup %3761 }
 0x31f   : > { %3067 = vst.msk [vmem:[%s6079_s14 + $0x78] sm:$0xff] %vm285_vm0, %v3762_v43 }
 0x320   : > { %v3764_v40 = vpop.eup %3763 }
 0x321   : > { %3066 = vst.msk [vmem:[%s6079_s14 + $0x70] sm:$0xff] %vm285_vm0, %v3764_v40 }
 0x322 PF: > { %s14_s12 = sadd.s32 1, %s3805_s12  }
 0x323   : > { %p11_p1 = scmp.ge.s32.totalorder %s14_s12, 4  }
 0x325   :  { %13 = sbr.rel (!%p11_p1) target bundleno = 1 (0x1), region = 67 }
 0x32a   :  { %3090 = vsyncpa [#allocation3], 1 }
 0x32b   :  { %3092 = vsyncpa [#allocation3 + $0x1], 1 }

</bundles_post_ra>
